<compile_context>
chip_gen: v6e
topology: v6e:2x2x1
jax: 0.10.0
libtpu: 0.0.40
codegen_flags: <defaults>
</compile_context>

<pallas_src>
import numpy as np
import jax
import jax.numpy as jnp
from jax.experimental import pallas as pl

EMBED_DIM = 32
N_HEADS = 4
HEAD_DIM = EMBED_DIM // N_HEADS
FFN_HIDDEN = 4 * EMBED_DIM
LN_EPS = 1e-5


# ---------------------------------------------------------------------------
# in-kernel helpers
# ---------------------------------------------------------------------------
def _layernorm(t, g, b):
    mu = jnp.mean(t, axis=-1, keepdims=True)
    d = t - mu
    var = jnp.mean(d * d, axis=-1, keepdims=True)
    return d * jax.lax.rsqrt(var + LN_EPS) * g + b


def _mha_core(q_parts, k_parts, v3, wo, scale):
    """Multi-head attention core, batched over the batch dim.

    q_parts / k_parts: lists of (N, nq, C) / (N, nk, C) arrays; the per-head score is
    the sum of the per-part dots (1 part => 'add' mode with pre-summed q/k,
    2 parts => 'cat' mode).  v3: (N, nk, C).  wo: (C, C) output projection.
    The output projection is applied PER HEAD and accumulated, so no lane
    concatenate of head outputs is ever materialized.  Returns (N*nq, C).
    """
    N, nq, C = q_parts[0].shape
    rows = N * nq
    acc = jnp.zeros((rows, C), jnp.float32)
    for h in range(N_HEADS):
        sl = slice(h * HEAD_DIM, (h + 1) * HEAD_DIM)
        s = None
        for qh, kh in zip(q_parts, k_parts):
            part = jnp.einsum('bqd,bkd->bqk', qh[:, :, sl], kh[:, :, sl],
                              preferred_element_type=jnp.float32)
            s = part if s is None else s + part
        s = s * scale
        s = s - jnp.max(s, axis=-1, keepdims=True)
        p = jnp.exp(s)
        p = p / jnp.sum(p, axis=-1, keepdims=True)
        pv = jnp.einsum('bqk,bkd->bqd', p, v3[:, :, sl],
                        preferred_element_type=jnp.float32)          # (N, nq, HEAD_DIM)
        acc = acc + jnp.dot(pv.reshape(rows, HEAD_DIM), wo[sl, :],
                            preferred_element_type=jnp.float32)
    return acc


# ---------------------------------------------------------------------------
# kernel factory: whole batch per invocation, static flags for optional adds
# ---------------------------------------------------------------------------
def _make_kernel(N, nobj, L, C, has_qadd, has_kadd, names):
    sa_scale = 1.0 / np.sqrt(HEAD_DIM)
    ca_scale = 1.0 / np.sqrt(2 * HEAD_DIM)

    def kernel(*args):
        r = dict(zip(names, args))          # named input refs (zip stops before out_ref)
        out_ref = args[len(names)]

        cq = r["cq"][...]                   # (N*nobj, C)
        x = r["x"][...]                     # (N*L, C)
        xpe = r["xpe"][...]                 # (L, C)   batch-shared
        psa = r["psa"][...]                 # (N*nobj, C)
        pca = r["pca"][...]                 # (N*nobj, C)

        ln_g = r["ln_g"][...]               # (3, C)
        ln_b = r["ln_b"][...]

        # ---------------- self attention (mode='add') ----------------
        # [q | k | v] produced by two fat matmuls (weights packed host-side).
        qkv = (jnp.dot(cq, r["w_sa_c"][...], preferred_element_type=jnp.float32)
               + jnp.dot(psa, r["w_sa_p"][...], preferred_element_type=jnp.float32)
               + r["b_sa_qkv"][...])                                   # (N*nobj, 3C)
        q3 = qkv[:, :C].reshape(N, nobj, C)
        k3 = qkv[:, C:2 * C].reshape(N, nobj, C)
        v3 = qkv[:, 2 * C:].reshape(N, nobj, C)
        sa = _mha_core([q3], [k3], v3, r["w_sa_o"][...], sa_scale) + r["b_sa_o"][...]
        t1 = _layernorm(cq + sa, ln_g[0:1, :], ln_b[0:1, :])           # (N*nobj, C)

        # ---------------- cross attention (mode='cat') ----------------
        if has_qadd:
            qc_in = t1 + r["qadd"][...]
        else:
            qc_in = t1
        qc_p = (jnp.dot(qc_in, r["w_ca_qc"][...], preferred_element_type=jnp.float32)
                + r["b_ca_qc"][...])
        qp_p = (jnp.dot(pca, r["w_ca_qp"][...], preferred_element_type=jnp.float32)
                + r["b_ca_qp"][...])

        # k_content and v share the input x -> one packed matmul [Wkc | Wv].
        kcv = (jnp.dot(x, r["w_ca_kv"][...], preferred_element_type=jnp.float32)
               + r["b_ca_kv"][...])                                    # (N*L, 2C)
        kc_p = kcv[:, :C]
        if has_kadd:
            # (x + kadd) @ Wkc == x @ Wkc + kadd @ Wkc
            kc_p = kc_p + jnp.dot(r["kadd"][...], r["w_ca_kc"][...],
                                  preferred_element_type=jnp.float32)
        v_p = kcv[:, C:]
        kp_p = (jnp.dot(xpe, r["w_ca_kp"][...], preferred_element_type=jnp.float32)
                + r["b_ca_kp"][...])                                   # (L, C)
        kp3 = jnp.broadcast_to(kp_p, (N, L, C))

        ca = _mha_core([qc_p.reshape(N, nobj, C), qp_p.reshape(N, nobj, C)],
                       [kc_p.reshape(N, L, C), kp3],
                       v_p.reshape(N, L, C),
                       r["w_ca_o"][...], ca_scale) + r["b_ca_o"][...]
        t2 = _layernorm(t1 + ca, ln_g[1:2, :], ln_b[1:2, :])

        # ---------------- FFN: Linear -> PReLU -> Linear ----------------
        h1 = jnp.dot(t2, r["w1"][...], preferred_element_type=jnp.float32) + r["b1"][...]
        a = r["prelu_a"][...]                                          # (1, 1) broadcasts
        h1 = jnp.where(h1 >= 0, h1, a * h1)
        f = jnp.dot(h1, r["w2"][...], preferred_element_type=jnp.float32) + r["b2"][...]

        out_ref[...] = _layernorm(t2 + f, ln_g[2:3, :], ln_b[2:3, :])

    return kernel


# ---------------------------------------------------------------------------
# wrapper: host-side weight packing + single pallas_call (no grid)
# ---------------------------------------------------------------------------
def dab_detr_decoder_layer(con_query, x, x_pe, pos_query_sa, pos_query_ca, params,
                           q_c_add=None, k_c_add=None):
    N, nobj, C = con_query.shape
    L = x.shape[1]
    has_qadd = q_c_add is not None
    has_kadd = k_c_add is not None

    w_sa, b_sa = params["w_sa"], params["b_sa"]     # (6, C, C), (6, 1, C)
    w_ca, b_ca = params["w_ca"], params["b_ca"]

    ops = {
        # sequence tensors: batch folded into rows (free host-side reshapes)
        "cq":  con_query.reshape(N * nobj, C),
        "x":   x.reshape(N * L, C),
        "xpe": x_pe.reshape(L, C),
        "psa": pos_query_sa.reshape(N * nobj, C),
        "pca": pos_query_ca.reshape(N * nobj, C),
        # self-attn: content input sees [Wqc|Wkc|Wv], pos input sees [Wqp|Wkp|0]
        "w_sa_c":  jnp.concatenate([w_sa[0], w_sa[2], w_sa[4]], axis=1),
        "w_sa_p":  jnp.concatenate([w_sa[1], w_sa[3],
                                    jnp.zeros((C, C), jnp.float32)], axis=1),
        "b_sa_qkv": jnp.concatenate([b_sa[0] + b_sa[1], b_sa[2] + b_sa[3], b_sa[4]], axis=1),
        "w_sa_o": w_sa[5], "b_sa_o": b_sa[5],
        # cross-attn
        "w_ca_qc": w_ca[0], "b_ca_qc": b_ca[0],
        "w_ca_qp": w_ca[1], "b_ca_qp": b_ca[1],
        "w_ca_kv": jnp.concatenate([w_ca[2], w_ca[4]], axis=1),   # [Wkc | Wv] applied to x
        "b_ca_kv": jnp.concatenate([b_ca[2], b_ca[4]], axis=1),
        "w_ca_kp": w_ca[3], "b_ca_kp": b_ca[3],
        "w_ca_o": w_ca[5], "b_ca_o": b_ca[5],
        # layernorms / ffn
        "ln_g": params["ln_g"].reshape(3, C),
        "ln_b": params["ln_b"].reshape(3, C),
        "w1": params["w1"], "b1": params["b1"],
        "w2": params["w2"], "b2": params["b2"],
        "prelu_a": params["prelu_a"],
    }
    if has_qadd:
        ops["qadd"] = q_c_add.reshape(N * nobj, C)
    if has_kadd:
        ops["kadd"] = k_c_add.reshape(N * L, C)
        ops["w_ca_kc"] = w_ca[2]

    names = list(ops.keys())
    operands = [ops[n] for n in names]
    kernel = _make_kernel(N, nobj, L, C, has_qadd, has_kadd, names)

    # No grid: the whole (tiny) problem runs in one invocation with every operand
    # resident in VMEM (a few hundred KiB — far under any generation's limit).
    out = pl.pallas_call(
        kernel,
        out_shape=jax.ShapeDtypeStruct((N * nobj, C), jnp.float32),
    )(*operands)
    return out.reshape(N, nobj, C)


# ---------------------------------------------------------------------------
# deterministic parameter init (synthetic; no checkpoint load)
# ---------------------------------------------------------------------------
def init_params(key):
    ks = jax.random.split(key, 8)
    nrm = lambda k, shape, s: s * jax.random.normal(k, shape, dtype=jnp.float32)
    return dict(
        w_sa=nrm(ks[0], (6, EMBED_DIM, EMBED_DIM), 0.1),
        b_sa=nrm(ks[1], (6, 1, EMBED_DIM), 0.02),
        w_ca=nrm(ks[2], (6, EMBED_DIM, EMBED_DIM), 0.1),
        b_ca=nrm(ks[3], (6, 1, EMBED_DIM), 0.02),
        ln_g=jnp.ones((3, 1, EMBED_DIM), jnp.float32),
        ln_b=jnp.zeros((3, 1, EMBED_DIM), jnp.float32),
        w1=nrm(ks[4], (EMBED_DIM, FFN_HIDDEN), 0.1),
        b1=nrm(ks[5], (1, FFN_HIDDEN), 0.02),
        w2=nrm(ks[6], (FFN_HIDDEN, EMBED_DIM), 0.1),
        b2=nrm(ks[7], (1, EMBED_DIM), 0.02),
        prelu_a=jnp.full((1, 1), 0.25, jnp.float32),   # nn.PReLU default init
    )


# ---------------------------------------------------------------------------
# pure-JAX reference (same math) for the correctness check
# ---------------------------------------------------------------------------
def reference(con_query, x, x_pe, pos_query_sa, pos_query_ca, params, q_c_add, k_c_add):
    N = con_query.shape[0]
    xpe = jnp.broadcast_to(x_pe, x.shape)

    def mha(qc, qp, kc, kp, v, w, b, mode):
        pr = lambda t, i: t @ w[i] + b[i]
        qc_p, qp_p, kc_p, kp_p, v_p = pr(qc, 0), pr(qp, 1), pr(kc, 2), pr(kp, 3), pr(v, 4)
        heads = lambda t: t.reshape(t.shape[0], t.shape[1], N_HEADS, HEAD_DIM)
        if mode == 'add':
            q, k = heads(qc_p + qp_p), heads(kc_p + kp_p)
            scale = 1.0 / np.sqrt(HEAD_DIM)
        else:
            q = jnp.concatenate([heads(qc_p), heads(qp_p)], axis=-1)
            k = jnp.concatenate([heads(kc_p), heads(kp_p)], axis=-1)
            scale = 1.0 / np.sqrt(2 * HEAD_DIM)
        vh = heads(v_p)
        s = jnp.einsum('nqhd,nkhd->nhqk', q, k) * scale
        p = jax.nn.softmax(s, axis=-1)
        o = jnp.einsum('nhqk,nkhd->nqhd', p, vh).reshape(N, q.shape[1], EMBED_DIM)
        return o @ w[5] + b[5]

    ln = lambda t, g, b: (t - t.mean(-1, keepdims=True)) * jax.lax.rsqrt(
        ((t - t.mean(-1, keepdims=True)) ** 2).mean(-1, keepdims=True) + LN_EPS) * g + b

    sa = mha(con_query, pos_query_sa, con_query, pos_query_sa, con_query,
             params["w_sa"], params["b_sa"], 'add')
    t1 = ln(con_query + sa, params["ln_g"][0], params["ln_b"][0])
    ca = mha(t1 + q_c_add, pos_query_ca, x + k_c_add, xpe, x,
             params["w_ca"], params["b_ca"], 'cat')
    t2 = ln(t1 + ca, params["ln_g"][1], params["ln_b"][1])
    h = t2 @ params["w1"] + params["b1"]
    h = jnp.where(h >= 0, h, params["prelu_a"][0, 0] * h)
    f = h @ params["w2"] + params["b2"]
    return ln(t2 + f, params["ln_g"][2], params["ln_b"][2])


if __name__ == "__main__":
    N, n_objs, L, C = 2, 8, 16, EMBED_DIM

    key = jax.random.PRNGKey(0)
    k_in = jax.random.split(key, 8)
    con_query = jax.random.normal(k_in[0], (N, n_objs, C), jnp.float32)
    x = jax.random.normal(k_in[1], (N, L, C), jnp.float32)
    x_pe = jax.random.normal(k_in[2], (1, L, C), jnp.float32)
    pos_query_sa = jax.random.normal(k_in[3], (N, n_objs, C), jnp.float32)
    pos_query_ca = jax.random.normal(k_in[4], (N, n_objs, C), jnp.float32)
    q_c_add = jax.random.normal(k_in[5], (N, n_objs, C), jnp.float32)
    k_c_add = jax.random.normal(k_in[6], (N, L, C), jnp.float32)
    params = init_params(k_in[7])

    # path with the optional cross-attention offsets
    out = dab_detr_decoder_layer(con_query, x, x_pe, pos_query_sa, pos_query_ca,
                                 params, q_c_add, k_c_add)
    out = jax.block_until_ready(out)
    ref = reference(con_query, x, x_pe, pos_query_sa, pos_query_ca, params,
                    q_c_add, k_c_add)
    assert out.shape == (N, n_objs, C)
    np.testing.assert_allclose(np.asarray(out), np.asarray(ref), rtol=1e-4, atol=1e-4)

    # default path: q_c_add = k_c_add = 0 -> offsets are skipped entirely in-kernel
    out0 = dab_detr_decoder_layer(con_query, x, x_pe, pos_query_sa, pos_query_ca, params)
    out0 = jax.block_until_ready(out0)
    ref0 = reference(con_query, x, x_pe, pos_query_sa, pos_query_ca, params,
                     jnp.zeros_like(con_query), jnp.zeros_like(x))
    np.testing.assert_allclose(np.asarray(out0), np.asarray(ref0), rtol=1e-4, atol=1e-4)

    print("KERNEL_OK")
</pallas_src>

<mosaic_0001>
module attributes {stable_mosaic.version = 11 : i64} {
  func.func @kernel(%arg0: memref<16x32xf32, #tpu.memory_space<vmem>>, %arg1: memref<32x32xf32, #tpu.memory_space<vmem>>, %arg2: memref<16x32xf32, #tpu.memory_space<vmem>>, %arg3: memref<16x32xf32, #tpu.memory_space<vmem>>, %arg4: memref<16x32xf32, #tpu.memory_space<vmem>>, %arg5: memref<32x96xf32, #tpu.memory_space<vmem>>, %arg6: memref<32x96xf32, #tpu.memory_space<vmem>>, %arg7: memref<1x96xf32, #tpu.memory_space<vmem>>, %arg8: memref<32x32xf32, #tpu.memory_space<vmem>>, %arg9: memref<1x32xf32, #tpu.memory_space<vmem>>, %arg10: memref<32x32xf32, #tpu.memory_space<vmem>>, %arg11: memref<1x32xf32, #tpu.memory_space<vmem>>, %arg12: memref<32x32xf32, #tpu.memory_space<vmem>>, %arg13: memref<1x32xf32, #tpu.memory_space<vmem>>, %arg14: memref<32x64xf32, #tpu.memory_space<vmem>>, %arg15: memref<1x64xf32, #tpu.memory_space<vmem>>, %arg16: memref<32x32xf32, #tpu.memory_space<vmem>>, %arg17: memref<1x32xf32, #tpu.memory_space<vmem>>, %arg18: memref<32x32xf32, #tpu.memory_space<vmem>>, %arg19: memref<1x32xf32, #tpu.memory_space<vmem>>, %arg20: memref<3x32xf32, #tpu.memory_space<vmem>>, %arg21: memref<3x32xf32, #tpu.memory_space<vmem>>, %arg22: memref<32x128xf32, #tpu.memory_space<vmem>>, %arg23: memref<1x128xf32, #tpu.memory_space<vmem>>, %arg24: memref<128x32xf32, #tpu.memory_space<vmem>>, %arg25: memref<1x32xf32, #tpu.memory_space<vmem>>, %arg26: memref<1x1xf32, #tpu.memory_space<vmem>>, %arg27: memref<16x32xf32, #tpu.memory_space<vmem>>, %arg28: memref<32x32xf32, #tpu.memory_space<vmem>>, %arg29: memref<32x32xf32, #tpu.memory_space<vmem>>, %arg30: memref<16x32xf32, #tpu.memory_space<vmem>>) attributes {dimension_semantics = [], scalar_prefetch = 0 : i64, scratch_operands = 0 : i64, tpu.core_type = #tpu.core_type<tc>} {
    %c0 = arith.constant 0 : index
    %c0_0 = arith.constant 0 : index
    %0 = vector.load %arg0[%c0, %c0_0] : memref<16x32xf32, #tpu.memory_space<vmem>>, vector<16x32xf32>
    %c0_1 = arith.constant 0 : index
    %c0_2 = arith.constant 0 : index
    %1 = vector.load %arg1[%c0_1, %c0_2] : memref<32x32xf32, #tpu.memory_space<vmem>>, vector<32x32xf32>
    %c0_3 = arith.constant 0 : index
    %c0_4 = arith.constant 0 : index
    %2 = vector.load %arg2[%c0_3, %c0_4] : memref<16x32xf32, #tpu.memory_space<vmem>>, vector<16x32xf32>
    %c0_5 = arith.constant 0 : index
    %c0_6 = arith.constant 0 : index
    %3 = vector.load %arg3[%c0_5, %c0_6] : memref<16x32xf32, #tpu.memory_space<vmem>>, vector<16x32xf32>
    %c0_7 = arith.constant 0 : index
    %c0_8 = arith.constant 0 : index
    %4 = vector.load %arg4[%c0_7, %c0_8] : memref<16x32xf32, #tpu.memory_space<vmem>>, vector<16x32xf32>
    %c0_9 = arith.constant 0 : index
    %c0_10 = arith.constant 0 : index
    %5 = vector.load %arg20[%c0_9, %c0_10] : memref<3x32xf32, #tpu.memory_space<vmem>>, vector<3x32xf32>
    %c0_11 = arith.constant 0 : index
    %c0_12 = arith.constant 0 : index
    %6 = vector.load %arg21[%c0_11, %c0_12] : memref<3x32xf32, #tpu.memory_space<vmem>>, vector<3x32xf32>
    %c0_13 = arith.constant 0 : index
    %c0_14 = arith.constant 0 : index
    %7 = vector.load %arg5[%c0_13, %c0_14] : memref<32x96xf32, #tpu.memory_space<vmem>>, vector<32x96xf32>
    %cst = arith.constant dense<0.000000e+00> : vector<16x96xf32>
    %8 = tpu.matmul %0, %7, %cst {dimension_numbers = #tpu.dot_dimension_numbers<[1], [0], [0], [1], [0, 0, 1, 1], [], []>} : vector<16x32xf32>, vector<32x96xf32>, vector<16x96xf32> -> vector<16x96xf32>
    %c0_15 = arith.constant 0 : index
    %c0_16 = arith.constant 0 : index
    %9 = vector.load %arg6[%c0_15, %c0_16] : memref<32x96xf32, #tpu.memory_space<vmem>>, vector<32x96xf32>
    %cst_17 = arith.constant dense<0.000000e+00> : vector<16x96xf32>
    %10 = tpu.matmul %3, %9, %cst_17 {dimension_numbers = #tpu.dot_dimension_numbers<[1], [0], [0], [1], [0, 0, 1, 1], [], []>} : vector<16x32xf32>, vector<32x96xf32>, vector<16x96xf32> -> vector<16x96xf32>
    %11 = arith.addf %8, %10 : vector<16x96xf32>
    %c0_18 = arith.constant 0 : index
    %c0_19 = arith.constant 0 : index
    %12 = vector.load %arg7[%c0_18, %c0_19] : memref<1x96xf32, #tpu.memory_space<vmem>>, vector<1x96xf32>
    %13 = vector.broadcast %12 : vector<1x96xf32> to vector<16x96xf32>
    %14 = arith.addf %11, %13 : vector<16x96xf32>
    %15 = vector.extract_strided_slice %14 {offsets = [0, 0], sizes = [16, 32], strides = [1, 1]} : vector<16x96xf32> to vector<16x32xf32>
    %16 = vector.shape_cast %15 : vector<16x32xf32> to vector<2x8x32xf32>
    %17 = vector.extract_strided_slice %14 {offsets = [0, 32], sizes = [16, 32], strides = [1, 1]} : vector<16x96xf32> to vector<16x32xf32>
    %18 = vector.shape_cast %17 : vector<16x32xf32> to vector<2x8x32xf32>
    %19 = vector.extract_strided_slice %14 {offsets = [0, 64], sizes = [16, 32], strides = [1, 1]} : vector<16x96xf32> to vector<16x32xf32>
    %20 = vector.shape_cast %19 : vector<16x32xf32> to vector<2x8x32xf32>
    %c0_20 = arith.constant 0 : index
    %c0_21 = arith.constant 0 : index
    %21 = vector.load %arg8[%c0_20, %c0_21] : memref<32x32xf32, #tpu.memory_space<vmem>>, vector<32x32xf32>
    %cst_22 = arith.constant 0.000000e+00 : f32
    %22 = vector.broadcast %cst_22 : f32 to vector<16x32xf32>
    %23 = vector.extract_strided_slice %16 {offsets = [0, 0, 0], sizes = [2, 8, 8], strides = [1, 1, 1]} : vector<2x8x32xf32> to vector<2x8x8xf32>
    %24 = vector.extract_strided_slice %18 {offsets = [0, 0, 0], sizes = [2, 8, 8], strides = [1, 1, 1]} : vector<2x8x32xf32> to vector<2x8x8xf32>
    "tpu.trace_start"() <{level = 10 : i32, message = "bqd,bkd->bqk"}> : () -> ()
    %cst_23 = arith.constant dense<0.000000e+00> : vector<2x8x8xf32>
    %25 = tpu.matmul %23, %24, %cst_23 {dimension_numbers = #tpu.dot_dimension_numbers<[2], [2], [1], [1], [0, 0, 0, 1, 1, 1], [0], [0]>} : vector<2x8x8xf32>, vector<2x8x8xf32>, vector<2x8x8xf32> -> vector<2x8x8xf32>
    "tpu.trace_stop"() : () -> ()
    %cst_24 = arith.constant 0.353553385 : f32
    %26 = vector.broadcast %cst_24 : f32 to vector<2x8x8xf32>
    %27 = arith.mulf %25, %26 : vector<2x8x8xf32>
    %cst_25 = arith.constant dense<0xFF800000> : vector<2x8xf32>
    %28 = vector.multi_reduction <maximumf>, %27, %cst_25 [2] : vector<2x8x8xf32> to vector<2x8xf32>
    %29 = vector.shape_cast %28 : vector<2x8xf32> to vector<2x8x1xf32>
    %30 = vector.broadcast %29 : vector<2x8x1xf32> to vector<2x8x8xf32>
    %31 = arith.subf %27, %30 : vector<2x8x8xf32>
    %32 = math.exp %31 : vector<2x8x8xf32>
    %cst_26 = arith.constant dense<0.000000e+00> : vector<2x8xf32>
    %33 = vector.multi_reduction <add>, %32, %cst_26 [2] : vector<2x8x8xf32> to vector<2x8xf32>
    %34 = vector.shape_cast %33 : vector<2x8xf32> to vector<2x8x1xf32>
    %35 = vector.broadcast %34 : vector<2x8x1xf32> to vector<2x8x8xf32>
    %36 = arith.divf %32, %35 : vector<2x8x8xf32>
    %37 = vector.extract_strided_slice %20 {offsets = [0, 0, 0], sizes = [2, 8, 8], strides = [1, 1, 1]} : vector<2x8x32xf32> to vector<2x8x8xf32>
    "tpu.trace_start"() <{level = 10 : i32, message = "bqk,bkd->bqd"}> : () -> ()
    %cst_27 = arith.constant dense<0.000000e+00> : vector<2x8x8xf32>
    %38 = tpu.matmul %36, %37, %cst_27 {dimension_numbers = #tpu.dot_dimension_numbers<[2], [1], [1], [2], [0, 0, 0, 1, 1, 2], [0], [0]>} : vector<2x8x8xf32>, vector<2x8x8xf32>, vector<2x8x8xf32> -> vector<2x8x8xf32>
    "tpu.trace_stop"() : () -> ()
    %39 = vector.shape_cast %38 : vector<2x8x8xf32> to vector<16x8xf32>
    %40 = vector.extract_strided_slice %21 {offsets = [0, 0], sizes = [8, 32], strides = [1, 1]} : vector<32x32xf32> to vector<8x32xf32>
    %cst_28 = arith.constant dense<0.000000e+00> : vector<16x32xf32>
    %41 = tpu.matmul %39, %40, %cst_28 {dimension_numbers = #tpu.dot_dimension_numbers<[1], [0], [0], [1], [0, 0, 1, 1], [], []>} : vector<16x8xf32>, vector<8x32xf32>, vector<16x32xf32> -> vector<16x32xf32>
    %42 = arith.addf %22, %41 : vector<16x32xf32>
    %43 = vector.extract_strided_slice %16 {offsets = [0, 0, 8], sizes = [2, 8, 8], strides = [1, 1, 1]} : vector<2x8x32xf32> to vector<2x8x8xf32>
    %44 = vector.extract_strided_slice %18 {offsets = [0, 0, 8], sizes = [2, 8, 8], strides = [1, 1, 1]} : vector<2x8x32xf32> to vector<2x8x8xf32>
    "tpu.trace_start"() <{level = 10 : i32, message = "bqd,bkd->bqk"}> : () -> ()
    %cst_29 = arith.constant dense<0.000000e+00> : vector<2x8x8xf32>
    %45 = tpu.matmul %43, %44, %cst_29 {dimension_numbers = #tpu.dot_dimension_numbers<[2], [2], [1], [1], [0, 0, 0, 1, 1, 1], [0], [0]>} : vector<2x8x8xf32>, vector<2x8x8xf32>, vector<2x8x8xf32> -> vector<2x8x8xf32>
    "tpu.trace_stop"() : () -> ()
    %cst_30 = arith.constant 0.353553385 : f32
    %46 = vector.broadcast %cst_30 : f32 to vector<2x8x8xf32>
    %47 = arith.mulf %45, %46 : vector<2x8x8xf32>
    %cst_31 = arith.constant dense<0xFF800000> : vector<2x8xf32>
    %48 = vector.multi_reduction <maximumf>, %47, %cst_31 [2] : vector<2x8x8xf32> to vector<2x8xf32>
    %49 = vector.shape_cast %48 : vector<2x8xf32> to vector<2x8x1xf32>
    %50 = vector.broadcast %49 : vector<2x8x1xf32> to vector<2x8x8xf32>
    %51 = arith.subf %47, %50 : vector<2x8x8xf32>
    %52 = math.exp %51 : vector<2x8x8xf32>
    %cst_32 = arith.constant dense<0.000000e+00> : vector<2x8xf32>
    %53 = vector.multi_reduction <add>, %52, %cst_32 [2] : vector<2x8x8xf32> to vector<2x8xf32>
    %54 = vector.shape_cast %53 : vector<2x8xf32> to vector<2x8x1xf32>
    %55 = vector.broadcast %54 : vector<2x8x1xf32> to vector<2x8x8xf32>
    %56 = arith.divf %52, %55 : vector<2x8x8xf32>
    %57 = vector.extract_strided_slice %20 {offsets = [0, 0, 8], sizes = [2, 8, 8], strides = [1, 1, 1]} : vector<2x8x32xf32> to vector<2x8x8xf32>
    "tpu.trace_start"() <{level = 10 : i32, message = "bqk,bkd->bqd"}> : () -> ()
    %cst_33 = arith.constant dense<0.000000e+00> : vector<2x8x8xf32>
    %58 = tpu.matmul %56, %57, %cst_33 {dimension_numbers = #tpu.dot_dimension_numbers<[2], [1], [1], [2], [0, 0, 0, 1, 1, 2], [0], [0]>} : vector<2x8x8xf32>, vector<2x8x8xf32>, vector<2x8x8xf32> -> vector<2x8x8xf32>
    "tpu.trace_stop"() : () -> ()
    %59 = vector.shape_cast %58 : vector<2x8x8xf32> to vector<16x8xf32>
    %60 = vector.extract_strided_slice %21 {offsets = [8, 0], sizes = [8, 32], strides = [1, 1]} : vector<32x32xf32> to vector<8x32xf32>
    %cst_34 = arith.constant dense<0.000000e+00> : vector<16x32xf32>
    %61 = tpu.matmul %59, %60, %cst_34 {dimension_numbers = #tpu.dot_dimension_numbers<[1], [0], [0], [1], [0, 0, 1, 1], [], []>} : vector<16x8xf32>, vector<8x32xf32>, vector<16x32xf32> -> vector<16x32xf32>
    %62 = arith.addf %42, %61 : vector<16x32xf32>
    %63 = vector.extract_strided_slice %16 {offsets = [0, 0, 16], sizes = [2, 8, 8], strides = [1, 1, 1]} : vector<2x8x32xf32> to vector<2x8x8xf32>
    %64 = vector.extract_strided_slice %18 {offsets = [0, 0, 16], sizes = [2, 8, 8], strides = [1, 1, 1]} : vector<2x8x32xf32> to vector<2x8x8xf32>
    "tpu.trace_start"() <{level = 10 : i32, message = "bqd,bkd->bqk"}> : () -> ()
    %cst_35 = arith.constant dense<0.000000e+00> : vector<2x8x8xf32>
    %65 = tpu.matmul %63, %64, %cst_35 {dimension_numbers = #tpu.dot_dimension_numbers<[2], [2], [1], [1], [0, 0, 0, 1, 1, 1], [0], [0]>} : vector<2x8x8xf32>, vector<2x8x8xf32>, vector<2x8x8xf32> -> vector<2x8x8xf32>
    "tpu.trace_stop"() : () -> ()
    %cst_36 = arith.constant 0.353553385 : f32
    %66 = vector.broadcast %cst_36 : f32 to vector<2x8x8xf32>
    %67 = arith.mulf %65, %66 : vector<2x8x8xf32>
    %cst_37 = arith.constant dense<0xFF800000> : vector<2x8xf32>
    %68 = vector.multi_reduction <maximumf>, %67, %cst_37 [2] : vector<2x8x8xf32> to vector<2x8xf32>
    %69 = vector.shape_cast %68 : vector<2x8xf32> to vector<2x8x1xf32>
    %70 = vector.broadcast %69 : vector<2x8x1xf32> to vector<2x8x8xf32>
    %71 = arith.subf %67, %70 : vector<2x8x8xf32>
    %72 = math.exp %71 : vector<2x8x8xf32>
    %cst_38 = arith.constant dense<0.000000e+00> : vector<2x8xf32>
    %73 = vector.multi_reduction <add>, %72, %cst_38 [2] : vector<2x8x8xf32> to vector<2x8xf32>
    %74 = vector.shape_cast %73 : vector<2x8xf32> to vector<2x8x1xf32>
    %75 = vector.broadcast %74 : vector<2x8x1xf32> to vector<2x8x8xf32>
    %76 = arith.divf %72, %75 : vector<2x8x8xf32>
    %77 = vector.extract_strided_slice %20 {offsets = [0, 0, 16], sizes = [2, 8, 8], strides = [1, 1, 1]} : vector<2x8x32xf32> to vector<2x8x8xf32>
    "tpu.trace_start"() <{level = 10 : i32, message = "bqk,bkd->bqd"}> : () -> ()
    %cst_39 = arith.constant dense<0.000000e+00> : vector<2x8x8xf32>
    %78 = tpu.matmul %76, %77, %cst_39 {dimension_numbers = #tpu.dot_dimension_numbers<[2], [1], [1], [2], [0, 0, 0, 1, 1, 2], [0], [0]>} : vector<2x8x8xf32>, vector<2x8x8xf32>, vector<2x8x8xf32> -> vector<2x8x8xf32>
    "tpu.trace_stop"() : () -> ()
    %79 = vector.shape_cast %78 : vector<2x8x8xf32> to vector<16x8xf32>
    %80 = vector.extract_strided_slice %21 {offsets = [16, 0], sizes = [8, 32], strides = [1, 1]} : vector<32x32xf32> to vector<8x32xf32>
    %cst_40 = arith.constant dense<0.000000e+00> : vector<16x32xf32>
    %81 = tpu.matmul %79, %80, %cst_40 {dimension_numbers = #tpu.dot_dimension_numbers<[1], [0], [0], [1], [0, 0, 1, 1], [], []>} : vector<16x8xf32>, vector<8x32xf32>, vector<16x32xf32> -> vector<16x32xf32>
    %82 = arith.addf %62, %81 : vector<16x32xf32>
    %83 = vector.extract_strided_slice %16 {offsets = [0, 0, 24], sizes = [2, 8, 8], strides = [1, 1, 1]} : vector<2x8x32xf32> to vector<2x8x8xf32>
    %84 = vector.extract_strided_slice %18 {offsets = [0, 0, 24], sizes = [2, 8, 8], strides = [1, 1, 1]} : vector<2x8x32xf32> to vector<2x8x8xf32>
    "tpu.trace_start"() <{level = 10 : i32, message = "bqd,bkd->bqk"}> : () -> ()
    %cst_41 = arith.constant dense<0.000000e+00> : vector<2x8x8xf32>
    %85 = tpu.matmul %83, %84, %cst_41 {dimension_numbers = #tpu.dot_dimension_numbers<[2], [2], [1], [1], [0, 0, 0, 1, 1, 1], [0], [0]>} : vector<2x8x8xf32>, vector<2x8x8xf32>, vector<2x8x8xf32> -> vector<2x8x8xf32>
    "tpu.trace_stop"() : () -> ()
    %cst_42 = arith.constant 0.353553385 : f32
    %86 = vector.broadcast %cst_42 : f32 to vector<2x8x8xf32>
    %87 = arith.mulf %85, %86 : vector<2x8x8xf32>
    %cst_43 = arith.constant dense<0xFF800000> : vector<2x8xf32>
    %88 = vector.multi_reduction <maximumf>, %87, %cst_43 [2] : vector<2x8x8xf32> to vector<2x8xf32>
    %89 = vector.shape_cast %88 : vector<2x8xf32> to vector<2x8x1xf32>
    %90 = vector.broadcast %89 : vector<2x8x1xf32> to vector<2x8x8xf32>
    %91 = arith.subf %87, %90 : vector<2x8x8xf32>
    %92 = math.exp %91 : vector<2x8x8xf32>
    %cst_44 = arith.constant dense<0.000000e+00> : vector<2x8xf32>
    %93 = vector.multi_reduction <add>, %92, %cst_44 [2] : vector<2x8x8xf32> to vector<2x8xf32>
    %94 = vector.shape_cast %93 : vector<2x8xf32> to vector<2x8x1xf32>
    %95 = vector.broadcast %94 : vector<2x8x1xf32> to vector<2x8x8xf32>
    %96 = arith.divf %92, %95 : vector<2x8x8xf32>
    %97 = vector.extract_strided_slice %20 {offsets = [0, 0, 24], sizes = [2, 8, 8], strides = [1, 1, 1]} : vector<2x8x32xf32> to vector<2x8x8xf32>
    "tpu.trace_start"() <{level = 10 : i32, message = "bqk,bkd->bqd"}> : () -> ()
    %cst_45 = arith.constant dense<0.000000e+00> : vector<2x8x8xf32>
    %98 = tpu.matmul %96, %97, %cst_45 {dimension_numbers = #tpu.dot_dimension_numbers<[2], [1], [1], [2], [0, 0, 0, 1, 1, 2], [0], [0]>} : vector<2x8x8xf32>, vector<2x8x8xf32>, vector<2x8x8xf32> -> vector<2x8x8xf32>
    "tpu.trace_stop"() : () -> ()
    %99 = vector.shape_cast %98 : vector<2x8x8xf32> to vector<16x8xf32>
    %100 = vector.extract_strided_slice %21 {offsets = [24, 0], sizes = [8, 32], strides = [1, 1]} : vector<32x32xf32> to vector<8x32xf32>
    %cst_46 = arith.constant dense<0.000000e+00> : vector<16x32xf32>
    %101 = tpu.matmul %99, %100, %cst_46 {dimension_numbers = #tpu.dot_dimension_numbers<[1], [0], [0], [1], [0, 0, 1, 1], [], []>} : vector<16x8xf32>, vector<8x32xf32>, vector<16x32xf32> -> vector<16x32xf32>
    %102 = arith.addf %82, %101 : vector<16x32xf32>
    %c0_47 = arith.constant 0 : index
    %c0_48 = arith.constant 0 : index
    %103 = vector.load %arg9[%c0_47, %c0_48] : memref<1x32xf32, #tpu.memory_space<vmem>>, vector<1x32xf32>
    %104 = vector.broadcast %103 : vector<1x32xf32> to vector<16x32xf32>
    %105 = arith.addf %102, %104 : vector<16x32xf32>
    %106 = arith.addf %0, %105 : vector<16x32xf32>
    %107 = vector.extract_strided_slice %5 {offsets = [0, 0], sizes = [1, 32], strides = [1, 1]} : vector<3x32xf32> to vector<1x32xf32>
    %108 = vector.extract_strided_slice %6 {offsets = [0, 0], sizes = [1, 32], strides = [1, 1]} : vector<3x32xf32> to vector<1x32xf32>
    %cst_49 = arith.constant dense<0.000000e+00> : vector<16xf32>
    %109 = vector.multi_reduction <add>, %106, %cst_49 [1] : vector<16x32xf32> to vector<16xf32>
    %110 = vector.shape_cast %109 : vector<16xf32> to vector<16x1xf32>
    %cst_50 = arith.constant 3.200000e+01 : f32
    %111 = vector.broadcast %cst_50 : f32 to vector<16x1xf32>
    %112 = arith.divf %110, %111 : vector<16x1xf32>
    %113 = vector.broadcast %112 : vector<16x1xf32> to vector<16x32xf32>
    %114 = arith.subf %106, %113 : vector<16x32xf32>
    %115 = arith.mulf %114, %114 : vector<16x32xf32>
    %cst_51 = arith.constant dense<0.000000e+00> : vector<16xf32>
    %116 = vector.multi_reduction <add>, %115, %cst_51 [1] : vector<16x32xf32> to vector<16xf32>
    %117 = vector.shape_cast %116 : vector<16xf32> to vector<16x1xf32>
    %cst_52 = arith.constant 3.200000e+01 : f32
    %118 = vector.broadcast %cst_52 : f32 to vector<16x1xf32>
    %119 = arith.divf %117, %118 : vector<16x1xf32>
    %cst_53 = arith.constant 9.99999974E-6 : f32
    %120 = vector.broadcast %cst_53 : f32 to vector<16x1xf32>
    %121 = arith.addf %119, %120 : vector<16x1xf32>
    %122 = math.rsqrt %121 : vector<16x1xf32>
    %123 = vector.broadcast %122 : vector<16x1xf32> to vector<16x32xf32>
    %124 = arith.mulf %114, %123 : vector<16x32xf32>
    %125 = vector.broadcast %107 : vector<1x32xf32> to vector<16x32xf32>
    %126 = arith.mulf %124, %125 : vector<16x32xf32>
    %127 = vector.broadcast %108 : vector<1x32xf32> to vector<16x32xf32>
    %128 = arith.addf %126, %127 : vector<16x32xf32>
    %c0_54 = arith.constant 0 : index
    %c0_55 = arith.constant 0 : index
    %129 = vector.load %arg27[%c0_54, %c0_55] : memref<16x32xf32, #tpu.memory_space<vmem>>, vector<16x32xf32>
    %130 = arith.addf %128, %129 : vector<16x32xf32>
    %c0_56 = arith.constant 0 : index
    %c0_57 = arith.constant 0 : index
    %131 = vector.load %arg10[%c0_56, %c0_57] : memref<32x32xf32, #tpu.memory_space<vmem>>, vector<32x32xf32>
    %cst_58 = arith.constant dense<0.000000e+00> : vector<16x32xf32>
    %132 = tpu.matmul %130, %131, %cst_58 {dimension_numbers = #tpu.dot_dimension_numbers<[1], [0], [0], [1], [0, 0, 1, 1], [], []>} : vector<16x32xf32>, vector<32x32xf32>, vector<16x32xf32> -> vector<16x32xf32>
    %c0_59 = arith.constant 0 : index
    %c0_60 = arith.constant 0 : index
    %133 = vector.load %arg11[%c0_59, %c0_60] : memref<1x32xf32, #tpu.memory_space<vmem>>, vector<1x32xf32>
    %134 = vector.broadcast %133 : vector<1x32xf32> to vector<16x32xf32>
    %135 = arith.addf %132, %134 : vector<16x32xf32>
    %c0_61 = arith.constant 0 : index
    %c0_62 = arith.constant 0 : index
    %136 = vector.load %arg12[%c0_61, %c0_62] : memref<32x32xf32, #tpu.memory_space<vmem>>, vector<32x32xf32>
    %cst_63 = arith.constant dense<0.000000e+00> : vector<16x32xf32>
    %137 = tpu.matmul %4, %136, %cst_63 {dimension_numbers = #tpu.dot_dimension_numbers<[1], [0], [0], [1], [0, 0, 1, 1], [], []>} : vector<16x32xf32>, vector<32x32xf32>, vector<16x32xf32> -> vector<16x32xf32>
    %c0_64 = arith.constant 0 : index
    %c0_65 = arith.constant 0 : index
    %138 = vector.load %arg13[%c0_64, %c0_65] : memref<1x32xf32, #tpu.memory_space<vmem>>, vector<1x32xf32>
    %139 = vector.broadcast %138 : vector<1x32xf32> to vector<16x32xf32>
    %140 = arith.addf %137, %139 : vector<16x32xf32>
    %c0_66 = arith.constant 0 : index
    %c0_67 = arith.constant 0 : index
    %141 = vector.load %arg14[%c0_66, %c0_67] : memref<32x64xf32, #tpu.memory_space<vmem>>, vector<32x64xf32>
    %cst_68 = arith.constant dense<0.000000e+00> : vector<32x64xf32>
    %142 = tpu.matmul %1, %141, %cst_68 {dimension_numbers = #tpu.dot_dimension_numbers<[1], [0], [0], [1], [0, 0, 1, 1], [], []>} : vector<32x32xf32>, vector<32x64xf32>, vector<32x64xf32> -> vector<32x64xf32>
    %c0_69 = arith.constant 0 : index
    %c0_70 = arith.constant 0 : index
    %143 = vector.load %arg15[%c0_69, %c0_70] : memref<1x64xf32, #tpu.memory_space<vmem>>, vector<1x64xf32>
    %144 = vector.broadcast %143 : vector<1x64xf32> to vector<32x64xf32>
    %145 = arith.addf %142, %144 : vector<32x64xf32>
    %146 = vector.extract_strided_slice %145 {offsets = [0, 0], sizes = [32, 32], strides = [1, 1]} : vector<32x64xf32> to vector<32x32xf32>
    %c0_71 = arith.constant 0 : index
    %c0_72 = arith.constant 0 : index
    %147 = vector.load %arg28[%c0_71, %c0_72] : memref<32x32xf32, #tpu.memory_space<vmem>>, vector<32x32xf32>
    %c0_73 = arith.constant 0 : index
    %c0_74 = arith.constant 0 : index
    %148 = vector.load %arg29[%c0_73, %c0_74] : memref<32x32xf32, #tpu.memory_space<vmem>>, vector<32x32xf32>
    %cst_75 = arith.constant dense<0.000000e+00> : vector<32x32xf32>
    %149 = tpu.matmul %147, %148, %cst_75 {dimension_numbers = #tpu.dot_dimension_numbers<[1], [0], [0], [1], [0, 0, 1, 1], [], []>} : vector<32x32xf32>, vector<32x32xf32>, vector<32x32xf32> -> vector<32x32xf32>
    %150 = arith.addf %146, %149 : vector<32x32xf32>
    %151 = vector.extract_strided_slice %145 {offsets = [0, 32], sizes = [32, 32], strides = [1, 1]} : vector<32x64xf32> to vector<32x32xf32>
    %c0_76 = arith.constant 0 : index
    %c0_77 = arith.constant 0 : index
    %152 = vector.load %arg16[%c0_76, %c0_77] : memref<32x32xf32, #tpu.memory_space<vmem>>, vector<32x32xf32>
    %cst_78 = arith.constant dense<0.000000e+00> : vector<16x32xf32>
    %153 = tpu.matmul %2, %152, %cst_78 {dimension_numbers = #tpu.dot_dimension_numbers<[1], [0], [0], [1], [0, 0, 1, 1], [], []>} : vector<16x32xf32>, vector<32x32xf32>, vector<16x32xf32> -> vector<16x32xf32>
    %c0_79 = arith.constant 0 : index
    %c0_80 = arith.constant 0 : index
    %154 = vector.load %arg17[%c0_79, %c0_80] : memref<1x32xf32, #tpu.memory_space<vmem>>, vector<1x32xf32>
    %155 = vector.broadcast %154 : vector<1x32xf32> to vector<16x32xf32>
    %156 = arith.addf %153, %155 : vector<16x32xf32>
    %157 = vector.shape_cast %156 : vector<16x32xf32> to vector<1x16x32xf32>
    %158 = vector.broadcast %157 : vector<1x16x32xf32> to vector<2x16x32xf32>
    %159 = vector.shape_cast %135 : vector<16x32xf32> to vector<2x8x32xf32>
    %160 = vector.shape_cast %140 : vector<16x32xf32> to vector<2x8x32xf32>
    %161 = vector.shape_cast %150 : vector<32x32xf32> to vector<2x16x32xf32>
    %162 = vector.shape_cast %151 : vector<32x32xf32> to vector<2x16x32xf32>
    %c0_81 = arith.constant 0 : index
    %c0_82 = arith.constant 0 : index
    %163 = vector.load %arg18[%c0_81, %c0_82] : memref<32x32xf32, #tpu.memory_space<vmem>>, vector<32x32xf32>
    %cst_83 = arith.constant 0.000000e+00 : f32
    %164 = vector.broadcast %cst_83 : f32 to vector<16x32xf32>
    %165 = vector.extract_strided_slice %159 {offsets = [0, 0, 0], sizes = [2, 8, 8], strides = [1, 1, 1]} : vector<2x8x32xf32> to vector<2x8x8xf32>
    %166 = vector.extract_strided_slice %161 {offsets = [0, 0, 0], sizes = [2, 16, 8], strides = [1, 1, 1]} : vector<2x16x32xf32> to vector<2x16x8xf32>
    "tpu.trace_start"() <{level = 10 : i32, message = "bqd,bkd->bqk"}> : () -> ()
    %cst_84 = arith.constant dense<0.000000e+00> : vector<2x8x16xf32>
    %167 = tpu.matmul %165, %166, %cst_84 {dimension_numbers = #tpu.dot_dimension_numbers<[2], [2], [1], [1], [0, 0, 0, 1, 1, 1], [0], [0]>} : vector<2x8x8xf32>, vector<2x16x8xf32>, vector<2x8x16xf32> -> vector<2x8x16xf32>
    "tpu.trace_stop"() : () -> ()
    %168 = vector.extract_strided_slice %160 {offsets = [0, 0, 0], sizes = [2, 8, 8], strides = [1, 1, 1]} : vector<2x8x32xf32> to vector<2x8x8xf32>
    %169 = vector.extract_strided_slice %158 {offsets = [0, 0, 0], sizes = [2, 16, 8], strides = [1, 1, 1]} : vector<2x16x32xf32> to vector<2x16x8xf32>
    "tpu.trace_start"() <{level = 10 : i32, message = "bqd,bkd->bqk"}> : () -> ()
    %cst_85 = arith.constant dense<0.000000e+00> : vector<2x8x16xf32>
    %170 = tpu.matmul %168, %169, %cst_85 {dimension_numbers = #tpu.dot_dimension_numbers<[2], [2], [1], [1], [0, 0, 0, 1, 1, 1], [0], [0]>} : vector<2x8x8xf32>, vector<2x16x8xf32>, vector<2x8x16xf32> -> vector<2x8x16xf32>
    "tpu.trace_stop"() : () -> ()
    %171 = arith.addf %167, %170 : vector<2x8x16xf32>
    %cst_86 = arith.constant 2.500000e-01 : f32
    %172 = vector.broadcast %cst_86 : f32 to vector<2x8x16xf32>
    %173 = arith.mulf %171, %172 : vector<2x8x16xf32>
    %cst_87 = arith.constant dense<0xFF800000> : vector<2x8xf32>
    %174 = vector.multi_reduction <maximumf>, %173, %cst_87 [2] : vector<2x8x16xf32> to vector<2x8xf32>
    %175 = vector.shape_cast %174 : vector<2x8xf32> to vector<2x8x1xf32>
    %176 = vector.broadcast %175 : vector<2x8x1xf32> to vector<2x8x16xf32>
    %177 = arith.subf %173, %176 : vector<2x8x16xf32>
    %178 = math.exp %177 : vector<2x8x16xf32>
    %cst_88 = arith.constant dense<0.000000e+00> : vector<2x8xf32>
    %179 = vector.multi_reduction <add>, %178, %cst_88 [2] : vector<2x8x16xf32> to vector<2x8xf32>
    %180 = vector.shape_cast %179 : vector<2x8xf32> to vector<2x8x1xf32>
    %181 = vector.broadcast %180 : vector<2x8x1xf32> to vector<2x8x16xf32>
    %182 = arith.divf %178, %181 : vector<2x8x16xf32>
    %183 = vector.extract_strided_slice %162 {offsets = [0, 0, 0], sizes = [2, 16, 8], strides = [1, 1, 1]} : vector<2x16x32xf32> to vector<2x16x8xf32>
    "tpu.trace_start"() <{level = 10 : i32, message = "bqk,bkd->bqd"}> : () -> ()
    %cst_89 = arith.constant dense<0.000000e+00> : vector<2x8x8xf32>
    %184 = tpu.matmul %182, %183, %cst_89 {dimension_numbers = #tpu.dot_dimension_numbers<[2], [1], [1], [2], [0, 0, 0, 1, 1, 2], [0], [0]>} : vector<2x8x16xf32>, vector<2x16x8xf32>, vector<2x8x8xf32> -> vector<2x8x8xf32>
    "tpu.trace_stop"() : () -> ()
    %185 = vector.shape_cast %184 : vector<2x8x8xf32> to vector<16x8xf32>
    %186 = vector.extract_strided_slice %163 {offsets = [0, 0], sizes = [8, 32], strides = [1, 1]} : vector<32x32xf32> to vector<8x32xf32>
    %cst_90 = arith.constant dense<0.000000e+00> : vector<16x32xf32>
    %187 = tpu.matmul %185, %186, %cst_90 {dimension_numbers = #tpu.dot_dimension_numbers<[1], [0], [0], [1], [0, 0, 1, 1], [], []>} : vector<16x8xf32>, vector<8x32xf32>, vector<16x32xf32> -> vector<16x32xf32>
    %188 = arith.addf %164, %187 : vector<16x32xf32>
    %189 = vector.extract_strided_slice %159 {offsets = [0, 0, 8], sizes = [2, 8, 8], strides = [1, 1, 1]} : vector<2x8x32xf32> to vector<2x8x8xf32>
    %190 = vector.extract_strided_slice %161 {offsets = [0, 0, 8], sizes = [2, 16, 8], strides = [1, 1, 1]} : vector<2x16x32xf32> to vector<2x16x8xf32>
    "tpu.trace_start"() <{level = 10 : i32, message = "bqd,bkd->bqk"}> : () -> ()
    %cst_91 = arith.constant dense<0.000000e+00> : vector<2x8x16xf32>
    %191 = tpu.matmul %189, %190, %cst_91 {dimension_numbers = #tpu.dot_dimension_numbers<[2], [2], [1], [1], [0, 0, 0, 1, 1, 1], [0], [0]>} : vector<2x8x8xf32>, vector<2x16x8xf32>, vector<2x8x16xf32> -> vector<2x8x16xf32>
    "tpu.trace_stop"() : () -> ()
    %192 = vector.extract_strided_slice %160 {offsets = [0, 0, 8], sizes = [2, 8, 8], strides = [1, 1, 1]} : vector<2x8x32xf32> to vector<2x8x8xf32>
    %193 = vector.extract_strided_slice %158 {offsets = [0, 0, 8], sizes = [2, 16, 8], strides = [1, 1, 1]} : vector<2x16x32xf32> to vector<2x16x8xf32>
    "tpu.trace_start"() <{level = 10 : i32, message = "bqd,bkd->bqk"}> : () -> ()
    %cst_92 = arith.constant dense<0.000000e+00> : vector<2x8x16xf32>
    %194 = tpu.matmul %192, %193, %cst_92 {dimension_numbers = #tpu.dot_dimension_numbers<[2], [2], [1], [1], [0, 0, 0, 1, 1, 1], [0], [0]>} : vector<2x8x8xf32>, vector<2x16x8xf32>, vector<2x8x16xf32> -> vector<2x8x16xf32>
    "tpu.trace_stop"() : () -> ()
    %195 = arith.addf %191, %194 : vector<2x8x16xf32>
    %cst_93 = arith.constant 2.500000e-01 : f32
    %196 = vector.broadcast %cst_93 : f32 to vector<2x8x16xf32>
    %197 = arith.mulf %195, %196 : vector<2x8x16xf32>
    %cst_94 = arith.constant dense<0xFF800000> : vector<2x8xf32>
    %198 = vector.multi_reduction <maximumf>, %197, %cst_94 [2] : vector<2x8x16xf32> to vector<2x8xf32>
    %199 = vector.shape_cast %198 : vector<2x8xf32> to vector<2x8x1xf32>
    %200 = vector.broadcast %199 : vector<2x8x1xf32> to vector<2x8x16xf32>
    %201 = arith.subf %197, %200 : vector<2x8x16xf32>
    %202 = math.exp %201 : vector<2x8x16xf32>
    %cst_95 = arith.constant dense<0.000000e+00> : vector<2x8xf32>
    %203 = vector.multi_reduction <add>, %202, %cst_95 [2] : vector<2x8x16xf32> to vector<2x8xf32>
    %204 = vector.shape_cast %203 : vector<2x8xf32> to vector<2x8x1xf32>
    %205 = vector.broadcast %204 : vector<2x8x1xf32> to vector<2x8x16xf32>
    %206 = arith.divf %202, %205 : vector<2x8x16xf32>
    %207 = vector.extract_strided_slice %162 {offsets = [0, 0, 8], sizes = [2, 16, 8], strides = [1, 1, 1]} : vector<2x16x32xf32> to vector<2x16x8xf32>
    "tpu.trace_start"() <{level = 10 : i32, message = "bqk,bkd->bqd"}> : () -> ()
    %cst_96 = arith.constant dense<0.000000e+00> : vector<2x8x8xf32>
    %208 = tpu.matmul %206, %207, %cst_96 {dimension_numbers = #tpu.dot_dimension_numbers<[2], [1], [1], [2], [0, 0, 0, 1, 1, 2], [0], [0]>} : vector<2x8x16xf32>, vector<2x16x8xf32>, vector<2x8x8xf32> -> vector<2x8x8xf32>
    "tpu.trace_stop"() : () -> ()
    %209 = vector.shape_cast %208 : vector<2x8x8xf32> to vector<16x8xf32>
    %210 = vector.extract_strided_slice %163 {offsets = [8, 0], sizes = [8, 32], strides = [1, 1]} : vector<32x32xf32> to vector<8x32xf32>
    %cst_97 = arith.constant dense<0.000000e+00> : vector<16x32xf32>
    %211 = tpu.matmul %209, %210, %cst_97 {dimension_numbers = #tpu.dot_dimension_numbers<[1], [0], [0], [1], [0, 0, 1, 1], [], []>} : vector<16x8xf32>, vector<8x32xf32>, vector<16x32xf32> -> vector<16x32xf32>
    %212 = arith.addf %188, %211 : vector<16x32xf32>
    %213 = vector.extract_strided_slice %159 {offsets = [0, 0, 16], sizes = [2, 8, 8], strides = [1, 1, 1]} : vector<2x8x32xf32> to vector<2x8x8xf32>
    %214 = vector.extract_strided_slice %161 {offsets = [0, 0, 16], sizes = [2, 16, 8], strides = [1, 1, 1]} : vector<2x16x32xf32> to vector<2x16x8xf32>
    "tpu.trace_start"() <{level = 10 : i32, message = "bqd,bkd->bqk"}> : () -> ()
    %cst_98 = arith.constant dense<0.000000e+00> : vector<2x8x16xf32>
    %215 = tpu.matmul %213, %214, %cst_98 {dimension_numbers = #tpu.dot_dimension_numbers<[2], [2], [1], [1], [0, 0, 0, 1, 1, 1], [0], [0]>} : vector<2x8x8xf32>, vector<2x16x8xf32>, vector<2x8x16xf32> -> vector<2x8x16xf32>
    "tpu.trace_stop"() : () -> ()
    %216 = vector.extract_strided_slice %160 {offsets = [0, 0, 16], sizes = [2, 8, 8], strides = [1, 1, 1]} : vector<2x8x32xf32> to vector<2x8x8xf32>
    %217 = vector.extract_strided_slice %158 {offsets = [0, 0, 16], sizes = [2, 16, 8], strides = [1, 1, 1]} : vector<2x16x32xf32> to vector<2x16x8xf32>
    "tpu.trace_start"() <{level = 10 : i32, message = "bqd,bkd->bqk"}> : () -> ()
    %cst_99 = arith.constant dense<0.000000e+00> : vector<2x8x16xf32>
    %218 = tpu.matmul %216, %217, %cst_99 {dimension_numbers = #tpu.dot_dimension_numbers<[2], [2], [1], [1], [0, 0, 0, 1, 1, 1], [0], [0]>} : vector<2x8x8xf32>, vector<2x16x8xf32>, vector<2x8x16xf32> -> vector<2x8x16xf32>
    "tpu.trace_stop"() : () -> ()
    %219 = arith.addf %215, %218 : vector<2x8x16xf32>
    %cst_100 = arith.constant 2.500000e-01 : f32
    %220 = vector.broadcast %cst_100 : f32 to vector<2x8x16xf32>
    %221 = arith.mulf %219, %220 : vector<2x8x16xf32>
    %cst_101 = arith.constant dense<0xFF800000> : vector<2x8xf32>
    %222 = vector.multi_reduction <maximumf>, %221, %cst_101 [2] : vector<2x8x16xf32> to vector<2x8xf32>
    %223 = vector.shape_cast %222 : vector<2x8xf32> to vector<2x8x1xf32>
    %224 = vector.broadcast %223 : vector<2x8x1xf32> to vector<2x8x16xf32>
    %225 = arith.subf %221, %224 : vector<2x8x16xf32>
    %226 = math.exp %225 : vector<2x8x16xf32>
    %cst_102 = arith.constant dense<0.000000e+00> : vector<2x8xf32>
    %227 = vector.multi_reduction <add>, %226, %cst_102 [2] : vector<2x8x16xf32> to vector<2x8xf32>
    %228 = vector.shape_cast %227 : vector<2x8xf32> to vector<2x8x1xf32>
    %229 = vector.broadcast %228 : vector<2x8x1xf32> to vector<2x8x16xf32>
    %230 = arith.divf %226, %229 : vector<2x8x16xf32>
    %231 = vector.extract_strided_slice %162 {offsets = [0, 0, 16], sizes = [2, 16, 8], strides = [1, 1, 1]} : vector<2x16x32xf32> to vector<2x16x8xf32>
    "tpu.trace_start"() <{level = 10 : i32, message = "bqk,bkd->bqd"}> : () -> ()
    %cst_103 = arith.constant dense<0.000000e+00> : vector<2x8x8xf32>
    %232 = tpu.matmul %230, %231, %cst_103 {dimension_numbers = #tpu.dot_dimension_numbers<[2], [1], [1], [2], [0, 0, 0, 1, 1, 2], [0], [0]>} : vector<2x8x16xf32>, vector<2x16x8xf32>, vector<2x8x8xf32> -> vector<2x8x8xf32>
    "tpu.trace_stop"() : () -> ()
    %233 = vector.shape_cast %232 : vector<2x8x8xf32> to vector<16x8xf32>
    %234 = vector.extract_strided_slice %163 {offsets = [16, 0], sizes = [8, 32], strides = [1, 1]} : vector<32x32xf32> to vector<8x32xf32>
    %cst_104 = arith.constant dense<0.000000e+00> : vector<16x32xf32>
    %235 = tpu.matmul %233, %234, %cst_104 {dimension_numbers = #tpu.dot_dimension_numbers<[1], [0], [0], [1], [0, 0, 1, 1], [], []>} : vector<16x8xf32>, vector<8x32xf32>, vector<16x32xf32> -> vector<16x32xf32>
    %236 = arith.addf %212, %235 : vector<16x32xf32>
    %237 = vector.extract_strided_slice %159 {offsets = [0, 0, 24], sizes = [2, 8, 8], strides = [1, 1, 1]} : vector<2x8x32xf32> to vector<2x8x8xf32>
    %238 = vector.extract_strided_slice %161 {offsets = [0, 0, 24], sizes = [2, 16, 8], strides = [1, 1, 1]} : vector<2x16x32xf32> to vector<2x16x8xf32>
    "tpu.trace_start"() <{level = 10 : i32, message = "bqd,bkd->bqk"}> : () -> ()
    %cst_105 = arith.constant dense<0.000000e+00> : vector<2x8x16xf32>
    %239 = tpu.matmul %237, %238, %cst_105 {dimension_numbers = #tpu.dot_dimension_numbers<[2], [2], [1], [1], [0, 0, 0, 1, 1, 1], [0], [0]>} : vector<2x8x8xf32>, vector<2x16x8xf32>, vector<2x8x16xf32> -> vector<2x8x16xf32>
    "tpu.trace_stop"() : () -> ()
    %240 = vector.extract_strided_slice %160 {offsets = [0, 0, 24], sizes = [2, 8, 8], strides = [1, 1, 1]} : vector<2x8x32xf32> to vector<2x8x8xf32>
    %241 = vector.extract_strided_slice %158 {offsets = [0, 0, 24], sizes = [2, 16, 8], strides = [1, 1, 1]} : vector<2x16x32xf32> to vector<2x16x8xf32>
    "tpu.trace_start"() <{level = 10 : i32, message = "bqd,bkd->bqk"}> : () -> ()
    %cst_106 = arith.constant dense<0.000000e+00> : vector<2x8x16xf32>
    %242 = tpu.matmul %240, %241, %cst_106 {dimension_numbers = #tpu.dot_dimension_numbers<[2], [2], [1], [1], [0, 0, 0, 1, 1, 1], [0], [0]>} : vector<2x8x8xf32>, vector<2x16x8xf32>, vector<2x8x16xf32> -> vector<2x8x16xf32>
    "tpu.trace_stop"() : () -> ()
    %243 = arith.addf %239, %242 : vector<2x8x16xf32>
    %cst_107 = arith.constant 2.500000e-01 : f32
    %244 = vector.broadcast %cst_107 : f32 to vector<2x8x16xf32>
    %245 = arith.mulf %243, %244 : vector<2x8x16xf32>
    %cst_108 = arith.constant dense<0xFF800000> : vector<2x8xf32>
    %246 = vector.multi_reduction <maximumf>, %245, %cst_108 [2] : vector<2x8x16xf32> to vector<2x8xf32>
    %247 = vector.shape_cast %246 : vector<2x8xf32> to vector<2x8x1xf32>
    %248 = vector.broadcast %247 : vector<2x8x1xf32> to vector<2x8x16xf32>
    %249 = arith.subf %245, %248 : vector<2x8x16xf32>
    %250 = math.exp %249 : vector<2x8x16xf32>
    %cst_109 = arith.constant dense<0.000000e+00> : vector<2x8xf32>
    %251 = vector.multi_reduction <add>, %250, %cst_109 [2] : vector<2x8x16xf32> to vector<2x8xf32>
    %252 = vector.shape_cast %251 : vector<2x8xf32> to vector<2x8x1xf32>
    %253 = vector.broadcast %252 : vector<2x8x1xf32> to vector<2x8x16xf32>
    %254 = arith.divf %250, %253 : vector<2x8x16xf32>
    %255 = vector.extract_strided_slice %162 {offsets = [0, 0, 24], sizes = [2, 16, 8], strides = [1, 1, 1]} : vector<2x16x32xf32> to vector<2x16x8xf32>
    "tpu.trace_start"() <{level = 10 : i32, message = "bqk,bkd->bqd"}> : () -> ()
    %cst_110 = arith.constant dense<0.000000e+00> : vector<2x8x8xf32>
    %256 = tpu.matmul %254, %255, %cst_110 {dimension_numbers = #tpu.dot_dimension_numbers<[2], [1], [1], [2], [0, 0, 0, 1, 1, 2], [0], [0]>} : vector<2x8x16xf32>, vector<2x16x8xf32>, vector<2x8x8xf32> -> vector<2x8x8xf32>
    "tpu.trace_stop"() : () -> ()
    %257 = vector.shape_cast %256 : vector<2x8x8xf32> to vector<16x8xf32>
    %258 = vector.extract_strided_slice %163 {offsets = [24, 0], sizes = [8, 32], strides = [1, 1]} : vector<32x32xf32> to vector<8x32xf32>
    %cst_111 = arith.constant dense<0.000000e+00> : vector<16x32xf32>
    %259 = tpu.matmul %257, %258, %cst_111 {dimension_numbers = #tpu.dot_dimension_numbers<[1], [0], [0], [1], [0, 0, 1, 1], [], []>} : vector<16x8xf32>, vector<8x32xf32>, vector<16x32xf32> -> vector<16x32xf32>
    %260 = arith.addf %236, %259 : vector<16x32xf32>
    %c0_112 = arith.constant 0 : index
    %c0_113 = arith.constant 0 : index
    %261 = vector.load %arg19[%c0_112, %c0_113] : memref<1x32xf32, #tpu.memory_space<vmem>>, vector<1x32xf32>
    %262 = vector.broadcast %261 : vector<1x32xf32> to vector<16x32xf32>
    %263 = arith.addf %260, %262 : vector<16x32xf32>
    %264 = arith.addf %128, %263 : vector<16x32xf32>
    %265 = vector.extract_strided_slice %5 {offsets = [1, 0], sizes = [1, 32], strides = [1, 1]} : vector<3x32xf32> to vector<1x32xf32>
    %266 = vector.extract_strided_slice %6 {offsets = [1, 0], sizes = [1, 32], strides = [1, 1]} : vector<3x32xf32> to vector<1x32xf32>
    %cst_114 = arith.constant dense<0.000000e+00> : vector<16xf32>
    %267 = vector.multi_reduction <add>, %264, %cst_114 [1] : vector<16x32xf32> to vector<16xf32>
    %268 = vector.shape_cast %267 : vector<16xf32> to vector<16x1xf32>
    %cst_115 = arith.constant 3.200000e+01 : f32
    %269 = vector.broadcast %cst_115 : f32 to vector<16x1xf32>
    %270 = arith.divf %268, %269 : vector<16x1xf32>
    %271 = vector.broadcast %270 : vector<16x1xf32> to vector<16x32xf32>
    %272 = arith.subf %264, %271 : vector<16x32xf32>
    %273 = arith.mulf %272, %272 : vector<16x32xf32>
    %cst_116 = arith.constant dense<0.000000e+00> : vector<16xf32>
    %274 = vector.multi_reduction <add>, %273, %cst_116 [1] : vector<16x32xf32> to vector<16xf32>
    %275 = vector.shape_cast %274 : vector<16xf32> to vector<16x1xf32>
    %cst_117 = arith.constant 3.200000e+01 : f32
    %276 = vector.broadcast %cst_117 : f32 to vector<16x1xf32>
    %277 = arith.divf %275, %276 : vector<16x1xf32>
    %cst_118 = arith.constant 9.99999974E-6 : f32
    %278 = vector.broadcast %cst_118 : f32 to vector<16x1xf32>
    %279 = arith.addf %277, %278 : vector<16x1xf32>
    %280 = math.rsqrt %279 : vector<16x1xf32>
    %281 = vector.broadcast %280 : vector<16x1xf32> to vector<16x32xf32>
    %282 = arith.mulf %272, %281 : vector<16x32xf32>
    %283 = vector.broadcast %265 : vector<1x32xf32> to vector<16x32xf32>
    %284 = arith.mulf %282, %283 : vector<16x32xf32>
    %285 = vector.broadcast %266 : vector<1x32xf32> to vector<16x32xf32>
    %286 = arith.addf %284, %285 : vector<16x32xf32>
    %c0_119 = arith.constant 0 : index
    %c0_120 = arith.constant 0 : index
    %287 = vector.load %arg22[%c0_119, %c0_120] : memref<32x128xf32, #tpu.memory_space<vmem>>, vector<32x128xf32>
    %cst_121 = arith.constant dense<0.000000e+00> : vector<16x128xf32>
    %288 = tpu.matmul %286, %287, %cst_121 {dimension_numbers = #tpu.dot_dimension_numbers<[1], [0], [0], [1], [0, 0, 1, 1], [], []>} : vector<16x32xf32>, vector<32x128xf32>, vector<16x128xf32> -> vector<16x128xf32>
    %c0_122 = arith.constant 0 : index
    %c0_123 = arith.constant 0 : index
    %289 = vector.load %arg23[%c0_122, %c0_123] : memref<1x128xf32, #tpu.memory_space<vmem>>, vector<1x128xf32>
    %290 = vector.broadcast %289 : vector<1x128xf32> to vector<16x128xf32>
    %291 = arith.addf %288, %290 : vector<16x128xf32>
    %c0_124 = arith.constant 0 : index
    %c0_125 = arith.constant 0 : index
    %292 = vector.load %arg26[%c0_124, %c0_125] : memref<1x1xf32, #tpu.memory_space<vmem>>, vector<1x1xf32>
    %cst_126 = arith.constant 0.000000e+00 : f32
    %293 = vector.broadcast %cst_126 : f32 to vector<16x128xf32>
    %294 = arith.cmpf oge, %291, %293 : vector<16x128xf32>
    %295 = vector.broadcast %292 : vector<1x1xf32> to vector<16x128xf32>
    %296 = arith.mulf %295, %291 : vector<16x128xf32>
    %297 = arith.select %294, %291, %296 : vector<16x128xi1>, vector<16x128xf32>
    %c0_127 = arith.constant 0 : index
    %c0_128 = arith.constant 0 : index
    %298 = vector.load %arg24[%c0_127, %c0_128] : memref<128x32xf32, #tpu.memory_space<vmem>>, vector<128x32xf32>
    %cst_129 = arith.constant dense<0.000000e+00> : vector<16x32xf32>
    %299 = tpu.matmul %297, %298, %cst_129 {dimension_numbers = #tpu.dot_dimension_numbers<[1], [0], [0], [1], [0, 0, 1, 1], [], []>} : vector<16x128xf32>, vector<128x32xf32>, vector<16x32xf32> -> vector<16x32xf32>
    %c0_130 = arith.constant 0 : index
    %c0_131 = arith.constant 0 : index
    %300 = vector.load %arg25[%c0_130, %c0_131] : memref<1x32xf32, #tpu.memory_space<vmem>>, vector<1x32xf32>
    %301 = vector.broadcast %300 : vector<1x32xf32> to vector<16x32xf32>
    %302 = arith.addf %299, %301 : vector<16x32xf32>
    %303 = arith.addf %286, %302 : vector<16x32xf32>
    %304 = vector.extract_strided_slice %5 {offsets = [2, 0], sizes = [1, 32], strides = [1, 1]} : vector<3x32xf32> to vector<1x32xf32>
    %305 = vector.extract_strided_slice %6 {offsets = [2, 0], sizes = [1, 32], strides = [1, 1]} : vector<3x32xf32> to vector<1x32xf32>
    %cst_132 = arith.constant dense<0.000000e+00> : vector<16xf32>
    %306 = vector.multi_reduction <add>, %303, %cst_132 [1] : vector<16x32xf32> to vector<16xf32>
    %307 = vector.shape_cast %306 : vector<16xf32> to vector<16x1xf32>
    %cst_133 = arith.constant 3.200000e+01 : f32
    %308 = vector.broadcast %cst_133 : f32 to vector<16x1xf32>
    %309 = arith.divf %307, %308 : vector<16x1xf32>
    %310 = vector.broadcast %309 : vector<16x1xf32> to vector<16x32xf32>
    %311 = arith.subf %303, %310 : vector<16x32xf32>
    %312 = arith.mulf %311, %311 : vector<16x32xf32>
    %cst_134 = arith.constant dense<0.000000e+00> : vector<16xf32>
    %313 = vector.multi_reduction <add>, %312, %cst_134 [1] : vector<16x32xf32> to vector<16xf32>
    %314 = vector.shape_cast %313 : vector<16xf32> to vector<16x1xf32>
    %cst_135 = arith.constant 3.200000e+01 : f32
    %315 = vector.broadcast %cst_135 : f32 to vector<16x1xf32>
    %316 = arith.divf %314, %315 : vector<16x1xf32>
    %cst_136 = arith.constant 9.99999974E-6 : f32
    %317 = vector.broadcast %cst_136 : f32 to vector<16x1xf32>
    %318 = arith.addf %316, %317 : vector<16x1xf32>
    %319 = math.rsqrt %318 : vector<16x1xf32>
    %320 = vector.broadcast %319 : vector<16x1xf32> to vector<16x32xf32>
    %321 = arith.mulf %311, %320 : vector<16x32xf32>
    %322 = vector.broadcast %304 : vector<1x32xf32> to vector<16x32xf32>
    %323 = arith.mulf %321, %322 : vector<16x32xf32>
    %324 = vector.broadcast %305 : vector<1x32xf32> to vector<16x32xf32>
    %325 = arith.addf %323, %324 : vector<16x32xf32>
    %c0_137 = arith.constant 0 : index
    %c0_138 = arith.constant 0 : index
    %326 = vector.load %arg30[%c0_137, %c0_138] : memref<16x32xf32, #tpu.memory_space<vmem>>, vector<16x32xf32>
    tpu.vector_store %arg30[%c0_137, %c0_138], %325 {strides = array<i32>} : memref<16x32xf32, #tpu.memory_space<vmem>>, vector<16x32xf32>,
    return
  }
}

</mosaic_0001>

<bundles_post_ra>
// kernel: tpu_custom_call.1
= control target key start
LH: loop header
LB: loop body
LE: loop exit
PB: predicated region body
PF: predicated region fallthrough
CT: control target
= control target key end

     0   :  { %s6633_s6 = smov 1   ;;  %s6634_s10 = smov 2   ;;  %s7517_s0 = inlined_call_operand.smem [shape: u32[31], index: -1, kind: input, shape index: {}] }
   0x1   :  { %s6703_s5 = sld [smem:[%s7517_s0]]   ;;  %s6635_s14 = smov 3  }
   0x2   :  { %s6708_s9 = sld [smem:[%s7517_s0 + %s6633_s6]]   ;;  %s6636_s18 = smov 4  }
   0x3   :  { %s6713_s13 = sld [smem:[%s7517_s0 + %s6634_s10]]   ;;  %s6637_s22 = smov 5  }
   0x4   :  { %s6718_s17 = sld [smem:[%s7517_s0 + %s6635_s14]]   ;;  %s6638_s26 = smov 6  }
   0x5   :  { %s6723_s21 = sld [smem:[%s7517_s0 + %s6636_s18]]   ;;  %s6639_s30 = smov 7  }
   0x6   :  { %s6728_s25 = sld [smem:[%s7517_s0 + %s6637_s22]]   ;;  %s6640_s4 = smov 8  }
   0x7   :  { %s6733_s29 = sld [smem:[%s7517_s0 + %s6638_s26]]   ;;  %s6641_s10 = smov 9  }
   0x8   :  { %7525 = sst [smem:[#allocation37_spill]] %s6708_s9  ;;  %s6642_s15 = smov 10  }
   0x9   :  { %s6738_s3 = sld [smem:[%s7517_s0 + %s6639_s30]]   ;;  %s6643_s20 = smov 11  }
   0xa   :  { %s6743_s8 = sld [smem:[%s7517_s0 + %s6640_s4]]   ;;  %s6644_s26 = smov 12  }
   0xb   :  { %s6748_s14 = sld [smem:[%s7517_s0 + %s6641_s10]]   ;;  %s6645_s1 = smov 13  }
   0xc   :  { %7526 = sst [smem:[#allocation38_spill]] %s6728_s25  ;;  %s6646_s7 = smov 14  }
   0xd   :  { %s6753_s19 = sld [smem:[%s7517_s0 + %s6642_s15]]   ;;  %s6647_s15 = smov 15  }
   0xe   :  { %s6758_s24 = sld [smem:[%s7517_s0 + %s6643_s20]]   ;;  %s6648_s22 = smov 16  }
   0xf   :  { %7527 = sst [smem:[#allocation39_spill]] %s6738_s3  ;;  %s6649_s28 = smov 17  }
  0x10   :  { %7528 = sst [smem:[#allocation40_spill]] %s6743_s8  ;;  %s6659_s16 = smov 27  }
  0x11   :  { %7529 = sst [smem:[#allocation41_spill]] %s6748_s14  ;;  %s6660_s23 = smov 28  }
  0x12   :  { %s6763_s30 = sld [smem:[%s7517_s0 + %s6644_s26]]   ;;  %s6662_s10 = smov 30  }
  0x13   :  { %7530 = sst [smem:[#allocation42_spill]] %s6753_s19 }
  0x14   :  { %7531 = sst [smem:[#allocation43_spill]] %s6758_s24 }
  0x15   :  { %s6768_s6 = sld [smem:[%s7517_s0 + %s6645_s1]]   ;;  %s6661_s1 = smov 29  }
  0x16   :  { %s6773_s12 = sld [smem:[%s7517_s0 + %s6646_s7]]   ;;  %s6650_s7 = smov 18  }
  0x17   :  { %s6778_s20 = sld [smem:[%s7517_s0 + %s6647_s15]]   ;;  %s6651_s15 = smov 19  }
  0x18   :  { %s6783_s27 = sld [smem:[%s7517_s0 + %s6648_s22]]   ;;  %s6652_s22 = smov 20  }
  0x19   :  { %s6788_s4 = sld [smem:[%s7517_s0 + %s6649_s28]]   ;;  %s6653_s28 = smov 21  }
  0x1a   :  { %s6793_s24 = sld [smem:[%s7517_s0 + %s6650_s7]]   ;;  %s6654_s7 = smov 22  }
  0x1b   :  { %7532 = sst [smem:[#allocation44_spill]] %s6768_s6 }
  0x1c   :  { %s6798_s6 = sld [smem:[%s7517_s0 + %s6651_s15]]   ;;  %s6655_s15 = smov 23  }
  0x1d   :  { %7533 = sst [smem:[#allocation45_spill]] %s6778_s20 }
  0x1e   :  { %s6803_s20 = sld [smem:[%s7517_s0 + %s6652_s22]]   ;;  %s6656_s22 = smov 24  }
  0x1f   :  { %s6808_s9 = sld [smem:[%s7517_s0 + %s6653_s28]]   ;;  %s6657_s28 = smov 25  }
  0x20   :  { %s6813_s19 = sld [smem:[%s7517_s0 + %s6654_s7]]   ;;  %s6658_s7 = smov 26  }
  0x21   :  { %s6818_s14 = sld [smem:[%s7517_s0 + %s6655_s15]]  }
  0x22   :  { %s5407_s8 = sld [smem:[%s7517_s0 + %s6658_s7]]  }
  0x23   :  { %s6836_s3 = sld [smem:[%s7517_s0 + %s6659_s16]]  }
  0x24   :  { %7534 = sst [smem:[#allocation46_spill]] %s6803_s20 }
  0x25   :  { %7535 = sst [smem:[#allocation47_spill]] %s6808_s9 }
  0x26   :  { %s6823_s20 = sld [smem:[%s7517_s0 + %s6656_s22]]  }
  0x27   :  { %s6828_s9 = sld [smem:[%s7517_s0 + %s6657_s28]]  }
  0x28   :  { %s6851_s25 = sld [smem:[%s7517_s0 + %s6662_s10]]   ;;  %v66_v0 = vstv %s5407_s8 }
  0x29   :  { %67 = vst [vmem:[#allocation2] sm:$0x1] %v66_v0 }
  0x2c   :  { %7536 = sst [smem:[#allocation48_spill]] %s6823_s20 }
  0x2d   :  { %7537 = sst [smem:[#allocation49_spill]] %s6828_s9 }
  0x2e   :  { %s6841_s20 = sld [smem:[%s7517_s0 + %s6660_s23]]  }
  0x2f   :  { %s6846_s9 = sld [smem:[%s7517_s0 + %s6661_s1]]  }
  0x30   :  { %68 = vsyncpa [#allocation4], 0 }
  0x31   :  { %69 = vsyncpa [#allocation7], 0 }
  0x32   :  { %70 = vsyncpa [#allocation10], 0 }
  0x33   :  { %71 = vsyncpa [#allocation13], 0 }
  0x34   :  { %72 = vsyncpa [#allocation16], 0 }
  0x35   :  { %73 = vsyncpa [#allocation19], 0 }
  0x36   :  { %74 = vsyncpa [#allocation22], 0 }
  0x37   :  { %75 = vsyncpa [#allocation25], 0 }
  0x38   :  { %76 = vsyncpa [#allocation5], 0  ;;  %s6663_s16 = smov [#allocation6]   ;;  %s6664_s18 = smov [#allocation9]  }
  0x39   :  { %s96_s15 = sshll.u32 %s6663_s16, 4  ;;  %s120_s23 = sshll.u32 %s6664_s18, 4  ;;  %s97_s15 = int_to_ptr.vmem [resolvable:$true] %s96_s15  ;;  %s121_s23 = int_to_ptr.vmem [resolvable:$true] %s120_s23 }
  0x3a   :  { %s6303_s22 = scalar_lea.vmem %s97_s15, 256  ;;  %p6308_p1 = scmp.lt.s32.totalorder %s97_s15, %s97_s15 }
  0x3b   :  { %p6304_p0 = scmp.ne.s32.totalorder %s97_s15, %s6303_s22  ;;  %p6309_p2 = scmp.lt.s32.totalorder %s6303_s22, %s6303_s22 }
  0x3d   :  { %p6310_p3 = por %p6309_p2, %p6308_p1 }
  0x3f   :  { %p6311_p4 = pnand %p6310_p3, %p6304_p0 }
  0x41   :  { %6314 = shalt.err (!%p6311_p4)
}
  0x42   :  { %s6665_s0 = smov 128   ;;  %s6666_s8 = smov 8  }
  0x43   :  { %102 = dma.hbm_to_vmem [thread:$0]  %s6713_s13, 256, %s97_s15, [#allocation7], %s6665_s0, %s6665_s0, %s6666_s8  }
  0x44   :  { %s6323_s26 = scalar_lea.vmem %s121_s23, 256  ;;  %p6328_p6 = scmp.lt.s32.totalorder %s121_s23, %s121_s23 }
  0x45   :  { %p6324_p5 = scmp.ne.s32.totalorder %s121_s23, %s6323_s26  ;;  %p6329_p7 = scmp.lt.s32.totalorder %s6323_s26, %s6323_s26 }
  0x47   :  { %p6330_p8 = por %p6329_p7, %p6328_p6 }
  0x49   :  { %p6331_p9 = pnand %p6330_p8, %p6324_p5 }
  0x4b   :  { %6334 = shalt.err (!%p6331_p9)
}
  0x4c   :  { %126 = dma.hbm_to_vmem [thread:$0]  %s6723_s21, 256, %s121_s23, [#allocation10], %s6665_s0, %s6665_s0, %s6666_s8  }
  0x4d   :  { %s6667_s1 = smov [#allocation12]   ;;  %s6668_s2 = smov [#allocation15]  }
  0x4e   :  { %s160_s28 = sshll.u32 %s6667_s1, 4  ;;  %s187_s10 = sshll.u32 %s6668_s2, 4  ;;  %s161_s28 = int_to_ptr.vmem [resolvable:$true] %s160_s28  ;;  %s188_s10 = int_to_ptr.vmem [resolvable:$true] %s187_s10 }
  0x4f   :  { %s6343_s7 = scalar_lea.vmem %s161_s28, 512  ;;  %p6348_p11 = scmp.lt.s32.totalorder %s161_s28, %s161_s28 }
  0x50   :  { %p6344_p10 = scmp.ne.s32.totalorder %s161_s28, %s6343_s7  ;;  %p6349_p12 = scmp.lt.s32.totalorder %s6343_s7, %s6343_s7 }
  0x52   :  { %p6350_p13 = por %p6349_p12, %p6348_p11 }
  0x54   :  { %p6351_p0 = pnand %p6350_p13, %p6344_p10 }
  0x56   :  { %6354 = shalt.err (!%p6351_p0)
}
  0x57   :  { %166 = dma.hbm_to_vmem [thread:$0]  %s6773_s12, 512, %s161_s28, [#allocation13], %s6665_s0, %s6665_s0, %s6666_s8  }
  0x58   :  { %s6363_s13 = scalar_lea.vmem %s188_s10, 16  ;;  %s6367_s21 = scalar_lea.vmem %s188_s10, 32 }
  0x59   :  { %p6364_p1 = scmp.ne.s32.totalorder %s188_s10, %s6363_s13  ;;  %p6368_p2 = scmp.lt.s32.totalorder %s188_s10, %s188_s10 }
  0x5a   :  { %p6369_p3 = scmp.lt.s32.totalorder %s6367_s21, %s6363_s13 }
  0x5c   :  { %p6370_p4 = por %p6369_p3, %p6368_p2 }
  0x5e   :  { %p6371_p5 = pnand %p6370_p4, %p6364_p1 }
  0x60   :  { %6374 = shalt.err (!%p6371_p5)
}
  0x61   :  { %190 = dma.hbm_to_vmem [thread:$0]  %s6788_s4, 16, %s188_s10, [#allocation16]  }
  0x62   :  { %s6669_s11 = smov [#allocation18]   ;;  %s6670_s15 = smov [#allocation21]  }
  0x63   :  { %s209_s16 = sshll.u32 %s6669_s11, 4  ;;  %s235_s18 = sshll.u32 %s6670_s15, 4  ;;  %s210_s16 = int_to_ptr.vmem [resolvable:$true] %s209_s16  ;;  %s236_s18 = int_to_ptr.vmem [resolvable:$true] %s235_s18 }
  0x64   :  { %s6383_s23 = scalar_lea.vmem %s210_s16, 16  ;;  %s6387_s22 = scalar_lea.vmem %s210_s16, 32 }
  0x65   :  { %p6384_p6 = scmp.ne.s32.totalorder %s210_s16, %s6383_s23  ;;  %p6388_p7 = scmp.lt.s32.totalorder %s210_s16, %s210_s16 }
  0x66   :  { %p6389_p8 = scmp.lt.s32.totalorder %s6387_s22, %s6383_s23 }
  0x68   :  { %p6390_p9 = por %p6389_p8, %p6388_p7 }
  0x6a   :  { %p6391_p10 = pnand %p6390_p9, %p6384_p6 }
  0x6c   :  { %6394 = shalt.err (!%p6391_p10)
}
  0x6d   :  { %212 = dma.hbm_to_vmem [thread:$0]  %s6798_s6, 16, %s210_s16, [#allocation19]  }
  0x6e   :  { %s6403_s12 = scalar_lea.vmem %s236_s18, 16  ;;  %s6407_s26 = scalar_lea.vmem %s236_s18, 32 }
  0x6f   :  { %p6404_p11 = scmp.ne.s32.totalorder %s236_s18, %s6403_s12  ;;  %p6408_p12 = scmp.lt.s32.totalorder %s236_s18, %s236_s18 }
  0x70   :  { %p6409_p13 = scmp.lt.s32.totalorder %s6407_s26, %s6403_s12 }
  0x72   :  { %p6410_p0 = por %p6409_p13, %p6408_p12 }
  0x74   :  { %p6411_p1 = pnand %p6410_p0, %p6404_p11 }
  0x76   :  { %6414 = shalt.err (!%p6411_p1)
}
  0x77   :  { %238 = dma.hbm_to_vmem [thread:$0]  %s6818_s14, 16, %s236_s18, [#allocation22]  }
  0x78   :  { %s6671_s4 = smov [#allocation24]   ;;  %s6672_s28 = smov [#allocation3]  }
  0x79   :  { %s262_s1 = sshll.u32 %s6671_s4, 4  ;;  %s82_s2 = sshll.u32 %s6672_s28, 4  ;;  %s263_s1 = int_to_ptr.vmem [resolvable:$true] %s262_s1  ;;  %s83_s2 = int_to_ptr.vmem [resolvable:$true] %s82_s2 }
  0x7a   :  { %s6423_s10 = scalar_lea.vmem %s263_s1, 512  ;;  %p6428_p3 = scmp.lt.s32.totalorder %s263_s1, %s263_s1 }
  0x7b   :  { %p6424_p2 = scmp.ne.s32.totalorder %s263_s1, %s6423_s10  ;;  %p6429_p4 = scmp.lt.s32.totalorder %s6423_s10, %s6423_s10 }
  0x7d   :  { %p6430_p5 = por %p6429_p4, %p6428_p3 }
  0x7f   :  { %p6431_p6 = pnand %p6430_p5, %p6424_p2 }
  0x81   :  { %6434 = shalt.err (!%p6431_p6)
}
  0x82   :  { %268 = dma.hbm_to_vmem [thread:$0]  %s6841_s20, 512, %s263_s1, [#allocation25], %s6665_s0, %s6665_s0, %s6666_s8  }
  0x83   :  { %s6443_s6 = scalar_lea.vmem %s83_s2, 256  ;;  %p6448_p8 = scmp.lt.s32.totalorder %s83_s2, %s83_s2 }
  0x84   :  { %p6444_p7 = scmp.ne.s32.totalorder %s83_s2, %s6443_s6  ;;  %p6449_p9 = scmp.lt.s32.totalorder %s6443_s6, %s6443_s6 }
  0x86   :  { %p6450_p10 = por %p6449_p9, %p6448_p8 }
  0x88   :  { %p6451_p11 = pnand %p6450_p10, %p6444_p7 }
  0x8a   :  { %6454 = shalt.err (!%p6451_p11)
}
  0x8b   :  { %88 = dma.hbm_to_vmem [thread:$0]  %s6703_s5, 256, %s83_s2, [#allocation4], %s6665_s0, %s6665_s0, %s6666_s8  }
  0x8c   :  { %s6673_s14 = smov [#allocation8]   ;;  %s6674_s13 = smov [#allocation11]  }
  0x8d   :  { %s108_s7 = sshll.u32 %s6673_s14, 4  ;;  %s146_s21 = sshll.u32 %s6674_s13, 4  ;;  %s109_s7 = int_to_ptr.vmem [resolvable:$true] %s108_s7  ;;  %s147_s21 = int_to_ptr.vmem [resolvable:$true] %s146_s21 }
  0x8e   :  { %s6463_s11 = scalar_lea.vmem %s109_s7, 256  ;;  %p6468_p13 = scmp.lt.s32.totalorder %s109_s7, %s109_s7 }
  0x8f   :  { %p6464_p12 = scmp.ne.s32.totalorder %s109_s7, %s6463_s11  ;;  %p6469_p0 = scmp.lt.s32.totalorder %s6463_s11, %s6463_s11 }
  0x91   :  { %p6470_p1 = por %p6469_p0, %p6468_p13 }
  0x93   :  { %p6471_p2 = pnand %p6470_p1, %p6464_p12 }
  0x95   :  { %6474 = shalt.err (!%p6471_p2)
}
  0x96   :  { %114 = dma.hbm_to_vmem [thread:$0]  %s6718_s17, 256, %s109_s7, [#allocation7], %s6665_s0, %s6665_s0, %s6666_s8  }
  0x97   :  { %s6483_s20 = scalar_lea.vmem %s147_s21, 512  ;;  %p6488_p4 = scmp.lt.s32.totalorder %s147_s21, %s147_s21 }
  0x98   :  { %p6484_p3 = scmp.ne.s32.totalorder %s147_s21, %s6483_s20  ;;  %p6489_p5 = scmp.lt.s32.totalorder %s6483_s20, %s6483_s20 }
  0x9a   :  { %p6490_p6 = por %p6489_p5, %p6488_p4 }
  0x9c   :  { %p6491_p7 = pnand %p6490_p6, %p6484_p3 }
  0x9e   :  { %6494 = shalt.err (!%p6491_p7)
}
  0x9f   :  { %152 = dma.hbm_to_vmem [thread:$0]  %s6763_s30, 512, %s147_s21, [#allocation10], %s6665_s0, %s6665_s0, %s6666_s8  }
  0xa0   :  { %s6675_s5 = smov [#allocation14]   ;;  %s6676_s15 = smov [#allocation17]  }
  0xa1   :  { %s174_s16 = sshll.u32 %s6675_s5, 4  ;;  %s196_s18 = sshll.u32 %s6676_s15, 4  ;;  %s175_s16 = int_to_ptr.vmem [resolvable:$true] %s174_s16  ;;  %s197_s18 = int_to_ptr.vmem [resolvable:$true] %s196_s18 }
  0xa2   :  { %s6503_s23 = scalar_lea.vmem %s175_s16, 512  ;;  %p6508_p9 = scmp.lt.s32.totalorder %s175_s16, %s175_s16 }
  0xa3   :  { %p6504_p8 = scmp.ne.s32.totalorder %s175_s16, %s6503_s23  ;;  %p6509_p10 = scmp.lt.s32.totalorder %s6503_s23, %s6503_s23 }
  0xa5   :  { %p6510_p11 = por %p6509_p10, %p6508_p9 }
  0xa7   :  { %p6511_p12 = pnand %p6510_p11, %p6504_p8 }
  0xa9   :  { %6514 = shalt.err (!%p6511_p12)
}
  0xaa   :  { %180 = dma.hbm_to_vmem [thread:$0]  %s6783_s27, 512, %s175_s16, [#allocation13], %s6665_s0, %s6665_s0, %s6666_s8  }
  0xab   :  { %s6523_s17 = scalar_lea.vmem %s197_s18, 512  ;;  %p6528_p0 = scmp.lt.s32.totalorder %s197_s18, %s197_s18 }
  0xac   :  { %p6524_p13 = scmp.ne.s32.totalorder %s197_s18, %s6523_s17  ;;  %p6529_p1 = scmp.lt.s32.totalorder %s6523_s17, %s6523_s17 }
  0xae   :  { %p6530_p2 = por %p6529_p1, %p6528_p0 }
  0xb0   :  { %p6531_p3 = pnand %p6530_p2, %p6524_p13 }
  0xb2   :  { %6534 = shalt.err (!%p6531_p3)
}
  0xb3   :  { %202 = dma.hbm_to_vmem [thread:$0]  %s6793_s24, 512, %s197_s18, [#allocation16], %s6665_s0, %s6665_s0, %s6666_s8  }
  0xb4   :  { %s6677_s30 = smov [#allocation20]   ;;  %s6678_s12 = smov [#allocation23]  }
  0xb5   :  { %s222_s22 = sshll.u32 %s6677_s30, 4  ;;  %s250_s26 = sshll.u32 %s6678_s12, 4  ;;  %s223_s22 = int_to_ptr.vmem [resolvable:$true] %s222_s22  ;;  %s251_s26 = int_to_ptr.vmem [resolvable:$true] %s250_s26 }
  0xb6   :  { %s6543_s4 = scalar_lea.vmem %s223_s22, 512  ;;  %p6548_p5 = scmp.lt.s32.totalorder %s223_s22, %s223_s22 }
  0xb7   :  { %p6544_p4 = scmp.ne.s32.totalorder %s223_s22, %s6543_s4  ;;  %p6549_p6 = scmp.lt.s32.totalorder %s6543_s4, %s6543_s4 }
  0xb9   :  { %p6550_p7 = por %p6549_p6, %p6548_p5 }
  0xbb   :  { %p6551_p8 = pnand %p6550_p7, %p6544_p4 }
  0xbd   :  { %6554 = shalt.err (!%p6551_p8)
}
  0xbe   :  { %228 = dma.hbm_to_vmem [thread:$0]  %s6813_s19, 512, %s223_s22, [#allocation19], %s6665_s0, %s6665_s0, %s6666_s8  }
  0xbf   :  { %s6563_s27 = scalar_lea.vmem %s251_s26, 256  ;;  %p6568_p10 = scmp.lt.s32.totalorder %s251_s26, %s251_s26 }
  0xc0   :  { %p6564_p9 = scmp.ne.s32.totalorder %s251_s26, %s6563_s27  ;;  %p6569_p11 = scmp.lt.s32.totalorder %s6563_s27, %s6563_s27 }
  0xc2   :  { %p6570_p12 = por %p6569_p11, %p6568_p10 }
  0xc4   :  { %p6571_p13 = pnand %p6570_p12, %p6564_p9 }
  0xc6   :  { %6574 = shalt.err (!%p6571_p13)
}
  0xc7   :  { %256 = dma.hbm_to_vmem [thread:$0]  %s6836_s3, 256, %s251_s26, [#allocation22], %s6665_s0, %s6665_s0, %s6666_s8  }
  0xc8   :  { %s6679_s24 = smov [#allocation26]  }
  0xc9   :  { %s274_s1 = sshll.u32 %s6679_s24, 4  ;;  %s275_s1 = int_to_ptr.vmem [resolvable:$true] %s274_s1 }
  0xca   :  { %s6583_s28 = scalar_lea.vmem %s275_s1, 512  ;;  %p6588_p1 = scmp.lt.s32.totalorder %s275_s1, %s275_s1 }
  0xcb   :  { %p6584_p0 = scmp.ne.s32.totalorder %s275_s1, %s6583_s28  ;;  %p6589_p2 = scmp.lt.s32.totalorder %s6583_s28, %s6583_s28 }
  0xcd   :  { %p6590_p3 = por %p6589_p2, %p6588_p1 }
  0xcf   :  { %p6591_p4 = pnand %p6590_p3, %p6584_p0 }
  0xd1   :  { %6594 = shalt.err (!%p6591_p4)
}
  0xd2   :  { %280 = dma.hbm_to_vmem [thread:$0]  %s6846_s9, 512, %s275_s1, [#allocation25], %s6665_s0, %s6665_s0, %s6666_s8  }
  0xd3   :  { %6615 = dma.done.wait [#allocation4], 256  }
  0xd4   :  { %6616 = vsyncadd [#allocation4], 4294967040 }
  0xd5   :  { %6617 = dma.done.wait [#allocation7], 512  }
  0xd6   :  { %6618 = vsyncadd [#allocation7], 4294966784 }
  0xd7   :  { %6619 = dma.done.wait [#allocation10], 768  }
  0xd8   :  { %6620 = vsyncadd [#allocation10], 4294966528 }
  0xd9   :  { %6621 = dma.done.wait [#allocation13], 1024  }
  0xda   :  { %6622 = vsyncadd [#allocation13], 4294966272 }
  0xdb   :  { %6623 = dma.done.wait [#allocation16], 528  }
  0xdc   :  { %6624 = vsyncadd [#allocation16], 4294966768 }
  0xdd   :  { %6625 = dma.done.wait [#allocation19], 528  }
  0xde   :  { %6626 = vsyncadd [#allocation19], 4294966768 }
  0xdf   :  { %6627 = dma.done.wait [#allocation22], 272  }
  0xe0   :  { %6628 = vsyncadd [#allocation22], 4294967024 }
  0xe1   :  { %6629 = dma.done.wait [#allocation25], 1024  }
  0xe2   :  { %6630 = vsyncadd [#allocation25], 4294966272  ;;  %s7538_s9 = sld [smem:[#allocation38_spill]]  ;;  %vm348_vm0 = vcmask 261120   ;;  %v347_v1 = vld [vmem:[%s6733_s29 + $0x18] sm:$0xff]  ;;  %v346_v2 = vld [vmem:[%s6733_s29 + $0x10] sm:$0xff] }
  0xe3   :  { %5736 = vmatprep.subr.mxu0 %v347_v1  ;;  %v334_v3 = vld [vmem:[#allocation8] sm:$0xff]  ;;  %v335_v6 = vld [vmem:[#allocation8 + $0x8] sm:$0xff]  ;;  %v6680_v13 = vmov 0.0   ;;  %vm6681_vm1 = vmmov 0   ;;  %s6682_s3 = smov 96   ;;  %vm527_vm2 = vcmask 64512  }
  0xe4   :  { %5737 = vmatpush3.msra.mxu0 %v347_v1  ;;  %v345_v4 = vld [vmem:[%s6733_s29 + $0x8] sm:$0xff]  ;;  %5744 = vmatprep.mubr.msk.f32.mxu0 %vm348_vm0, %v334_v3  ;;  %v344_v5 = vld [vmem:[%s6733_s29] sm:$0xff]  ;;  %s7539_s29 = sld [smem:[#allocation39_spill]]  ;;  %s6683_s19 = smov 64   ;;  %vm3042_vm3 = vcmask 130048  }
  0xe5   :  { %5738 = vmatprep.subr.mxu0 %v346_v2  ;;  %v6910_v8 = vld [vmem:[#allocation3] sm:$0xff]  ;;  %v6918_v12 = vld [vmem:[#allocation3 + $0x8] sm:$0xff]  ;;  %5773 = vmatprep.subr.mxu1 %v6680_v13  ;;  %s6684_s2 = smov 88   ;;  %s6685_s10 = smov 120  }
  0xe6   :  { %5739 = vmatpush3.msra.mxu0 %v346_v2  ;;  %5775 = vmatprep.mubr.msk.f32.mxu1 %vm6681_vm1, %v6680_v13  ;;  %s6686_s6 = smov 56   ;;  %s6687_s14 = smov 112  }
  0xe7   :  { %5740 = vmatprep.subr.mxu0 %v345_v4  ;;  %s7540_s7 = sld [smem:[#allocation40_spill]]  ;;  %s6688_s13 = smov 80  }
  0xe8   :  { %5741 = vmatpush3.msra.mxu0 %v345_v4  ;;  %v343_v7 = vld [vmem:[%s7538_s9 + $0x18] sm:$0xff]  ;;  %v342_v9 = vld [vmem:[%s7538_s9 + $0x10] sm:$0xff]  ;;  %v341_v10 = vld [vmem:[%s7538_s9 + $0x8] sm:$0xff]  ;;  %s6689_s21 = smov 48   ;;  %s6690_s11 = smov 72  }
  0xe9   :  { %5742 = vmatprep.subr.mxu0 %v344_v5  ;;  %v340_v11 = vld [vmem:[%s7538_s9] sm:$0xff]  ;;  %s6691_s20 = smov 104   ;;  %s6692_s5 = smov 40  }
  0xea   :  { %5743 = vmatpush3.msra.mxu0 %v344_v5  ;;  %v5416_v19 = vld [vmem:[%s7539_s29] ss:$0 sm:$0xff]  ;;  %s7541_s16 = sld [smem:[#allocation41_spill]]  ;;  %s6694_s27 = smov [#allocation27]  }
  0xeb   :  { %5745 = vmatmul.mubr.msk.f32.vlgmr.msra.gmra.mxu0 %vm348_vm0, %v335_v6  ;;  %5747 = vmatprep.subr.mxu0 %v343_v7  ;;  %s7542_s15 = sld [smem:[#allocation42_spill]]  ;;  %s5363_s24 = sshll.u32 %s6694_s27, 4  ;;  %s5364_s24 = int_to_ptr.vmem [resolvable:$true] %s5363_s24 }
  0xec   :  { %5748 = vmatpush3.msra.mxu0 %v343_v7  ;;  %5755 = vmatprep.mubr.msk.f32.mxu0 %vm348_vm0, %v6910_v8  ;;  %s7543_s18 = sld [smem:[#allocation46_spill]]  ;;  %s6595_s1 = scalar_lea.vmem %s5364_s24, 256 }
  0xed   :  { %5749 = vmatprep.subr.mxu0 %v342_v9  ;;  %s7544_s23 = sld [smem:[#allocation47_spill]]  ;;  %p6596_p5 = scmp.ne.s32.totalorder %s5364_s24, %s6595_s1 }
  0xee   :  { %5750 = vmatpush3.msra.mxu0 %v342_v9  ;;  %s7545_s17 = sld [smem:[#allocation37_spill]]  ;;  %p6600_p6 = scmp.lt.s32.totalorder %s5364_s24, %s5364_s24 }
  0xef   :  { %5751 = vmatprep.subr.mxu0 %v341_v10  ;;  %s7546_s30 = sld [smem:[#allocation45_spill]]  ;;  %p6601_p7 = scmp.lt.s32.totalorder %s6595_s1, %s6595_s1 }
  0xf0   :  { %5752 = vmatpush3.msra.mxu0 %v341_v10  ;;  %s7547_s22 = sld [smem:[#allocation44_spill]] }
  0xf1   :  { %5753 = vmatprep.subr.mxu0 %v340_v11  ;;  %s7548_s12 = sld [smem:[#allocation43_spill]]  ;;  %p6602_p8 = por %p6601_p7, %p6600_p6 }
  0xf2   :  { %5754 = vmatpush3.msra.mxu0 %v340_v11  ;;  %s7549_s26 = sld [smem:[#allocation48_spill]] }
  0xf3   :  { %5756 = vmatmul.mubr.msk.f32.vlgmr.msra.gmra.mxu0 %vm348_vm0, %v6918_v12  ;;  %5758 = vmatprep.subr.mxu0 %v6680_v13  ;;  %s7550_s4 = sld [smem:[#allocation49_spill]]  ;;  %p6603_p9 = pnand %p6602_p8, %p6596_p5 }
  0xf4   :  { %5760 = vmatprep.mubr.msk.f32.mxu0 %vm6681_vm1, %v6680_v13 }
 0x1ab   :  { %v5746_v14 = vpop.f32.mrf.mxu0 }
 0x1ad   :  { %v421_v15 = vpop.f32.mrf.mxu0 }
 0x1b3   :  { %v5757_v16 = vpop.f32.mrf.mxu0 }
 0x1b4   :  { %v508_v20 = vadd.f32 %v5757_v16, %v5746_v14 }
 0x1b5   :  { %v502_v17 = vpop.f32.mrf.mxu0 }
 0x1b6   :  { %v503_v18 = vadd.f32 %v502_v17, %v421_v15  ;;  %v6933_v22 = vadd.f32 %v5416_v19, %v508_v20  ;;  %v520_v17 = vld [vmem:[%s7540_s7] sm:$0xff] }
 0x1b8   :  { %v6929_v21 = vadd.f32 %v5416_v19, %v503_v18 }
 0x1ba   :  { %525 = vrot.lane.b32.xlu0 %v6929_v21, %s6682_s3 }
 0x1be   :  { %603 = vrot.lane.b32.xlu0 %v6933_v22, %s6682_s3 }
 0x22c   :  { %v526_v23 = vpop.permute.xlu0 %525 }
 0x22d   :  { %5759 = vmatpush3.xpose.msk.msra.mxu0 %vm527_vm2, %v526_v23 }
 0x22e   :  { %5763 = vmatprep.subr.mxu0 %v6680_v13 }
 0x230   :  { %5761 = vmatmul.mubr.msk.f32.vlgmr.msra.gmra.mxu0 %vm527_vm2, %v6929_v21  ;;  %v604_v24 = vpop.permute.xlu0 %603 }
 0x231   :  { %5764 = vmatpush3.xpose.msk.msra.mxu0 %vm527_vm2, %v604_v24  ;;  %5765 = vmatprep.mubr.msk.f32.mxu0 %vm6681_vm1, %v6680_v13 }
 0x232   :  { %5768 = vmatprep.subr.mxu0 %v6680_v13 }
 0x234   :  { %5766 = vmatmul.mubr.msk.f32.vlgmr.msra.gmra.mxu0 %vm527_vm2, %v6933_v22 }
 0x235   :  { %5770 = vmatprep.mubr.msk.f32.mxu0 %vm6681_vm1, %v6680_v13 }
 0x2f0   :  { %v598_v25 = vpop.f32.mrf.mxu0 }
 0x2f1   :  { %v679_v26 = vmul.f32 0.35355338, %v598_v25 }
 0x2f2   :  { %v5762_v27 = vpop.f32.mrf.mxu0 }
 0x2f3   :  { %v681_v28 = vsel %vm527_vm2, %v679_v26, -inf }
 0x2f4   :  { %682 = vmax.xlane.f32.xlu1 %v681_v28  ;;  %v675_v29 = vpop.f32.mrf.mxu0 }
 0x2f5   :  { %v680_v30 = vmul.f32 0.35355338, %v675_v29 }
 0x2f6   :  { %v5767_v31 = vpop.f32.mrf.mxu0 }
 0x2f7   :  { %v684_v32 = vsel %vm527_vm2, %v680_v30, -inf }
 0x2f8   :  { %685 = vmax.xlane.f32.xlu1 %v684_v32 }
 0x309   :  { %703 = vrot.lane.b32.xlu1 %v6929_v21, %s6683_s19 }
 0x30d   :  { %779 = vrot.lane.b32.xlu1 %v6933_v22, %s6683_s19 }
 0x311   :  { %857 = vrot.lane.b32.xlu1 %v6929_v21, %s6684_s2 }
 0x315   :  { %935 = vrot.lane.b32.xlu1 %v6933_v22, %s6684_s2 }
 0x37d   :  { %v683_v33 = vpop.xlane.xlu1 %682 }
 0x37e   :  { %v687_v34 = vsub.f32 %v679_v26, %v683_v33 }
 0x380   :  { %v689_v35 = vmul.f32 1.442695, %v687_v34 }
 0x381   :  { %v686_v36 = vpop.xlane.xlu1 %685 }
 0x382   :  { %6217 = vpow2.f32 %v689_v35  ;;  %v688_v37 = vsub.f32 %v680_v30, %v686_v36  ;;  %v521_v30 = vld [vmem:[%s7540_s7 + $0x8] sm:$0xff] }
 0x384   :  { %v691_v38 = vmul.f32 1.442695, %v688_v37 }
 0x385   :  { %v704_v39 = vpop.permute.xlu1 %703 }
 0x386   :  { %6219 = vpow2.f32 %v691_v38  ;;  %5769 = vmatpush3.msra.mxu0 %v704_v39 }
 0x387   :  { %5778 = vmatprep.subr.mxu0 %v6680_v13 }
 0x389   :  { %v780_v40 = vpop.permute.xlu1 %779 }
 0x38a   :  { %5774 = vmatpush3.msra.mxu1 %v780_v40 }
 0x38b   :  { %5783 = vmatprep.subr.mxu1 %v6680_v13 }
 0x38d   :  { %v858_v45 = vpop.permute.xlu1 %857 }
 0x38f   :  { %v6218_v41 = vpop.eup %6217 }
 0x390   :  { %v693_v42 = vsel %vm527_vm2, %v6218_v41, 0.0 }
 0x391   :  { %694 = vadd.xlane.f32.xlu0 %v693_v42  ;;  %v936_v46 = vpop.permute.xlu1 %935 }
 0x393   :  { %v6220_v43 = vpop.eup %6219 }
 0x394   :  { %v696_v44 = vsel %vm527_vm2, %v6220_v43, 0.0 }
 0x395   :  { %697 = vadd.xlane.f32.xlu1 %v696_v44 }
 0x3a6   :  { %933 = vrot.lane.b32.xlu1 %v6933_v22, %s6685_s10 }
 0x3a7   :  { %855 = vrot.lane.b32.xlu0 %v6929_v21, %s6685_s10 }
 0x41a   :  { %v695_v47 = vpop.xlane.xlu0 %694 }
 0x41b   :  { %6221 = vrcp.f32 %v695_v47 }
 0x41e   :  { %v698_v48 = vpop.xlane.xlu1 %697  ;;  %v856_v53 = vpop.permute.xlu0 %855 }
 0x41f   :  { %6223 = vrcp.f32 %v698_v48 }
 0x422   :  { %v934_v54 = vpop.permute.xlu1 %933 }
 0x428   :  { %v6222_v49 = vpop.eup %6221 }
 0x429   :  { %v700_v50 = vmul.f32 %v6222_v49, %v6218_v41 }
 0x42b   :  { %5771 = vmatmul.mubr.msk.f32.vlgmr.msra.gmra.mxu0 %vm527_vm2, %v700_v50 }
 0x42c   :  { %v6224_v51 = vpop.eup %6223  ;;  %5779 = vmatpush3.xpose.msk.msra.mxu0 %vm527_vm2, %v858_v45  ;;  %5780 = vmatprep.mubr.msk.f32.mxu0 %vm6681_vm1, %v6680_v13 }
 0x42d   :  { %v702_v52 = vmul.f32 %v6224_v51, %v6220_v43  ;;  %5788 = vmatprep.subr.mxu0 %v6680_v13 }
 0x42f   :  { %5776 = vmatmul.mubr.msk.f32.vlgmr.msra.gmra.mxu1 %vm527_vm2, %v702_v52  ;;  %5781 = vmatmul.mubr.msk.f32.vlgmr.msra.gmra.mxu0 %vm527_vm2, %v856_v53 }
 0x430   :  { %5784 = vmatpush3.xpose.msk.msra.mxu1 %vm527_vm2, %v936_v46  ;;  %5785 = vmatprep.mubr.msk.f32.mxu1 %vm6681_vm1, %v6680_v13 }
 0x431   :  { %5793 = vmatprep.subr.mxu1 %v6680_v13  ;;  %5790 = vmatprep.mubr.msk.f32.mxu0 %vm6681_vm1, %v6680_v13 }
 0x433   :  { %5786 = vmatmul.mubr.msk.f32.vlgmr.msra.gmra.mxu1 %vm527_vm2, %v934_v54 }
 0x434   :  { %5795 = vmatprep.mubr.msk.f32.mxu1 %vm6681_vm1, %v6680_v13 }
 0x4eb   :  { %v775_v55 = vpop.f32.mrf.mxu0 }
 0x4ed   :  { %v5772_v56 = vpop.f32.mrf.mxu0 }
 0x4ef   :  { %v851_v57 = vpop.f32.mrf.mxu1  ;;  %v929_v58 = vpop.f32.mrf.mxu0 }
 0x4f0   :  { %v1011_v59 = vmul.f32 0.35355338, %v929_v58 }
 0x4f1   :  { %v5777_v60 = vpop.f32.mrf.mxu1  ;;  %v5782_v61 = vpop.f32.mrf.mxu0 }
 0x4f2   :  { %v1013_v62 = vsel %vm527_vm2, %v1011_v59, -inf }
 0x4f3   :  { %v1007_v63 = vpop.f32.mrf.mxu1  ;;  %1014 = vmax.xlane.f32.xlu1 %v1013_v62 }
 0x4f4   :  { %v1012_v0 = vmul.f32 0.35355338, %v1007_v63 }
 0x4f5   :  { %v5787_v1 = vpop.f32.mrf.mxu1 }
 0x4f6   :  { %v1016_v2 = vsel %vm527_vm2, %v1012_v0, -inf }
 0x4f7   :  { %1017 = vmax.xlane.f32.xlu0 %v1016_v2 }
 0x50d   :  { %1111 = vrot.lane.b32.xlu0 %v6933_v22, %s6686_s6 }
 0x511   :  { %1349 = vrot.lane.b32.xlu0 %v6929_v21, %s6687_s14 }
 0x57c   :  { %v1015_v3 = vpop.xlane.xlu1 %1014 }
 0x57d   :  { %v1019_v4 = vsub.f32 %v1011_v59, %v1015_v3 }
 0x57f   :  { %v1021_v5 = vmul.f32 1.442695, %v1019_v4  ;;  %v522_v4 = vld [vmem:[%s7540_s7 + $0x10] sm:$0xff] }
 0x580   :  { %v1018_v6 = vpop.xlane.xlu0 %1017 }
 0x581   :  { %6225 = vpow2.f32 %v1021_v5  ;;  %v1020_v7 = vsub.f32 %v1012_v0, %v1018_v6 }
 0x583   :  { %v1023_v9 = vmul.f32 1.442695, %v1020_v7 }
 0x584   :  { %v1112_v10 = vpop.permute.xlu0 %1111 }
 0x585   :  { %6227 = vpow2.f32 %v1023_v9  ;;  %5794 = vmatpush3.msra.mxu1 %v1112_v10 }
 0x586   :  { %5803 = vmatprep.subr.mxu1 %v520_v17 }
 0x588   :  { %v1350_v35 = vpop.permute.xlu0 %1349 }
 0x58e   :  { %v6226_v11 = vpop.eup %6225 }
 0x58f   :  { %v1025_v14 = vsel %vm527_vm2, %v6226_v11, 0.0 }
 0x590   :  { %1026 = vadd.xlane.f32.xlu1 %v1025_v14 }
 0x592   :  { %v6228_v15 = vpop.eup %6227 }
 0x593   :  { %v1028_v16 = vsel %vm527_vm2, %v6228_v15, 0.0 }
 0x594   :  { %1029 = vadd.xlane.f32.xlu1 %v1028_v16 }
 0x5a5   :  { %1035 = vrot.lane.b32.xlu1 %v6929_v21, %s6686_s6 }
 0x5a9   :  { %1351 = vrot.lane.b32.xlu1 %v6929_v21, %s6688_s13 }
 0x5ad   :  { %1429 = vrot.lane.b32.xlu1 %v6933_v22, %s6688_s13 }
 0x5b1   :  { %1427 = vrot.lane.b32.xlu1 %v6933_v22, %s6687_s14 }
 0x619   :  { %v1027_v18 = vpop.xlane.xlu1 %1026 }
 0x61a   :  { %6229 = vrcp.f32 %v1027_v18 }
 0x61d   :  { %v1030_v19 = vpop.xlane.xlu1 %1029 }
 0x61e   :  { %6231 = vrcp.f32 %v1030_v19 }
 0x621   :  { %v1036_v20 = vpop.permute.xlu1 %1035 }
 0x622   :  { %5789 = vmatpush3.msra.mxu0 %v1036_v20 }
 0x623   :  { %5798 = vmatprep.subr.mxu0 %v521_v30 }
 0x625   :  { %v1352_v25 = vpop.permute.xlu1 %1351 }
 0x627   :  { %v6230_v23 = vpop.eup %6229 }
 0x628   :  { %v1032_v24 = vmul.f32 %v6230_v23, %v6226_v11 }
 0x629   :  { %v1430_v28 = vpop.permute.xlu1 %1429 }
 0x62a   :  { %5791 = vmatmul.mubr.msk.f32.vlgmr.msra.gmra.mxu0 %vm527_vm2, %v1032_v24 }
 0x62b   :  { %v6232_v26 = vpop.eup %6231  ;;  %5799 = vmatpush3.msra.mxu0 %v521_v30 }
 0x62c   :  { %v1034_v27 = vmul.f32 %v6232_v26, %v6228_v15  ;;  %5808 = vmatprep.subr.mxu0 %v6680_v13 }
 0x62d   :  { %v1428_v29 = vpop.permute.xlu1 %1427 }
 0x62e   :  { %5796 = vmatmul.mubr.msk.f32.vlgmr.msra.gmra.mxu1 %vm527_vm2, %v1034_v27 }
 0x62f   :  { %5805 = vmatprep.mubr.msk.f32.mxu1 %vm527_vm2, %v775_v55  ;;  %5804 = vmatpush3.msra.mxu1 %v520_v17 }
 0x630   :  { %5813 = vmatprep.subr.mxu1 %v6680_v13 }
 0x632   :  { %5806 = vmatmul.mubr.msk.f32.vlgmr.msra.gmra.mxu1 %vm527_vm2, %v851_v57 }
 0x633   :  { %5814 = vmatpush3.xpose.msk.msra.mxu1 %vm527_vm2, %v1430_v28  ;;  %5815 = vmatprep.mubr.msk.f32.mxu1 %vm6681_vm1, %v6680_v13 }
 0x634   :  { %5823 = vmatprep.subr.mxu1 %v6680_v13 }
 0x636   :  { %5816 = vmatmul.mubr.msk.f32.vlgmr.msra.gmra.mxu1 %vm527_vm2, %v1428_v29 }
 0x637   :  { %5825 = vmatprep.mubr.msk.f32.mxu1 %vm6681_vm1, %v6680_v13 }
 0x6ea   :  { %v1107_v31 = vpop.f32.mrf.mxu0 }
 0x6eb   :  { %5800 = vmatprep.mubr.msk.f32.mxu0 %vm527_vm2, %v1107_v31 }
 0x6ec   :  { %v5792_v32 = vpop.f32.mrf.mxu0 }
 0x6ee   :  { %v1183_v33 = vpop.f32.mrf.mxu1 }
 0x6ef   :  { %5801 = vmatmul.mubr.msk.f32.vlgmr.msra.gmra.mxu0 %vm527_vm2, %v1183_v33 }
 0x6f0   :  { %5809 = vmatpush3.xpose.msk.msra.mxu0 %vm527_vm2, %v1352_v25  ;;  %v5797_v34 = vpop.f32.mrf.mxu1  ;;  %5810 = vmatprep.mubr.msk.f32.mxu0 %vm6681_vm1, %v6680_v13 }
 0x6f1   :  { %5818 = vmatprep.subr.mxu0 %v6680_v13 }
 0x6f2   :  { %v7016_v36 = vpop.f32.mrf.mxu1 }
 0x6f3   :  { %5811 = vmatmul.mubr.msk.f32.vlgmr.msra.gmra.mxu0 %vm527_vm2, %v1350_v35 }
 0x6f4   :  { %v7019_v37 = vpop.f32.mrf.mxu1  ;;  %5820 = vmatprep.mubr.msk.f32.mxu0 %vm6681_vm1, %v6680_v13 }
 0x6f6   :  { %v1501_v38 = vpop.f32.mrf.mxu1 }
 0x6f7   :  { %v1506_v39 = vmul.f32 0.35355338, %v1501_v38 }
 0x6f8   :  { %v5817_v40 = vpop.f32.mrf.mxu1 }
 0x6f9   :  { %v1510_v41 = vsel %vm527_vm2, %v1506_v39, -inf }
 0x6fa   :  { %1511 = vmax.xlane.f32.xlu1 %v1510_v41 }
 0x70b   :  { %1529 = vrot.lane.b32.xlu1 %v6929_v21, %s6689_s21 }
 0x70f   :  { %1766 = vrot.lane.b32.xlu1 %v6929_v21, %s6690_s11 }
 0x713   :  { %1844 = vrot.lane.b32.xlu1 %v6933_v22, %s6690_s11 }
 0x717   :  { %1842 = vrot.lane.b32.xlu1 %v6933_v22, %s6691_s20 }
 0x783   :  { %v1512_v42 = vpop.xlane.xlu1 %1511 }
 0x784   :  { %v1514_v44 = vsub.f32 %v1506_v39, %v1512_v42 }
 0x786   :  { %v1517_v45 = vmul.f32 1.442695, %v1514_v44 }
 0x787   :  { %v1530_v43 = vpop.permute.xlu1 %1529 }
 0x788   :  { %5819 = vmatpush3.msra.mxu0 %v1530_v43  ;;  %6233 = vpow2.f32 %v1517_v45 }
 0x789   :  { %5828 = vmatprep.subr.mxu0 %v522_v4 }
 0x78b   :  { %v1767_v0 = vpop.permute.xlu1 %1766 }
 0x78f   :  { %v1845_v14 = vpop.permute.xlu1 %1844 }
 0x793   :  { %v1843_v17 = vpop.permute.xlu1 %1842 }
 0x795   :  { %v6234_v52 = vpop.eup %6233 }
 0x796   :  { %v1522_v53 = vsel %vm527_vm2, %v6234_v52, 0.0 }
 0x7af   :  { %v7031_v46 = vpop.f32.mrf.mxu0 }
 0x7b0   :  { %v1346_v25 = vadd.f32 %v7016_v36, %v7031_v46 }
 0x7b1   :  { %v7033_v47 = vpop.f32.mrf.mxu0 }
 0x7b2   :  { %v1341_v27 = vadd.f32 %v7019_v37, %v7033_v47 }
 0x7b3   :  { %v1423_v48 = vpop.f32.mrf.mxu0 }
 0x7b4   :  { %v1505_v49 = vmul.f32 0.35355338, %v1423_v48 }
 0x7b5   :  { %v5812_v50 = vpop.f32.mrf.mxu0 }
 0x7b6   :  { %v1507_v51 = vsel %vm527_vm2, %v1505_v49, -inf }
 0x7b7   :  { %1508 = vmax.xlane.f32.xlu0 %v1507_v51 }
 0x7bb   :  { %1523 = vadd.xlane.f32.xlu0 %v1522_v53 }
 0x840   :  { %v1509_v54 = vpop.xlane.xlu0 %1508 }
 0x841   :  { %v1513_v55 = vsub.f32 %v1505_v49, %v1509_v54 }
 0x843   :  { %v1515_v56 = vmul.f32 1.442695, %v1513_v55 }
 0x844   :  { %v1524_v59 = vpop.xlane.xlu0 %1523 }
 0x845   :  { %6235 = vpow2.f32 %v1515_v56 }
 0x846   :  { %6237 = vrcp.f32 %v1524_v59 }
 0x852   :  { %v6236_v57 = vpop.eup %6235 }
 0x853   :  { %v1519_v58 = vsel %vm527_vm2, %v6236_v57, 0.0  ;;  %v6238_v61 = vpop.eup %6237 }
 0x854   :  { %1520 = vadd.xlane.f32.xlu0 %v1519_v58  ;;  %v1528_v63 = vmul.f32 %v6238_v61, %v6234_v52  ;;  %v5449_v52 = vld [vmem:[%s7541_s16] ss:$0 sm:$0xff] }
 0x86a   :  { %1605 = vrot.lane.b32.xlu0 %v6933_v22, %s6689_s21 }
 0x86e   :  { %1764 = vrot.lane.b32.xlu0 %v6929_v21, %s6691_s20 }
 0x8dd   :  { %v1521_v60 = vpop.xlane.xlu0 %1520 }
 0x8de   :  { %6239 = vrcp.f32 %v1521_v60 }
 0x8e1   :  { %v1606_v62 = vpop.permute.xlu0 %1605 }
 0x8e2   :  { %5824 = vmatpush3.msra.mxu1 %v1606_v62 }
 0x8e3   :  { %5826 = vmatmul.mubr.msk.f32.vlgmr.msra.gmra.mxu1 %vm527_vm2, %v1528_v63  ;;  %5833 = vmatprep.subr.mxu1 %v6680_v13 }
 0x8e4   :  { %5834 = vmatpush3.xpose.msk.msra.mxu1 %vm527_vm2, %v1767_v0  ;;  %5835 = vmatprep.mubr.msk.f32.mxu1 %vm6681_vm1, %v6680_v13 }
 0x8e5   :  { %v1765_v1 = vpop.permute.xlu0 %1764  ;;  %5843 = vmatprep.subr.mxu1 %v6680_v13 }
 0x8e7   :  { %5836 = vmatmul.mubr.msk.f32.vlgmr.msra.gmra.mxu1 %vm527_vm2, %v1765_v1 }
 0x8e8   :  { %5845 = vmatprep.mubr.msk.f32.mxu1 %vm6681_vm1, %v6680_v13 }
 0x8eb   :  { %v6240_v2 = vpop.eup %6239 }
 0x8ec   :  { %v1526_v3 = vmul.f32 %v6240_v2, %v6236_v57 }
 0x8ee   :  { %5821 = vmatmul.mubr.msk.f32.vlgmr.msra.gmra.mxu0 %vm527_vm2, %v1526_v3 }
 0x8ef   :  { %5829 = vmatpush3.msra.mxu0 %v522_v4 }
 0x8f0   :  { %5838 = vmatprep.subr.mxu0 %v6680_v13 }
 0x9a3   :  { %v1677_v5 = vpop.f32.mrf.mxu1 }
 0x9a5   :  { %v5827_v6 = vpop.f32.mrf.mxu1 }
 0x9a6   :  { %v2236_v6 = vld [vmem:[%s7542_s15 + $0x18] sm:$0xff] }
 0x9a7   :  { %v1838_v7 = vpop.f32.mrf.mxu1 }
 0x9a8   :  { %v1920_v9 = vmul.f32 0.35355338, %v1838_v7  ;;  %v2235_v7 = vld [vmem:[%s7542_s15 + $0x10] sm:$0xff] }
 0x9a9   :  { %v5837_v10 = vpop.f32.mrf.mxu1 }
 0x9aa   :  { %v1922_v11 = vsel %vm527_vm2, %v1920_v9, -inf  ;;  %v2327_v10 = vld [vmem:[#allocation11 + $0x10] sm:$0xff] }
 0x9ab   :  { %1923 = vmax.xlane.f32.xlu0 %v1922_v11  ;;  %v2234_v11 = vld [vmem:[%s7542_s15 + $0x8] sm:$0xff] }
 0x9ae   :  { %v1601_v15 = vpop.f32.mrf.mxu0 }
 0x9af   :  { %5830 = vmatprep.mubr.msk.f32.mxu0 %vm527_vm2, %v1601_v15  ;;  %v2233_v15 = vld [vmem:[%s7542_s15] sm:$0xff] }
 0x9b0   :  { %v5822_v16 = vpop.f32.mrf.mxu0  ;;  %5831 = vmatmul.mubr.msk.f32.vlgmr.msra.gmra.mxu0 %vm527_vm2, %v1677_v5 }
 0x9b1   :  { %5839 = vmatpush3.xpose.msk.msra.mxu0 %vm527_vm2, %v1845_v14  ;;  %5840 = vmatprep.mubr.msk.f32.mxu0 %vm6681_vm1, %v6680_v13  ;;  %v2326_v14 = vld [vmem:[#allocation11 + $0x8] sm:$0xff]  ;;  %v2325_v16 = vld [vmem:[#allocation11] sm:$0xff] }
 0x9b2   :  { %5848 = vmatprep.subr.mxu0 %v6680_v13 }
 0x9b4   :  { %5841 = vmatmul.mubr.msk.f32.vlgmr.msra.gmra.mxu0 %vm527_vm2, %v1843_v17  ;;  %v2420_v17 = vld [vmem:[#allocation12 + $0x18] sm:$0xff] }
 0x9b5   :  { %5850 = vmatprep.mubr.msk.f32.mxu0 %vm6681_vm1, %v6680_v13 }
 0xa34   :  { %v1924_v18 = vpop.xlane.xlu0 %1923 }
 0xa35   :  { %v1928_v19 = vsub.f32 %v1920_v9, %v1924_v18  ;;  %v2328_v9 = vld [vmem:[#allocation11 + $0x18] sm:$0xff]  ;;  %v336_v18 = vld [vmem:[#allocation9] sm:$0xff] }
 0xa37   :  { %v1930_v20 = vmul.f32 1.442695, %v1928_v19  ;;  %v2532_v19 = vld [vmem:[#allocation26 + $0x18] sm:$0xff] }
 0xa39   :  { %6241 = vpow2.f32 %v1930_v20  ;;  %v337_v20 = vld [vmem:[#allocation9 + $0x8] sm:$0xff] }
 0xa46   :  { %v6242_v23 = vpop.eup %6241 }
 0xa47   :  { %v1934_v24 = vsel %vm527_vm2, %v6242_v23, 0.0 }
 0xa48   :  { %1935 = vadd.xlane.f32.xlu0 %v1934_v24  ;;  %v2530_v24 = vld [vmem:[#allocation26 + $0x8] sm:$0xff] }
 0xa70   :  { %v5832_v26 = vpop.f32.mrf.mxu0 }
 0xa71   :  { %v1763_v28 = vadd.f32 %v5832_v26, %v1346_v25  ;;  %v2529_v25 = vld [vmem:[#allocation26] sm:$0xff] }
 0xa72   :  { %v1753_v29 = vpop.f32.mrf.mxu0  ;;  %v2525_v26 = vld [vmem:[#allocation24] sm:$0xff] }
 0xa73   :  { %v1762_v30 = vadd.f32 %v1753_v29, %v1341_v27  ;;  %v2526_v27 = vld [vmem:[#allocation24 + $0x8] sm:$0xff]  ;;  %v2528_v29 = vld [vmem:[#allocation24 + $0x18] sm:$0xff] }
 0xa74   :  { %v1916_v31 = vpop.f32.mrf.mxu0 }
 0xa75   :  { %v1921_v32 = vmul.f32 0.35355338, %v1916_v31 }
 0xa76   :  { %v5842_v33 = vpop.f32.mrf.mxu0 }
 0xa77   :  { %v1925_v34 = vsel %vm527_vm2, %v1921_v32, -inf }
 0xa78   :  { %1926 = vmax.xlane.f32.xlu1 %v1925_v34 }
 0xa89   :  { %1944 = vrot.lane.b32.xlu1 %v6929_v21, %s6692_s5  ;;  %v523_v21 = vld [vmem:[%s7540_s7 + $0x18] sm:$0xff] }
 0xad1   :  { %v1936_v35 = vpop.xlane.xlu0 %1935 }
 0xad2   :  { %6243 = vrcp.f32 %v1936_v35 }
 0xadf   :  { %v6244_v38 = vpop.eup %6243 }
 0xae0   :  { %v1941_v41 = vmul.f32 %v6244_v38, %v6242_v23  ;;  %v2531_v23 = vld [vmem:[#allocation26 + $0x10] sm:$0xff] }
 0xb01   :  { %v1927_v36 = vpop.xlane.xlu1 %1926 }
 0xb02   :  { %v1929_v39 = vsub.f32 %v1921_v32, %v1927_v36  ;;  %v2217_v36 = vlaneseq }
 0xb04   :  { %v1932_v40 = vmul.f32 1.442695, %v1929_v39  ;;  %v7105_v38 = vshrl.u32 %v2217_v36, 7 }
 0xb05   :  { %v1945_v37 = vpop.permute.xlu1 %1944 }
 0xb06   :  { %6245 = vpow2.f32 %v1932_v40  ;;  %5844 = vmatpush3.msra.mxu1 %v1945_v37  ;;  %v2219_v39 = vsub.s32 0, %v7105_v38  ;;  %v338_v40 = vld [vmem:[%s7543_s18] sm:$0x7] }
 0xb07   :  { %5846 = vmatmul.mubr.msk.f32.vlgmr.msra.gmra.mxu1 %vm527_vm2, %v1941_v41  ;;  %5853 = vmatprep.subr.mxu1 %v523_v21  ;;  %v339_v37 = vld [vmem:[%s7544_s23] sm:$0x7] }
 0xb08   :  { %5854 = vmatpush3.msra.mxu1 %v523_v21  ;;  %v2220_v41 = vrot.slane %v338_v40, %v2219_v39 }
 0xb09   :  { %5869 = vmatprep.subr.mxu1 %v2328_v9 }
 0xb13   :  { %v6246_v42 = vpop.eup %6245 }
 0xb14   :  { %v1937_v43 = vsel %vm527_vm2, %v6246_v42, 0.0 }
 0xb15   :  { %1938 = vadd.xlane.f32.xlu0 %v1937_v43 }
 0xb2b   :  { %2020 = vrot.lane.b32.xlu0 %v6933_v22, %s6692_s5 }
 0xb9e   :  { %v1939_v44 = vpop.xlane.xlu0 %1938 }
 0xb9f   :  { %6247 = vrcp.f32 %v1939_v44  ;;  %v2226_v44 = vrot.slane %v339_v37, %v2219_v39 }
 0xba2   :  { %v2021_v45 = vpop.permute.xlu0 %2020 }
 0xba3   :  { %5849 = vmatpush3.msra.mxu0 %v2021_v45 }
 0xba4   :  { %5858 = vmatprep.subr.mxu0 %v2236_v6 }
 0xbac   :  { %v6248_v46 = vpop.eup %6247 }
 0xbad   :  { %v1943_v47 = vmul.f32 %v6248_v46, %v6246_v42 }
 0xbaf   :  { %5851 = vmatmul.mubr.msk.f32.vlgmr.msra.gmra.mxu0 %vm527_vm2, %v1943_v47 }
 0xbb0   :  { %5859 = vmatpush3.msra.mxu0 %v2236_v6 }
 0xbb1   :  { %5860 = vmatprep.subr.mxu0 %v2235_v7 }
 0xbb2   :  { %5861 = vmatpush3.msra.mxu0 %v2235_v7 }
 0xbb3   :  { %5862 = vmatprep.subr.mxu0 %v2234_v11 }
 0xbb4   :  { %5863 = vmatpush3.msra.mxu0 %v2234_v11 }
 0xbb5   :  { %5864 = vmatprep.subr.mxu0 %v2233_v15 }
 0xbb6   :  { %5865 = vmatpush3.msra.mxu0 %v2233_v15  ;;  %v5456_v15 = vld [vmem:[%s7546_s30] ss:$0 sm:$0xff] }
 0xbb7   :  { %5880 = vmatprep.subr.mxu0 %v2420_v17 }
 0xbc7   :  { %v2016_v48 = vpop.f32.mrf.mxu1 }
 0xbc8   :  { %5855 = vmatprep.mubr.msk.f32.mxu1 %vm527_vm2, %v2016_v48 }
 0xbc9   :  { %v5847_v49 = vpop.f32.mrf.mxu1 }
 0xbca   :  { %v2229_v49 = vld [vmem:[#allocation23] sm:$0xff] }
 0xc6f   :  { %v2092_v50 = vpop.f32.mrf.mxu0 }
 0xc70   :  { %5856 = vmatmul.mubr.msk.f32.vlgmr.msra.gmra.mxu1 %vm527_vm2, %v2092_v50 }
 0xc71   :  { %v5852_v22 = vpop.f32.mrf.mxu0  ;;  %5870 = vmatpush3.msra.mxu1 %v2328_v9  ;;  %5877 = vmatprep.mubr.msk.f32.mxu1 %vm348_vm0, %v336_v18  ;;  %v5453_v18 = vld [vmem:[%s7547_s22] ss:$0 sm:$0xff] }
 0xc72   :  { %5871 = vmatprep.subr.mxu1 %v2327_v10  ;;  %v2230_v22 = vld [vmem:[#allocation23 + $0x8] sm:$0xff] }
 0xc73   :  { %5872 = vmatpush3.msra.mxu1 %v2327_v10  ;;  %v5465_v10 = vld [vmem:[#allocation15] ss:$0 sm:$0xff] }
 0xc74   :  { %5873 = vmatprep.subr.mxu1 %v2326_v14 }
 0xc75   :  { %5874 = vmatpush3.msra.mxu1 %v2326_v14 }
 0xc76   :  { %5875 = vmatprep.subr.mxu1 %v2325_v16 }
 0xc77   :  { %5876 = vmatpush3.msra.mxu1 %v2325_v16 }
 0xc78   :  { %5894 = vmatprep.subr.mxu1 %v2532_v19  ;;  %5878 = vmatmul.mubr.msk.f32.vlgmr.msra.gmra.mxu1 %vm348_vm0, %v337_v20 }
 0xc79   :  { %5895 = vmatpush3.msra.mxu1 %v2532_v19  ;;  %5902 = vmatprep.mubr.msk.f32.mxu1 %vm348_vm0, %v2525_v26 }
 0xc7a   :  { %5896 = vmatprep.subr.mxu1 %v2531_v23 }
 0xc7b   :  { %5897 = vmatpush3.msra.mxu1 %v2531_v23 }
 0xc7c   :  { %5898 = vmatprep.subr.mxu1 %v2530_v24 }
 0xc7d   :  { %5899 = vmatpush3.msra.mxu1 %v2530_v24 }
 0xc7e   :  { %5900 = vmatprep.subr.mxu1 %v2529_v25 }
 0xc7f   :  { %5901 = vmatpush3.msra.mxu1 %v2529_v25 }
 0xc80   :  { %5903 = vmatmul.mubr.msk.f32.vlgmr.msra.gmra.mxu1 %vm348_vm0, %v2526_v27  ;;  %5919 = vmatprep.subr.mxu1 %v6680_v13 }
 0xd30   :  { %v5857_v51 = vpop.f32.mrf.mxu1 }
 0xd31   :  { %v2178_v53 = vadd.f32 %v5857_v51, %v1763_v28  ;;  %v2527_v28 = vld [vmem:[#allocation24 + $0x10] sm:$0xff] }
 0xd32   :  { %v2168_v54 = vpop.f32.mrf.mxu1  ;;  %5905 = vmatprep.mubr.msk.f32.mxu1 %vm348_vm0, %v2527_v28 }
 0xd33   :  { %v2187_v55 = vadd.f32 %v5449_v52, %v2178_v53  ;;  %v2177_v56 = vadd.f32 %v2168_v54, %v1762_v30  ;;  %5906 = vmatmul.mubr.msk.f32.gmra.mxu1 %vm348_vm0, %v2528_v29  ;;  %v328_v53 = vld [vmem:[%s7545_s17] sm:$0xff]  ;;  %v2419_v54 = vld [vmem:[#allocation12 + $0x10] sm:$0xff] }
 0xd34   :  { %5923 = vmatprep.mubr.msk.f32.mxu1 %vm6681_vm1, %v6680_v13 }
 0xd35   :  { %v2186_v57 = vadd.f32 %v5449_v52, %v2177_v56  ;;  %v2189_v58 = vadd.f32 %v2187_v55, %v6918_v12  ;;  %v2418_v55 = vld [vmem:[#allocation12 + $0x8] sm:$0xff]  ;;  %v2417_v56 = vld [vmem:[#allocation12] sm:$0xff] }
 0xd37   :  { %v2193_v59 = vsel %vm348_vm0, %v2189_v58, 0.0  ;;  %v2188_v60 = vadd.f32 %v2186_v57, %v6910_v8  ;;  %v329_v57 = vld [vmem:[%s7545_s17 + $0x8] sm:$0xff] }
 0xd38   :  { %2194 = vadd.xlane.f32.xlu0 %v2193_v59  ;;  %v330_v59 = vld [vmem:[%s7545_s17 + $0x10] sm:$0xff] }
 0xd39   :  { %v2190_v61 = vsel %vm348_vm0, %v2188_v60, 0.0 }
 0xd3a   :  { %2191 = vadd.xlane.f32.xlu1 %v2190_v61  ;;  %v331_v61 = vld [vmem:[%s7545_s17 + $0x18] sm:$0xff] }
 0xdc1   :  { %v2195_v62 = vpop.xlane.xlu0 %2194 }
 0xdc2   :  { %v2198_v63 = vmul.f32 0.03125, %v2195_v62  ;;  %v2635_v62 = vld [vmem:[#allocation14 + $0x8] sm:$0xff] }
 0xdc3   :  { %v2192_v0 = vpop.xlane.xlu1 %2191 }
 0xdc4   :  { %v7082_v1 = vsub.f32 %v2189_v58, %v2198_v63  ;;  %v2197_v2 = vmul.f32 0.03125, %v2192_v0  ;;  %v2637_v58 = vld [vmem:[#allocation14 + $0x18] sm:$0xff]  ;;  %v332_v63 = vld [vmem:[#allocation6] sm:$0xff]  ;;  %v2634_v0 = vld [vmem:[#allocation14] sm:$0xff] }
 0xdc6   :  { %v7084_v3 = vsub.f32 %v2188_v60, %v2197_v2  ;;  %v2202_v12 = vmul.f32 %v7082_v1, %v7082_v1  ;;  %v2636_v60 = vld [vmem:[#allocation14 + $0x10] sm:$0xff] }
 0xdc8   :  { %v2206_v8 = vsel %vm348_vm0, %v2202_v12, 0.0  ;;  %v2201_v4 = vmul.f32 %v7084_v3, %v7084_v3  ;;  %v5879_v12 = vpop.f32.mrf.mxu1 }
 0xdc9   :  { %2207 = vadd.xlane.f32.xlu0 %v2206_v8  ;;  %v7153_v25 = vadd.f32 %v5879_v12, %v5453_v18 }
 0xdca   :  { %v2203_v5 = vsel %vm348_vm0, %v2201_v4, 0.0  ;;  %v2408_v4 = vpop.f32.mrf.mxu1 }
 0xdcb   :  { %2204 = vadd.xlane.f32.xlu1 %v2203_v5  ;;  %v7155_v26 = vadd.f32 %v5453_v18, %v2408_v4 }
 0xdcc   :  { %v5904_v7 = vpop.f32.mrf.mxu1 }
 0xdce   :  { %v2611_v16 = vpop.f32.mrf.mxu1 }
 0xdf3   :  { %v5907_v24 = vpop.f32.mrf.mxu1 }
 0xe52   :  { %v2208_v30 = vpop.xlane.xlu0 %2207 }
 0xe53   :  { %v2210_v31 = vmul.f32 0.03125, %v2208_v30 }
 0xe54   :  { %v2205_v32 = vpop.xlane.xlu1 %2204 }
 0xe55   :  { %v2212_v33 = vadd.f32 1e-05, %v2210_v31  ;;  %v2209_v34 = vmul.f32 0.03125, %v2205_v32  ;;  %v2621_v31 = vpop.f32.mrf.mxu1  ;;  %v5450_v32 = vld [vmem:[%s7548_s12] ss:$0 sm:$0xff] }
 0xe57   :  { %6249 = vrsqrt.f32 %v2212_v33  ;;  %v2211_v35 = vadd.f32 1e-05, %v2209_v34 }
 0xe59   :  { %6251 = vrsqrt.f32 %v2211_v35 }
 0xe64   :  { %v6250_v42 = vpop.eup %6249 }
 0xe65   :  { %v2216_v43 = vmul.f32 %v6250_v42, %v7082_v1  ;;  %v333_v1 = vld [vmem:[#allocation6 + $0x8] sm:$0xff] }
 0xe66   :  { %v6252_v21 = vpop.eup %6251 }
 0xe67   :  { %v2215_v45 = vmul.f32 %v6252_v21, %v7084_v3  ;;  %v2222_v46 = vmul.f32 %v2220_v41, %v2216_v43 }
 0xe69   :  { %v2221_v47 = vmul.f32 %v2220_v41, %v2215_v45  ;;  %v7112_v48 = vadd.f32 %v2226_v44, %v2222_v46 }
 0xe6b   :  { %v7114_v50 = vadd.f32 %v2226_v44, %v2221_v47  ;;  %v2232_v52 = vadd.f32 %v2230_v22, %v7112_v48 }
 0xe6d   :  { %v2231_v51 = vadd.f32 %v2229_v49, %v7114_v50 }
 0xe6f   :  { %5866 = vmatprep.mubr.msk.f32.mxu0 %vm348_vm0, %v2231_v51 }
 0xe70   :  { %5867 = vmatmul.mubr.msk.f32.vlgmr.msra.gmra.mxu0 %vm348_vm0, %v2232_v52 }
 0xe71   :  { %5881 = vmatpush3.msra.mxu0 %v2420_v17  ;;  %5888 = vmatprep.mubr.msk.f32.mxu0 %vm348_vm0, %v328_v53 }
 0xe72   :  { %5882 = vmatprep.subr.mxu0 %v2419_v54 }
 0xe73   :  { %5883 = vmatpush3.msra.mxu0 %v2419_v54 }
 0xe74   :  { %5884 = vmatprep.subr.mxu0 %v2418_v55 }
 0xe75   :  { %5885 = vmatpush3.msra.mxu0 %v2418_v55 }
 0xe76   :  { %5886 = vmatprep.subr.mxu0 %v2417_v56 }
 0xe77   :  { %5887 = vmatpush3.msra.mxu0 %v2417_v56 }
 0xe78   :  { %5889 = vmatmul.mubr.msk.f32.vlgmr.msra.gmra.mxu0 %vm348_vm0, %v329_v57  ;;  %5908 = vmatprep.subr.mxu0 %v2637_v58 }
 0xe79   :  { %5909 = vmatpush3.msra.mxu0 %v2637_v58  ;;  %5891 = vmatprep.mubr.msk.f32.mxu0 %vm348_vm0, %v330_v59 }
 0xe7a   :  { %5910 = vmatprep.subr.mxu0 %v2636_v60 }
 0xe7b   :  { %5911 = vmatpush3.msra.mxu0 %v2636_v60 }
 0xe7c   :  { %5892 = vmatmul.mubr.msk.f32.gmra.mxu0 %vm348_vm0, %v331_v61  ;;  %5912 = vmatprep.subr.mxu0 %v2635_v62 }
 0xe7d   :  { %5913 = vmatpush3.msra.mxu0 %v2635_v62  ;;  %5916 = vmatprep.mubr.msk.f32.mxu0 %vm348_vm0, %v332_v63 }
 0xe7e   :  { %5914 = vmatprep.subr.mxu0 %v2634_v0 }
 0xe7f   :  { %5915 = vmatpush3.msra.mxu0 %v2634_v0 }
 0xe80   :  { %5917 = vmatmul.mubr.msk.f32.vlgmr.msra.gmra.mxu0 %vm348_vm0, %v333_v1  ;;  %5926 = vmatprep.subr.mxu0 %v6680_v13 }
 0xe81   :  { %5930 = vmatprep.mubr.msk.f32.mxu0 %vm6681_vm1, %v6680_v13 }
 0xf30   :  { %v5868_v2 = vpop.f32.mrf.mxu0 }
 0xf31   :  { %v7194_v35 = vadd.f32 %v5868_v2, %v5450_v32 }
 0xf32   :  { %v2316_v3 = vpop.f32.mrf.mxu0 }
 0xf33   :  { %v7196_v36 = vadd.f32 %v5450_v32, %v2316_v3 }
 0xf38   :  { %v5890_v8 = vpop.f32.mrf.mxu0 }
 0xf39   :  { %v7143_v19 = vadd.f32 %v5890_v8, %v5456_v15 }
 0xf3a   :  { %v2506_v5 = vpop.f32.mrf.mxu0 }
 0xf3b   :  { %v7159_v27 = vadd.f32 %v5456_v15, %v2506_v5  ;;  %v7162_v28 = vadd.f32 %v5904_v7, %v7143_v19 }
 0xf3c   :  { %v5893_v6 = vpop.f32.mrf.mxu0 }
 0xf3d   :  { %v7145_v20 = vadd.f32 %v5893_v6, %v5456_v15  ;;  %v7181_v33 = vadd.f32 %v2611_v16, %v7159_v27 }
 0xf3e   :  { %v2516_v9 = vpop.f32.mrf.mxu0 }
 0xf3f   :  { %v7164_v29 = vadd.f32 %v5456_v15, %v2516_v9  ;;  %v7167_v30 = vadd.f32 %v5907_v24, %v7145_v20 }
 0xf40   :  { %v5918_v11 = vpop.f32.mrf.mxu0 }
 0xf41   :  { %v7133_v14 = vadd.f32 %v5918_v11, %v5465_v10  ;;  %v7184_v34 = vadd.f32 %v2621_v31, %v7164_v29 }
 0xf42   :  { %v2717_v17 = vpop.f32.mrf.mxu0 }
 0xf43   :  { %5920 = vmatpush3.xpose.msk.msra.mxu1 %vm527_vm2, %v7133_v14  ;;  %5927 = vmatpush3.xpose.msk.msra.mxu0 %vm527_vm2, %v7133_v14  ;;  %v7147_v23 = vadd.f32 %v5465_v10, %v2717_v17 }
 0xf44   :  { %5921 = vmatprep.subr.mxu1 %v6680_v13  ;;  %5928 = vmatprep.subr.mxu0 %v6680_v13 }
 0xf47   :  { %5922 = vmatpush3.xpose.msk.msra.mxu1 %vm527_vm2, %v7147_v23  ;;  %5929 = vmatpush3.xpose.msk.msra.mxu0 %vm527_vm2, %v7147_v23 }
 0xf48   :  { %5933 = vmatprep.subr.mxu1 %v6680_v13  ;;  %5940 = vmatprep.subr.mxu0 %v6680_v13 }
 0xf4a   :  { %5924 = vmatmul.mubr.msk.f32.vlgmr.msra.gmra.mxu1 %vm527_vm2, %v7155_v26  ;;  %5931 = vmatmul.mubr.msk.f32.vlgmr.msra.gmra.mxu0 %vm527_vm2, %v7153_v25 }
 0xf4b   :  { %5934 = vmatpush3.xpose.msk.msra.mxu1 %vm527_vm2, %v7162_v28  ;;  %5941 = vmatpush3.xpose.msk.msra.mxu0 %vm527_vm2, %v7167_v30 }
 0xf4c   :  { %5935 = vmatprep.subr.mxu1 %v6680_v13  ;;  %5942 = vmatprep.subr.mxu0 %v6680_v13 }
 0xf4d   :  { %5937 = vmatprep.mubr.msk.f32.mxu1 %vm6681_vm1, %v6680_v13  ;;  %5944 = vmatprep.mubr.msk.f32.mxu0 %vm6681_vm1, %v6680_v13 }
 0xf4f   :  { %5936 = vmatpush3.xpose.msk.msra.mxu1 %vm527_vm2, %v7181_v33  ;;  %5943 = vmatpush3.xpose.msk.msra.mxu0 %vm527_vm2, %v7184_v34 }
 0xf50   :  { %5947 = vmatprep.subr.mxu1 %v6680_v13  ;;  %5961 = vmatprep.subr.mxu0 %v6680_v13 }
 0xf52   :  { %5938 = vmatmul.mubr.msk.f32.vlgmr.msra.gmra.mxu1 %vm527_vm2, %v7196_v36  ;;  %5945 = vmatmul.mubr.msk.f32.vlgmr.msra.gmra.mxu0 %vm527_vm2, %v7194_v35 }
 0xf53   :  { %5965 = vmatprep.mubr.msk.f32.mxu0 %vm6681_vm1, %v6680_v13  ;;  %5951 = vmatprep.mubr.msk.f32.mxu1 %vm6681_vm1, %v6680_v13 }
0x100a   :  { %v2805_v39 = vpop.f32.mrf.mxu1  ;;  %v2878_v40 = vpop.f32.mrf.mxu0 }
0x100c   :  { %v5925_v37 = vpop.f32.mrf.mxu1  ;;  %v5932_v41 = vpop.f32.mrf.mxu0 }
0x1012   :  { %v2957_v42 = vpop.f32.mrf.mxu1  ;;  %v3036_v43 = vpop.f32.mrf.mxu0 }
0x1013   :  { %v2958_v21 = vadd.f32 %v2957_v42, %v2805_v39  ;;  %v3037_v44 = vadd.f32 %v3036_v43, %v2878_v40 }
0x1014   :  { %v5939_v45 = vpop.f32.mrf.mxu1  ;;  %v5946_v46 = vpop.f32.mrf.mxu0 }
0x1015   :  { %v3040_v47 = vmul.f32 0.25, %v2958_v21  ;;  %v3041_v49 = vmul.f32 0.25, %v3037_v44 }
0x1017   :  { %v3046_v22 = vsel %vm3042_vm3, %v3041_v49, -inf  ;;  %v3043_v51 = vsel %vm3042_vm3, %v3040_v47, -inf }
0x1018   :  { %3047 = vmax.xlane.f32.xlu0 %v3046_v22  ;;  %3044 = vmax.xlane.f32.xlu1 %v3043_v51 }
0x1029   :  { %3069 = vrot.lane.b32.xlu1 %v7143_v19, %s6682_s3 }
0x102d   :  { %3150 = vrot.lane.b32.xlu1 %v7145_v20, %s6682_s3 }
0x102e   :  { %3067 = vrot.lane.b32.xlu0 %v7159_v27, %s6682_s3 }
0x1031   :  { %3148 = vrot.lane.b32.xlu1 %v7164_v29, %s6682_s3 }
0x1032   :  { %3231 = vrot.lane.b32.xlu0 %v7133_v14, %s6685_s10 }
0x1035   :  { %3229 = vrot.lane.b32.xlu1 %v7147_v23, %s6685_s10 }
0x10a1   :  { %v3048_v52 = vpop.xlane.xlu0 %3047  ;;  %v3045_v53 = vpop.xlane.xlu1 %3044 }
0x10a2   :  { %v3050_v54 = vsub.f32 %v3041_v49, %v3048_v52  ;;  %v3049_v55 = vsub.f32 %v3040_v47, %v3045_v53 }
0x10a4   :  { %v3053_v56 = vmul.f32 1.442695, %v3050_v54  ;;  %v3051_v57 = vmul.f32 1.442695, %v3049_v55 }
0x10a5   :  { %v3068_v58 = vpop.permute.xlu0 %3067  ;;  %v3070_v59 = vpop.permute.xlu1 %3069 }
0x10a6   :  { %6253 = vpow2.f32 %v3053_v56  ;;  %5948 = vmatpush3.msra.mxu1 %v3070_v59 }
0x10a7   :  { %6255 = vpow2.f32 %v3051_v57  ;;  %5949 = vmatprep.subr.mxu1 %v6680_v13 }
0x10a8   :  { %5950 = vmatpush3.msra.mxu1 %v3068_v58 }
0x10a9   :  { %v3232_v60 = vpop.permute.xlu0 %3231  ;;  %v3151_v61 = vpop.permute.xlu1 %3150  ;;  %5954 = vmatprep.subr.mxu1 %v6680_v13 }
0x10aa   :  { %5962 = vmatpush3.xpose.msk.msra.mxu0 %vm527_vm2, %v3232_v60 }
0x10ab   :  { %5963 = vmatprep.subr.mxu0 %v6680_v13 }
0x10ad   :  { %v3149_v62 = vpop.permute.xlu1 %3148 }
0x10b1   :  { %v3230_v63 = vpop.permute.xlu1 %3229 }
0x10b2   :  { %5964 = vmatpush3.xpose.msk.msra.mxu0 %vm527_vm2, %v3230_v63 }
0x10b3   :  { %v6254_v0 = vpop.eup %6253  ;;  %5975 = vmatprep.subr.mxu0 %v6680_v13 }
0x10b4   :  { %v6256_v1 = vpop.eup %6255  ;;  %v3058_v2 = vsel %vm3042_vm3, %v6254_v0, 0.0 }
0x10b5   :  { %3059 = vadd.xlane.f32.xlu0 %v3058_v2  ;;  %v3055_v3 = vsel %vm3042_vm3, %v6256_v1, 0.0 }
0x10b6   :  { %3056 = vadd.xlane.f32.xlu1 %v3055_v3 }
0x10c7   :  { %3387 = vrot.lane.b32.xlu1 %v7162_v28, %s6685_s10 }
0x10cb   :  { %3469 = vrot.lane.b32.xlu1 %v7167_v30, %s6685_s10  ;;  %3227 = vrot.lane.b32.xlu0 %v7155_v26, %s6685_s10 }
0x10cf   :  { %3467 = vrot.lane.b32.xlu1 %v7184_v34, %s6685_s10  ;;  %3309 = vrot.lane.b32.xlu0 %v7153_v25, %s6685_s10 }
0x10d3   :  { %3465 = vrot.lane.b32.xlu1 %v7194_v35, %s6685_s10  ;;  %3385 = vrot.lane.b32.xlu0 %v7181_v33, %s6685_s10 }
0x10d7   :  { %3383 = vrot.lane.b32.xlu0 %v7196_v36, %s6685_s10 }
0x113e   :  { %v3060_v12 = vpop.xlane.xlu0 %3059 }
0x113f   :  { %v3057_v8 = vpop.xlane.xlu1 %3056 }
0x1140   :  { %6257 = vrcp.f32 %v3057_v8 }
0x1141   :  { %6259 = vrcp.f32 %v3060_v12 }
0x1142   :  { %v3228_v4 = vpop.permute.xlu0 %3227 }
0x1143   :  { %v3388_v5 = vpop.permute.xlu1 %3387  ;;  %5966 = vmatmul.mubr.msk.f32.vlgmr.msra.gmra.mxu0 %vm527_vm2, %v3228_v4 }
0x1144   :  { %5976 = vmatpush3.xpose.msk.msra.mxu0 %vm527_vm2, %v3388_v5  ;;  %5979 = vmatprep.mubr.msk.f32.mxu0 %vm6681_vm1, %v6680_v13  ;;  %v2726_v5 = vld [vmem:[#allocation17] sm:$0xff] }
0x1145   :  { %5977 = vmatprep.subr.mxu0 %v6680_v13 }
0x1146   :  { %v3310_v6 = vpop.permute.xlu0 %3309 }
0x1147   :  { %v3470_v17 = vpop.permute.xlu1 %3469 }
0x114a   :  { %v3386_v7 = vpop.permute.xlu0 %3385 }
0x114b   :  { %5978 = vmatpush3.xpose.msk.msra.mxu0 %vm527_vm2, %v3386_v7  ;;  %v3468_v18 = vpop.permute.xlu1 %3467 }
0x114c   :  { %5989 = vmatprep.subr.mxu0 %v6680_v13 }
0x114d   :  { %v6258_v9 = vpop.eup %6257 }
0x114e   :  { %v3384_v10 = vpop.permute.xlu0 %3383  ;;  %v3062_v11 = vmul.f32 %v6258_v9, %v6256_v1  ;;  %v6260_v15 = vpop.eup %6259 }
0x114f   :  { %5980 = vmatmul.mubr.msk.f32.vlgmr.msra.gmra.mxu0 %vm527_vm2, %v3384_v10  ;;  %v3064_v16 = vmul.f32 %v6260_v15, %v6254_v0  ;;  %v3466_v24 = vpop.permute.xlu1 %3465 }
0x1150   :  { %5952 = vmatmul.mubr.msk.f32.vlgmr.msra.gmra.mxu1 %vm3042_vm3, %v3062_v11  ;;  %5993 = vmatprep.mubr.msk.f32.mxu0 %vm6681_vm1, %v6680_v13 }
0x1151   :  { %5955 = vmatpush3.msra.mxu1 %v3151_v61  ;;  %5958 = vmatprep.mubr.msk.f32.mxu1 %vm6681_vm1, %v6680_v13 }
0x1152   :  { %5956 = vmatprep.subr.mxu1 %v6680_v13 }
0x1153   :  { %5957 = vmatpush3.msra.mxu1 %v3149_v62 }
0x1154   :  { %5968 = vmatprep.subr.mxu1 %v6680_v13  ;;  %5959 = vmatmul.mubr.msk.f32.vlgmr.msra.gmra.mxu1 %vm3042_vm3, %v3064_v16 }
0x1155   :  { %5969 = vmatpush3.xpose.msk.msra.mxu1 %vm527_vm2, %v3232_v60  ;;  %5972 = vmatprep.mubr.msk.f32.mxu1 %vm6681_vm1, %v6680_v13 }
0x1156   :  { %5970 = vmatprep.subr.mxu1 %v6680_v13 }
0x1159   :  { %5971 = vmatpush3.xpose.msk.msra.mxu1 %vm527_vm2, %v3230_v63 }
0x115a   :  { %5982 = vmatprep.subr.mxu1 %v6680_v13 }
0x115c   :  { %5973 = vmatmul.mubr.msk.f32.vlgmr.msra.gmra.mxu1 %vm527_vm2, %v3310_v6 }
0x115d   :  { %5983 = vmatpush3.xpose.msk.msra.mxu1 %vm527_vm2, %v3470_v17  ;;  %5986 = vmatprep.mubr.msk.f32.mxu1 %vm6681_vm1, %v6680_v13 }
0x115e   :  { %5984 = vmatprep.subr.mxu1 %v6680_v13 }
0x1161   :  { %5985 = vmatpush3.xpose.msk.msra.mxu1 %vm527_vm2, %v3468_v18 }
0x1162   :  { %5996 = vmatprep.subr.mxu1 %v6680_v13 }
0x1164   :  { %5987 = vmatmul.mubr.msk.f32.vlgmr.msra.gmra.mxu1 %vm527_vm2, %v3466_v24 }
0x1165   :  { %6000 = vmatprep.mubr.msk.f32.mxu1 %vm6681_vm1, %v6680_v13 }
0x1203   :  { %v3305_v31 = vpop.f32.mrf.mxu0 }
0x1205   :  { %v5967_v32 = vpop.f32.mrf.mxu0 }
0x1206   :  { %v2727_v32 = vld [vmem:[#allocation17 + $0x8] sm:$0xff] }
0x120f   :  { %v3461_v39 = vpop.f32.mrf.mxu0 }
0x1210   :  { %v7278_v40 = vpop.f32.mrf.mxu1  ;;  %v3462_v37 = vadd.f32 %v3461_v39, %v3305_v31 }
0x1211   :  { %v5981_v41 = vpop.f32.mrf.mxu0 }
0x1212   :  { %v3547_v42 = vmul.f32 0.25, %v3462_v37  ;;  %v5953_v43 = vpop.f32.mrf.mxu1 }
0x1214   :  { %v7280_v21 = vpop.f32.mrf.mxu1  ;;  %v3549_v44 = vsel %vm3042_vm3, %v3547_v42, -inf }
0x1215   :  { %3550 = vmax.xlane.f32.xlu0 %v3549_v44 }
0x1216   :  { %v5960_v45 = vpop.f32.mrf.mxu1 }
0x121c   :  { %v3379_v46 = vpop.f32.mrf.mxu1 }
0x121e   :  { %v5974_v47 = vpop.f32.mrf.mxu1 }
0x1224   :  { %v3543_v49 = vpop.f32.mrf.mxu1 }
0x1225   :  { %v3544_v22 = vadd.f32 %v3543_v49, %v3379_v46 }
0x1226   :  { %v5988_v51 = vpop.f32.mrf.mxu1 }
0x1227   :  { %v3548_v52 = vmul.f32 0.25, %v3544_v22 }
0x1229   :  { %v3552_v53 = vsel %vm3042_vm3, %v3548_v52, -inf }
0x122a   :  { %3553 = vmax.xlane.f32.xlu1 %v3552_v53 }
0x123b   :  { %3573 = vrot.lane.b32.xlu1 %v7143_v19, %s6684_s2 }
0x123f   :  { %3571 = vrot.lane.b32.xlu1 %v7159_v27, %s6684_s2 }
0x1243   :  { %3650 = vrot.lane.b32.xlu1 %v7164_v29, %s6684_s2 }
0x1247   :  { %3893 = vrot.lane.b32.xlu1 %v7147_v23, %s6687_s14 }
0x124b   :  { %4051 = vrot.lane.b32.xlu1 %v7162_v28, %s6687_s14 }
0x124f   :  { %4133 = vrot.lane.b32.xlu1 %v7167_v30, %s6687_s14 }
0x1253   :  { %4131 = vrot.lane.b32.xlu1 %v7184_v34, %s6687_s14 }
0x1257   :  { %4129 = vrot.lane.b32.xlu1 %v7194_v35, %s6687_s14 }
0x129e   :  { %v3551_v54 = vpop.xlane.xlu0 %3550 }
0x129f   :  { %v3555_v55 = vsub.f32 %v3547_v42, %v3551_v54 }
0x12a1   :  { %v3557_v56 = vmul.f32 1.442695, %v3555_v55 }
0x12a3   :  { %6261 = vpow2.f32 %v3557_v56 }
0x12b0   :  { %v6262_v57 = vpop.eup %6261 }
0x12b1   :  { %v3561_v58 = vsel %vm3042_vm3, %v6262_v57, 0.0 }
0x12b2   :  { %3562 = vadd.xlane.f32.xlu0 %v3561_v58 }
0x12b3   :  { %v3554_v59 = vpop.xlane.xlu1 %3553 }
0x12b4   :  { %v3556_v60 = vsub.f32 %v3548_v52, %v3554_v59 }
0x12b6   :  { %v3559_v61 = vmul.f32 1.442695, %v3556_v60 }
0x12b7   :  { %v3574_v62 = vpop.permute.xlu1 %3573 }
0x12b8   :  { %6263 = vpow2.f32 %v3559_v61  ;;  %5990 = vmatpush3.msra.mxu0 %v3574_v62 }
0x12b9   :  { %5991 = vmatprep.subr.mxu0 %v6680_v13 }
0x12bb   :  { %v3572_v63 = vpop.permute.xlu1 %3571 }
0x12bc   :  { %5992 = vmatpush3.msra.mxu0 %v3572_v63 }
0x12bd   :  { %6003 = vmatprep.subr.mxu0 %v2727_v32 }
0x12bf   :  { %v3651_v6 = vpop.permute.xlu1 %3650 }
0x12c3   :  { %v3894_v7 = vpop.permute.xlu1 %3893 }
0x12c5   :  { %v6264_v0 = vpop.eup %6263 }
0x12c6   :  { %v3564_v1 = vsel %vm3042_vm3, %v6264_v0, 0.0 }
0x12c7   :  { %3565 = vadd.xlane.f32.xlu0 %v3564_v1  ;;  %v4052_v15 = vpop.permute.xlu1 %4051 }
0x12cb   :  { %v4134_v17 = vpop.permute.xlu1 %4133 }
0x12cf   :  { %v4132_v24 = vpop.permute.xlu1 %4131 }
0x12d3   :  { %v4130_v31 = vpop.permute.xlu1 %4129 }
0x12dd   :  { %3652 = vrot.lane.b32.xlu0 %v7145_v20, %s6684_s2 }
0x12e1   :  { %3895 = vrot.lane.b32.xlu0 %v7133_v14, %s6687_s14 }
0x12e5   :  { %3891 = vrot.lane.b32.xlu0 %v7155_v26, %s6687_s14 }
0x12e9   :  { %3973 = vrot.lane.b32.xlu0 %v7153_v25, %s6687_s14 }
0x12ed   :  { %4049 = vrot.lane.b32.xlu0 %v7181_v33, %s6687_s14 }
0x12f1   :  { %4047 = vrot.lane.b32.xlu0 %v7196_v36, %s6687_s14 }
0x133b   :  { %v3563_v2 = vpop.xlane.xlu0 %3562 }
0x133c   :  { %6265 = vrcp.f32 %v3563_v2 }
0x1349   :  { %v6266_v3 = vpop.eup %6265 }
0x134a   :  { %v3568_v12 = vmul.f32 %v6266_v3, %v6262_v57 }
0x134c   :  { %5994 = vmatmul.mubr.msk.f32.vlgmr.msra.gmra.mxu0 %vm3042_vm3, %v3568_v12 }
0x134d   :  { %6004 = vmatpush3.msra.mxu0 %v2727_v32 }
0x134e   :  { %6013 = vmatprep.subr.mxu0 %v6680_v13 }
0x1350   :  { %v3566_v8 = vpop.xlane.xlu0 %3565 }
0x1351   :  { %6267 = vrcp.f32 %v3566_v8 }
0x1354   :  { %v3653_v4 = vpop.permute.xlu0 %3652 }
0x1355   :  { %5997 = vmatpush3.msra.mxu1 %v3653_v4 }
0x1356   :  { %5998 = vmatprep.subr.mxu1 %v6680_v13 }
0x1357   :  { %5999 = vmatpush3.msra.mxu1 %v3651_v6 }
0x1358   :  { %6008 = vmatprep.subr.mxu1 %v2726_v5  ;;  %v3896_v11 = vpop.permute.xlu0 %3895 }
0x135c   :  { %v3892_v16 = vpop.permute.xlu0 %3891 }
0x135e   :  { %v6268_v9 = vpop.eup %6267 }
0x135f   :  { %v3570_v10 = vmul.f32 %v6268_v9, %v6264_v0 }
0x1360   :  { %v3974_v18 = vpop.permute.xlu0 %3973 }
0x1361   :  { %6001 = vmatmul.mubr.msk.f32.vlgmr.msra.gmra.mxu1 %vm3042_vm3, %v3570_v10 }
0x1362   :  { %6010 = vmatprep.mubr.msk.f32.mxu1 %vm527_vm2, %v7278_v40  ;;  %6009 = vmatpush3.msra.mxu1 %v2726_v5 }
0x1363   :  { %6020 = vmatprep.subr.mxu1 %v6680_v13 }
0x1364   :  { %v4050_v43 = vpop.permute.xlu0 %4049 }
0x1365   :  { %6011 = vmatmul.mubr.msk.f32.vlgmr.msra.gmra.mxu1 %vm527_vm2, %v7280_v21 }
0x1366   :  { %6021 = vmatpush3.xpose.msk.msra.mxu1 %vm527_vm2, %v3896_v11  ;;  %6024 = vmatprep.mubr.msk.f32.mxu1 %vm6681_vm1, %v6680_v13 }
0x1367   :  { %6022 = vmatprep.subr.mxu1 %v6680_v13 }
0x1368   :  { %v4048_v46 = vpop.permute.xlu0 %4047 }
0x136a   :  { %6023 = vmatpush3.xpose.msk.msra.mxu1 %vm527_vm2, %v3894_v7 }
0x136b   :  { %6034 = vmatprep.subr.mxu1 %v6680_v13 }
0x136d   :  { %6025 = vmatmul.mubr.msk.f32.vlgmr.msra.gmra.mxu1 %vm527_vm2, %v3974_v18 }
0x136e   :  { %6035 = vmatpush3.xpose.msk.msra.mxu1 %vm527_vm2, %v4134_v17  ;;  %6038 = vmatprep.mubr.msk.f32.mxu1 %vm6681_vm1, %v6680_v13  ;;  %v2728_v17 = vld [vmem:[#allocation17 + $0x10] sm:$0xff] }
0x136f   :  { %6036 = vmatprep.subr.mxu1 %v6680_v13 }
0x1372   :  { %6037 = vmatpush3.xpose.msk.msra.mxu1 %vm527_vm2, %v4132_v24 }
0x1373   :  { %6048 = vmatprep.subr.mxu1 %v6680_v13 }
0x1375   :  { %6039 = vmatmul.mubr.msk.f32.vlgmr.msra.gmra.mxu1 %vm527_vm2, %v4130_v31 }
0x1376   :  { %6052 = vmatprep.mubr.msk.f32.mxu1 %vm6681_vm1, %v6680_v13 }
0x140c   :  { %v3646_v39 = vpop.f32.mrf.mxu0 }
0x140d   :  { %6005 = vmatprep.mubr.msk.f32.mxu0 %vm527_vm2, %v3646_v39 }
0x140e   :  { %v5995_v40 = vpop.f32.mrf.mxu0 }
0x1421   :  { %v3725_v37 = vpop.f32.mrf.mxu1 }
0x1422   :  { %6006 = vmatmul.mubr.msk.f32.vlgmr.msra.gmra.mxu0 %vm527_vm2, %v3725_v37 }
0x1423   :  { %6014 = vmatpush3.xpose.msk.msra.mxu0 %vm527_vm2, %v3896_v11  ;;  %v6002_v41 = vpop.f32.mrf.mxu1  ;;  %6017 = vmatprep.mubr.msk.f32.mxu0 %vm6681_vm1, %v6680_v13 }
0x1424   :  { %6015 = vmatprep.subr.mxu0 %v6680_v13 }
0x1425   :  { %v7346_v42 = vpop.f32.mrf.mxu1 }
0x1427   :  { %6016 = vmatpush3.xpose.msk.msra.mxu0 %vm527_vm2, %v3894_v7  ;;  %v7351_v21 = vpop.f32.mrf.mxu1 }
0x1428   :  { %6027 = vmatprep.subr.mxu0 %v6680_v13 }
0x142a   :  { %6018 = vmatmul.mubr.msk.f32.vlgmr.msra.gmra.mxu0 %vm527_vm2, %v3892_v16 }
0x142b   :  { %6028 = vmatpush3.xpose.msk.msra.mxu0 %vm527_vm2, %v4052_v15  ;;  %6031 = vmatprep.mubr.msk.f32.mxu0 %vm6681_vm1, %v6680_v13 }
0x142c   :  { %6029 = vmatprep.subr.mxu0 %v6680_v13 }
0x142d   :  { %v4043_v44 = vpop.f32.mrf.mxu1 }
0x142f   :  { %v6026_v45 = vpop.f32.mrf.mxu1  ;;  %6030 = vmatpush3.xpose.msk.msra.mxu0 %vm527_vm2, %v4050_v43 }
0x1430   :  { %6041 = vmatprep.subr.mxu0 %v6680_v13 }
0x1432   :  { %6032 = vmatmul.mubr.msk.f32.vlgmr.msra.gmra.mxu0 %vm527_vm2, %v4048_v46 }
0x1433   :  { %6045 = vmatprep.mubr.msk.f32.mxu0 %vm6681_vm1, %v6680_v13 }
0x1435   :  { %v4207_v47 = vpop.f32.mrf.mxu1 }
0x1436   :  { %v4208_v49 = vadd.f32 %v4207_v47, %v4043_v44 }
0x1437   :  { %v6040_v22 = vpop.f32.mrf.mxu1 }
0x1438   :  { %v4212_v51 = vmul.f32 0.25, %v4208_v49 }
0x143a   :  { %v4216_v52 = vsel %vm3042_vm3, %v4212_v51, -inf }
0x143b   :  { %4217 = vmax.xlane.f32.xlu1 %v4216_v52 }
0x144c   :  { %4237 = vrot.lane.b32.xlu1 %v7143_v19, %s6688_s13 }
0x1450   :  { %4235 = vrot.lane.b32.xlu1 %v7159_v27, %s6688_s13 }
0x1454   :  { %4314 = vrot.lane.b32.xlu1 %v7164_v29, %s6688_s13 }
0x1458   :  { %4478 = vrot.lane.b32.xlu1 %v7147_v23, %s6691_s20 }
0x145c   :  { %4636 = vrot.lane.b32.xlu1 %v7162_v28, %s6691_s20 }
0x1460   :  { %4718 = vrot.lane.b32.xlu1 %v7167_v30, %s6691_s20 }
0x1464   :  { %4716 = vrot.lane.b32.xlu1 %v7184_v34, %s6691_s20 }
0x1468   :  { %4714 = vrot.lane.b32.xlu1 %v7194_v35, %s6691_s20 }
0x14c4   :  { %v4218_v53 = vpop.xlane.xlu1 %4217 }
0x14c5   :  { %v4220_v23 = vsub.f32 %v4212_v51, %v4218_v53 }
0x14c7   :  { %v4223_v28 = vmul.f32 1.442695, %v4220_v23 }
0x14c8   :  { %v4238_v54 = vpop.permute.xlu1 %4237 }
0x14c9   :  { %6042 = vmatpush3.msra.mxu0 %v4238_v54  ;;  %6269 = vpow2.f32 %v4223_v28 }
0x14ca   :  { %6043 = vmatprep.subr.mxu0 %v6680_v13 }
0x14cc   :  { %v4236_v55 = vpop.permute.xlu1 %4235 }
0x14cd   :  { %6044 = vmatpush3.msra.mxu0 %v4236_v55 }
0x14ce   :  { %6055 = vmatprep.subr.mxu0 %v2728_v17 }
0x14d0   :  { %v4315_v6 = vpop.permute.xlu1 %4314 }
0x14d6   :  { %v6270_v62 = vpop.eup %6269 }
0x14d7   :  { %v4228_v63 = vsel %vm3042_vm3, %v6270_v62, 0.0 }
0x14e2   :  { %v7380_v56 = vpop.f32.mrf.mxu0 }
0x14e3   :  { %v3888_v55 = vadd.f32 %v7346_v42, %v7380_v56 }
0x14e4   :  { %v7382_v57 = vpop.f32.mrf.mxu0 }
0x14e5   :  { %v3883_v28 = vadd.f32 %v7351_v21, %v7382_v57 }
0x14ea   :  { %v3969_v30 = vpop.f32.mrf.mxu0 }
0x14ec   :  { %v6019_v58 = vpop.f32.mrf.mxu0 }
0x14f2   :  { %v4125_v34 = vpop.f32.mrf.mxu0 }
0x14f3   :  { %v4126_v59 = vadd.f32 %v4125_v34, %v3969_v30 }
0x14f4   :  { %v6033_v60 = vpop.f32.mrf.mxu0 }
0x14f5   :  { %v4211_v35 = vmul.f32 0.25, %v4126_v59 }
0x14f7   :  { %v4213_v61 = vsel %vm3042_vm3, %v4211_v35, -inf }
0x14f8   :  { %4214 = vmax.xlane.f32.xlu0 %v4213_v61 }
0x14fc   :  { %4229 = vadd.xlane.f32.xlu0 %v4228_v63 }
0x1581   :  { %v4215_v0 = vpop.xlane.xlu0 %4214 }
0x1582   :  { %v4219_v1 = vsub.f32 %v4211_v35, %v4215_v0 }
0x1584   :  { %v4221_v2 = vmul.f32 1.442695, %v4219_v1 }
0x1585   :  { %v4230_v8 = vpop.xlane.xlu0 %4229 }
0x1586   :  { %6271 = vpow2.f32 %v4221_v2 }
0x1587   :  { %6273 = vrcp.f32 %v4230_v8 }
0x1593   :  { %v6272_v3 = vpop.eup %6271 }
0x1594   :  { %v4225_v12 = vsel %vm3042_vm3, %v6272_v3, 0.0  ;;  %v6274_v5 = vpop.eup %6273 }
0x1595   :  { %4226 = vadd.xlane.f32.xlu0 %v4225_v12 }
0x15ab   :  { %4316 = vrot.lane.b32.xlu0 %v7145_v20, %s6688_s13 }
0x15af   :  { %4480 = vrot.lane.b32.xlu0 %v7133_v14, %s6691_s20  ;;  %v4234_v14 = vmul.f32 %v6274_v5, %v6270_v62 }
0x15b3   :  { %4476 = vrot.lane.b32.xlu0 %v7155_v26, %s6691_s20 }
0x15b7   :  { %4558 = vrot.lane.b32.xlu0 %v7153_v25, %s6691_s20  ;;  %v4479_v25 = vpop.permute.xlu1 %4478 }
0x15bb   :  { %4634 = vrot.lane.b32.xlu0 %v7181_v33, %s6691_s20  ;;  %v4637_v10 = vpop.permute.xlu1 %4636 }
0x15bf   :  { %4632 = vrot.lane.b32.xlu0 %v7196_v36, %s6691_s20  ;;  %v4719_v37 = vpop.permute.xlu1 %4718 }
0x15c3   :  { %v4717_v45 = vpop.permute.xlu1 %4716 }
0x15c7   :  { %v4715_v49 = vpop.permute.xlu1 %4714 }
0x161e   :  { %v4227_v4 = vpop.xlane.xlu0 %4226 }
0x161f   :  { %6275 = vrcp.f32 %v4227_v4 }
0x1622   :  { %v4317_v7 = vpop.permute.xlu0 %4316 }
0x1623   :  { %6049 = vmatpush3.msra.mxu1 %v4317_v7 }
0x1624   :  { %6050 = vmatprep.subr.mxu1 %v6680_v13 }
0x1625   :  { %6051 = vmatpush3.msra.mxu1 %v4315_v6 }
0x1626   :  { %v4481_v26 = vpop.permute.xlu0 %4480  ;;  %6053 = vmatmul.mubr.msk.f32.vlgmr.msra.gmra.mxu1 %vm3042_vm3, %v4234_v14  ;;  %6060 = vmatprep.subr.mxu1 %v6680_v13 }
0x1627   :  { %6061 = vmatpush3.xpose.msk.msra.mxu1 %vm527_vm2, %v4481_v26  ;;  %6064 = vmatprep.mubr.msk.f32.mxu1 %vm6681_vm1, %v6680_v13 }
0x1628   :  { %6062 = vmatprep.subr.mxu1 %v6680_v13 }
0x162a   :  { %v4477_v33 = vpop.permute.xlu0 %4476 }
0x162b   :  { %6063 = vmatpush3.xpose.msk.msra.mxu1 %vm527_vm2, %v4479_v25 }
0x162c   :  { %v6276_v36 = vpop.eup %6275  ;;  %6074 = vmatprep.subr.mxu1 %v6680_v13 }
0x162d   :  { %v4232_v9 = vmul.f32 %v6276_v36, %v6272_v3  ;;  %v5532_v36 = vld [vmem:[#allocation18] ss:$0 sm:$0xff] }
0x162e   :  { %v4559_v11 = vpop.permute.xlu0 %4558  ;;  %6065 = vmatmul.mubr.msk.f32.vlgmr.msra.gmra.mxu1 %vm527_vm2, %v4477_v33 }
0x162f   :  { %6046 = vmatmul.mubr.msk.f32.vlgmr.msra.gmra.mxu0 %vm3042_vm3, %v4232_v9  ;;  %6075 = vmatpush3.xpose.msk.msra.mxu1 %vm527_vm2, %v4637_v10 }
0x1630   :  { %6076 = vmatprep.subr.mxu1 %v6680_v13  ;;  %6078 = vmatprep.mubr.msk.f32.mxu1 %vm6681_vm1, %v6680_v13 }
0x1631   :  { %6056 = vmatpush3.msra.mxu0 %v2728_v17 }
0x1632   :  { %v4635_v15 = vpop.permute.xlu0 %4634  ;;  %6067 = vmatprep.subr.mxu0 %v6680_v13 }
0x1633   :  { %6077 = vmatpush3.xpose.msk.msra.mxu1 %vm527_vm2, %v4635_v15 }
0x1634   :  { %6088 = vmatprep.subr.mxu1 %v6680_v13 }
0x1636   :  { %v4633_v16 = vpop.permute.xlu0 %4632 }
0x1637   :  { %6079 = vmatmul.mubr.msk.f32.vlgmr.msra.gmra.mxu1 %vm527_vm2, %v4633_v16 }
0x1638   :  { %6092 = vmatprep.mubr.msk.f32.mxu1 %vm6681_vm1, %v6680_v13 }
0x16e6   :  { %v4389_v18 = vpop.f32.mrf.mxu1 }
0x16e8   :  { %v6054_v24 = vpop.f32.mrf.mxu1 }
0x16ee   :  { %v4554_v31 = vpop.f32.mrf.mxu1 }
0x16ef   :  { %v4310_v32 = vpop.f32.mrf.mxu0 }
0x16f0   :  { %6057 = vmatprep.mubr.msk.f32.mxu0 %vm527_vm2, %v4310_v32  ;;  %v6066_v39 = vpop.f32.mrf.mxu1 }
0x16f1   :  { %v6047_v40 = vpop.f32.mrf.mxu0  ;;  %6058 = vmatmul.mubr.msk.f32.vlgmr.msra.gmra.mxu0 %vm527_vm2, %v4389_v18 }
0x16f2   :  { %6068 = vmatpush3.xpose.msk.msra.mxu0 %vm527_vm2, %v4481_v26  ;;  %6071 = vmatprep.mubr.msk.f32.mxu0 %vm6681_vm1, %v6680_v13 }
0x16f3   :  { %6069 = vmatprep.subr.mxu0 %v6680_v13 }
0x16f6   :  { %6070 = vmatpush3.xpose.msk.msra.mxu0 %vm527_vm2, %v4479_v25 }
0x16f7   :  { %v4710_v41 = vpop.f32.mrf.mxu1  ;;  %6081 = vmatprep.subr.mxu0 %v6680_v13 }
0x16f8   :  { %v4711_v43 = vadd.f32 %v4710_v41, %v4554_v31 }
0x16f9   :  { %6072 = vmatmul.mubr.msk.f32.vlgmr.msra.gmra.mxu0 %vm527_vm2, %v4559_v11  ;;  %v6080_v44 = vpop.f32.mrf.mxu1 }
0x16fa   :  { %v4796_v46 = vmul.f32 0.25, %v4711_v43  ;;  %6082 = vmatpush3.xpose.msk.msra.mxu0 %vm527_vm2, %v4719_v37  ;;  %6085 = vmatprep.mubr.msk.f32.mxu0 %vm6681_vm1, %v6680_v13 }
0x16fb   :  { %6083 = vmatprep.subr.mxu0 %v6680_v13 }
0x16fc   :  { %v4798_v47 = vsel %vm3042_vm3, %v4796_v46, -inf }
0x16fd   :  { %4799 = vmax.xlane.f32.xlu0 %v4798_v47  ;;  %v5111_v47 = vld [vmem:[#allocation20 + $0x8] sm:$0xff] }
0x16fe   :  { %6084 = vmatpush3.xpose.msk.msra.mxu0 %vm527_vm2, %v4717_v45  ;;  %v5113_v45 = vld [vmem:[#allocation20 + $0x18] sm:$0xff] }
0x16ff   :  { %6095 = vmatprep.subr.mxu0 %v6680_v13 }
0x1701   :  { %6086 = vmatmul.mubr.msk.f32.vlgmr.msra.gmra.mxu0 %vm527_vm2, %v4715_v49  ;;  %v5110_v49 = vld [vmem:[#allocation20] sm:$0xff] }
0x1702   :  { %6099 = vmatprep.mubr.msk.f32.mxu0 %vm6681_vm1, %v6680_v13 }
0x1786   :  { %v4800_v22 = vpop.xlane.xlu0 %4799 }
0x1787   :  { %v4804_v51 = vsub.f32 %v4796_v46, %v4800_v22  ;;  %v5112_v46 = vld [vmem:[#allocation20 + $0x10] sm:$0xff]  ;;  %v5536_v22 = vld [vmem:[#allocation2] ss:$0 sm:$0xff] }
0x1789   :  { %v4806_v52 = vmul.f32 1.442695, %v4804_v51  ;;  %v5233_v51 = vld [vmem:[%s7549_s26 + $0x78] sm:$0xff] }
0x178b   :  { %6277 = vpow2.f32 %v4806_v52  ;;  %v5232_v52 = vld [vmem:[%s7549_s26 + $0x70] sm:$0xff] }
0x1798   :  { %v6278_v53 = vpop.eup %6277 }
0x1799   :  { %v4810_v54 = vsel %vm3042_vm3, %v6278_v53, 0.0 }
0x179a   :  { %4811 = vadd.xlane.f32.xlu0 %v4810_v54  ;;  %v5231_v54 = vld [vmem:[%s7549_s26 + $0x68] sm:$0xff] }
0x17b1   :  { %v6059_v23 = vpop.f32.mrf.mxu0 }
0x17b2   :  { %v4475_v30 = vadd.f32 %v6059_v23, %v3888_v55  ;;  %v5230_v55 = vld [vmem:[%s7549_s26 + $0x60] sm:$0xff]  ;;  %v5229_v23 = vld [vmem:[%s7549_s26 + $0x58] sm:$0xff] }
0x17b3   :  { %v4465_v58 = vpop.f32.mrf.mxu0 }
0x17b4   :  { %v4474_v34 = vadd.f32 %v4465_v58, %v3883_v28  ;;  %v5228_v28 = vld [vmem:[%s7549_s26 + $0x50] sm:$0xff]  ;;  %v5226_v58 = vld [vmem:[%s7549_s26 + $0x40] sm:$0xff] }
0x17b9   :  { %v4628_v59 = vpop.f32.mrf.mxu0 }
0x17bb   :  { %v6073_v60 = vpop.f32.mrf.mxu0 }
0x17bc   :  { %v5223_v60 = vld [vmem:[%s7549_s26 + $0x28] sm:$0xff] }
0x17c1   :  { %v4792_v35 = vpop.f32.mrf.mxu0 }
0x17c2   :  { %v4793_v61 = vadd.f32 %v4792_v35, %v4628_v59  ;;  %v5224_v59 = vld [vmem:[%s7549_s26 + $0x30] sm:$0xff]  ;;  %v5222_v35 = vld [vmem:[%s7549_s26 + $0x20] sm:$0xff] }
0x17c3   :  { %v6087_v62 = vpop.f32.mrf.mxu0 }
0x17c4   :  { %v4797_v63 = vmul.f32 0.25, %v4793_v61 }
0x17c6   :  { %v4801_v0 = vsel %vm3042_vm3, %v4797_v63, -inf }
0x17c7   :  { %4802 = vmax.xlane.f32.xlu1 %v4801_v0 }
0x17d8   :  { %4822 = vrot.lane.b32.xlu1 %v7143_v19, %s6690_s11 }
0x17dc   :  { %4820 = vrot.lane.b32.xlu1 %v7159_v27, %s6690_s11 }
0x17e0   :  { %4899 = vrot.lane.b32.xlu1 %v7164_v29, %s6690_s11  ;;  %v2729_v29 = vld [vmem:[#allocation17 + $0x18] sm:$0xff] }
0x1823   :  { %v4812_v42 = vpop.xlane.xlu0 %4811 }
0x1824   :  { %6279 = vrcp.f32 %v4812_v42 }
0x1831   :  { %v6280_v2 = vpop.eup %6279 }
0x1832   :  { %v4817_v12 = vmul.f32 %v6280_v2, %v6278_v53  ;;  %v6693_v53 = vmov 0  }
0x1833   :  { %6215 = vset.pattern.permute.xlu1 %v6693_v53  ;;  %6216 = vset.pattern.permute.xlu0 %v6693_v53 }
0x1850   :  { %v4803_v21 = vpop.xlane.xlu1 %4802 }
0x1851   :  { %v4805_v56 = vsub.f32 %v4797_v63, %v4803_v21 }
0x1853   :  { %v4808_v57 = vmul.f32 1.442695, %v4805_v56  ;;  %v5100_v56 = vsub.s32 1, %v7105_v38 }
0x1854   :  { %v4823_v1 = vpop.permute.xlu1 %4822 }
0x1855   :  { %6281 = vpow2.f32 %v4808_v57  ;;  %6089 = vmatpush3.msra.mxu1 %v4823_v1  ;;  %v7488_v57 = vld [vmem:[%s7543_s18] sm:$0x7] }
0x1856   :  { %6090 = vmatprep.subr.mxu1 %v6680_v13  ;;  %v5101_v1 = vrot.slane %v7488_v57, %v5100_v56 }
0x1858   :  { %v4821_v3 = vpop.permute.xlu1 %4820 }
0x1859   :  { %6091 = vmatpush3.msra.mxu1 %v4821_v3 }
0x185a   :  { %6093 = vmatmul.mubr.msk.f32.vlgmr.msra.gmra.mxu1 %vm3042_vm3, %v4817_v12  ;;  %6102 = vmatprep.subr.mxu1 %v2729_v29  ;;  %v7493_v12 = vld [vmem:[%s7544_s23] sm:$0x7] }
0x185b   :  { %6103 = vmatpush3.msra.mxu1 %v2729_v29 }
0x185c   :  { %v4900_v5 = vpop.permute.xlu1 %4899  ;;  %6118 = vmatprep.subr.mxu1 %v5233_v51 }
0x1862   :  { %v6282_v19 = vpop.eup %6281 }
0x1863   :  { %v4813_v27 = vsel %vm3042_vm3, %v6282_v19, 0.0 }
0x1864   :  { %4814 = vadd.xlane.f32.xlu0 %v4813_v27 }
0x187a   :  { %4901 = vrot.lane.b32.xlu0 %v7145_v20, %s6690_s11 }
0x18ed   :  { %v4815_v8 = vpop.xlane.xlu0 %4814 }
0x18ee   :  { %6283 = vrcp.f32 %v4815_v8 }
0x18f1   :  { %v4902_v4 = vpop.permute.xlu0 %4901 }
0x18f2   :  { %6096 = vmatpush3.msra.mxu0 %v4902_v4 }
0x18f3   :  { %6097 = vmatprep.subr.mxu0 %v6680_v13 }
0x18f4   :  { %6098 = vmatpush3.msra.mxu0 %v4900_v5 }
0x18f5   :  { %6107 = vmatprep.subr.mxu0 %v5113_v45 }
0x18fb   :  { %v6284_v6 = vpop.eup %6283 }
0x18fc   :  { %v4819_v7 = vmul.f32 %v6284_v6, %v6282_v19  ;;  %v5107_v19 = vrot.slane %v7493_v12, %v5100_v56 }
0x18fe   :  { %6100 = vmatmul.mubr.msk.f32.vlgmr.msra.gmra.mxu0 %vm3042_vm3, %v4819_v7  ;;  %v5221_v7 = vld [vmem:[%s7549_s26 + $0x18] sm:$0xff] }
0x18ff   :  { %6108 = vmatpush3.msra.mxu0 %v5113_v45 }
0x1900   :  { %6109 = vmatprep.subr.mxu0 %v5112_v46 }
0x1901   :  { %6110 = vmatpush3.msra.mxu0 %v5112_v46 }
0x1902   :  { %6111 = vmatprep.subr.mxu0 %v5111_v47 }
0x1903   :  { %6112 = vmatpush3.msra.mxu0 %v5111_v47 }
0x1904   :  { %6113 = vmatprep.subr.mxu0 %v5110_v49 }
0x1905   :  { %6114 = vmatpush3.msra.mxu0 %v5110_v49 }
0x191a   :  { %v4895_v14 = vpop.f32.mrf.mxu1 }
0x191b   :  { %6104 = vmatprep.mubr.msk.f32.mxu1 %vm527_vm2, %v4895_v14  ;;  %v5220_v14 = vld [vmem:[%s7549_s26 + $0x10] sm:$0xff] }
0x191c   :  { %v6094_v26 = vpop.f32.mrf.mxu1 }
0x191d   :  { %v5219_v26 = vld [vmem:[%s7549_s26 + $0x8] sm:$0xff] }
0x19be   :  { %v4974_v20 = vpop.f32.mrf.mxu0 }
0x19bf   :  { %6105 = vmatmul.mubr.msk.f32.vlgmr.msra.gmra.mxu1 %vm527_vm2, %v4974_v20  ;;  %v5218_v20 = vld [vmem:[%s7549_s26] sm:$0xff] }
0x19c0   :  { %v6101_v25 = vpop.f32.mrf.mxu0  ;;  %6119 = vmatpush3.msra.mxu1 %v5233_v51 }
0x19c1   :  { %6120 = vmatprep.subr.mxu1 %v5232_v52  ;;  %v5533_v25 = vld [vmem:[#allocation21] ss:$0 sm:$0xff] }
0x19c2   :  { %6121 = vmatpush3.msra.mxu1 %v5232_v52 }
0x19c3   :  { %6122 = vmatprep.subr.mxu1 %v5231_v54 }
0x19c4   :  { %6123 = vmatpush3.msra.mxu1 %v5231_v54 }
0x19c5   :  { %6124 = vmatprep.subr.mxu1 %v5230_v55 }
0x19c6   :  { %6125 = vmatpush3.msra.mxu1 %v5230_v55 }
0x19c7   :  { %6126 = vmatprep.subr.mxu1 %v5229_v23 }
0x19c8   :  { %6127 = vmatpush3.msra.mxu1 %v5229_v23 }
0x19c9   :  { %6128 = vmatprep.subr.mxu1 %v5228_v28 }
0x19ca   :  { %6129 = vmatpush3.msra.mxu1 %v5228_v28 }
0x1a7f   :  { %v6106_v33 = vpop.f32.mrf.mxu1 }
0x1a80   :  { %v5060_v9 = vadd.f32 %v6106_v33, %v4475_v30  ;;  %v5227_v30 = vld [vmem:[%s7549_s26 + $0x48] sm:$0xff] }
0x1a81   :  { %v5050_v10 = vpop.f32.mrf.mxu1  ;;  %6130 = vmatprep.subr.mxu1 %v5227_v30 }
0x1a82   :  { %v5069_v11 = vadd.f32 %v5532_v36, %v5060_v9  ;;  %v5059_v15 = vadd.f32 %v5050_v10, %v4474_v34  ;;  %6131 = vmatpush3.msra.mxu1 %v5227_v30  ;;  %v5225_v34 = vld [vmem:[%s7549_s26 + $0x38] sm:$0xff] }
0x1a83   :  { %6132 = vmatprep.subr.mxu1 %v5226_v58 }
0x1a84   :  { %v5068_v13 = vadd.f32 %v5532_v36, %v5059_v15  ;;  %v5071_v16 = vadd.f32 %v5069_v11, %v7112_v48  ;;  %6133 = vmatpush3.msra.mxu1 %v5226_v58  ;;  %v5346_v58 = vsub.s32 2, %v7105_v38 }
0x1a85   :  { %6134 = vmatprep.subr.mxu1 %v5225_v34 }
0x1a86   :  { %v5075_v17 = vsel %vm348_vm0, %v5071_v16, 0.0  ;;  %v5070_v18 = vadd.f32 %v5068_v13, %v7114_v50  ;;  %6135 = vmatpush3.msra.mxu1 %v5225_v34  ;;  %v5347_v34 = vrot.slane %v7488_v57, %v5346_v58 }
0x1a87   :  { %5076 = vadd.xlane.f32.xlu1 %v5075_v17  ;;  %6136 = vmatprep.subr.mxu1 %v5224_v59 }
0x1a88   :  { %v5072_v24 = vsel %vm348_vm0, %v5070_v18, 0.0  ;;  %6137 = vmatpush3.msra.mxu1 %v5224_v59 }
0x1a89   :  { %5073 = vadd.xlane.f32.xlu0 %v5072_v24  ;;  %6138 = vmatprep.subr.mxu1 %v5223_v60  ;;  %v5537_v24 = vld [vmem:[%s7550_s4] ss:$0 sm:$0xff] }
0x1a8a   :  { %6139 = vmatpush3.msra.mxu1 %v5223_v60 }
0x1a8b   :  { %6140 = vmatprep.subr.mxu1 %v5222_v35 }
0x1a8c   :  { %6141 = vmatpush3.msra.mxu1 %v5222_v35  ;;  %v5353_v35 = vrot.slane %v7493_v12, %v5346_v58 }
0x1a8d   :  { %6142 = vmatprep.subr.mxu1 %v5221_v7 }
0x1a8e   :  { %6143 = vmatpush3.msra.mxu1 %v5221_v7 }
0x1a8f   :  { %6144 = vmatprep.subr.mxu1 %v5220_v14 }
0x1a90   :  { %6145 = vmatpush3.msra.mxu1 %v5220_v14 }
0x1a91   :  { %6146 = vmatprep.subr.mxu1 %v5219_v26 }
0x1a92   :  { %6147 = vmatpush3.msra.mxu1 %v5219_v26 }
0x1a93   :  { %6148 = vmatprep.subr.mxu1 %v5218_v20 }
0x1a94   :  { %6149 = vmatpush3.msra.mxu1 %v5218_v20 }
0x1a98   :  { %5211 = vperm.xlu1 %6215, %v5536_v22  }
0x1b10   :  { %v5077_v31 = vpop.xlane.xlu1 %5076 }
0x1b11   :  { %v5079_v32 = vmul.f32 0.03125, %v5077_v31 }
0x1b12   :  { %v5074_v39 = vpop.xlane.xlu0 %5073 }
0x1b13   :  { %v5078_v40 = vmul.f32 0.03125, %v5074_v39  ;;  %v7464_v37 = vsub.f32 %v5071_v16, %v5079_v32 }
0x1b14   :  { %v5212_v9 = vpop.permute.xlu1 %5211 }
0x1b15   :  { %v7466_v41 = vsub.f32 %v5070_v18, %v5078_v40  ;;  %v5083_v50 = vmul.f32 %v7464_v37, %v7464_v37 }
0x1b17   :  { %v5082_v43 = vmul.f32 %v7466_v41, %v7466_v41  ;;  %v5087_v44 = vsel %vm348_vm0, %v5083_v50, 0.0 }
0x1b19   :  { %v5084_v48 = vsel %vm348_vm0, %v5082_v43, 0.0 }
0x1b1a   :  { %5085 = vadd.xlane.f32.xlu0 %v5084_v48 }
0x1b1e   :  { %5088 = vadd.xlane.f32.xlu0 %v5087_v44 }
0x1ba3   :  { %v5086_v61 = vpop.xlane.xlu0 %5085 }
0x1ba4   :  { %v5090_v62 = vmul.f32 0.03125, %v5086_v61 }
0x1ba6   :  { %v5092_v63 = vadd.f32 1e-05, %v5090_v62 }
0x1ba7   :  { %v5089_v0 = vpop.xlane.xlu0 %5088 }
0x1ba8   :  { %6285 = vrsqrt.f32 %v5092_v63  ;;  %v5091_v42 = vmul.f32 0.03125, %v5089_v0 }
0x1baa   :  { %v5093_v21 = vadd.f32 1e-05, %v5091_v42 }
0x1bac   :  { %6287 = vrsqrt.f32 %v5093_v21 }
0x1bb5   :  { %v6286_v2 = vpop.eup %6285 }
0x1bb6   :  { %v5096_v3 = vmul.f32 %v6286_v2, %v7466_v41 }
0x1bb8   :  { %v5102_v27 = vmul.f32 %v5101_v1, %v5096_v3 }
0x1bb9   :  { %v6288_v29 = vpop.eup %6287 }
0x1bba   :  { %v5097_v8 = vmul.f32 %v6288_v29, %v7464_v37  ;;  %v5108_v4 = vadd.f32 %v5107_v19, %v5102_v27 }
0x1bbc   :  { %v5103_v5 = vmul.f32 %v5101_v1, %v5097_v8  ;;  %6115 = vmatprep.mubr.msk.f32.mxu0 %vm348_vm0, %v5108_v4 }
0x1bbe   :  { %v5109_v6 = vadd.f32 %v5107_v19, %v5103_v5 }
0x1bc0   :  { %6116 = vmatmul.mubr.msk.f32.vlgmr.msra.gmra.mxu0 %vm348_vm0, %v5109_v6 }
0x1c80   :  { %v6117_v33 = vpop.f32.mrf.mxu0 }
0x1c81   :  { %v5199_v36 = vadd.f32 %v6117_v33, %v5533_v25 }
0x1c82   :  { %v5193_v10 = vpop.f32.mrf.mxu0 }
0x1c83   :  { %v5194_v11 = vadd.f32 %v5533_v25, %v5193_v10  ;;  %v5215_v15 = vmul.f32 %v5212_v9, %v5199_v36  ;;  %vm5204_vm4 = vcmp.ge.f32.partialorder %v5199_v36, 0.0 }
0x1c85   :  { %v5214_v13 = vmul.f32 %v5212_v9, %v5194_v11  ;;  %vm5203_vm5 = vcmp.ge.f32.partialorder %v5194_v11, 0.0  ;;  %v5217_v17 = vsel %vm5204_vm4, %v5199_v36, %v5215_v15 }
0x1c87   :  { %v5216_v16 = vsel %vm5203_vm5, %v5194_v11, %v5214_v13 }
0x1c88   :  { %6150 = vmatprep.mubr.f32.mxu1 %v5216_v16 }
0x1c89   :  { %6151 = vmatmul.mubr.f32.vlgmr.msra.gmra.mxu1 %v5217_v17 }
0x1d49   :  { %v6152_v18 = vpop.f32.mrf.mxu1 }
0x1d4a   :  { %v5313_v32 = vadd.f32 %v6152_v18, %v5537_v24 }
0x1d4b   :  { %v5307_v31 = vpop.f32.mrf.mxu1 }
0x1d4c   :  { %v5308_v39 = vadd.f32 %v5537_v24, %v5307_v31  ;;  %v5317_v37 = vadd.f32 %v5313_v32, %v5109_v6 }
0x1d4e   :  { %v5316_v40 = vadd.f32 %v5308_v39, %v5108_v4  ;;  %v5321_v43 = vsel %vm348_vm0, %v5317_v37, 0.0 }
0x1d50   :  { %v5318_v41 = vsel %vm348_vm0, %v5316_v40, 0.0 }
0x1d51   :  { %5319 = vadd.xlane.f32.xlu0 %v5318_v41 }
0x1d55   :  { %5322 = vadd.xlane.f32.xlu0 %v5321_v43 }
0x1dda   :  { %v5320_v48 = vpop.xlane.xlu0 %5319 }
0x1ddb   :  { %v5324_v50 = vmul.f32 0.03125, %v5320_v48 }
0x1ddd   :  { %v5326_v44 = vsub.f32 %v5316_v40, %v5324_v50 }
0x1dde   :  { %v5323_v45 = vpop.xlane.xlu0 %5322 }
0x1ddf   :  { %v5325_v46 = vmul.f32 0.03125, %v5323_v45  ;;  %v5328_v47 = vmul.f32 %v5326_v44, %v5326_v44 }
0x1de1   :  { %v5327_v49 = vsub.f32 %v5317_v37, %v5325_v46  ;;  %v5330_v22 = vsel %vm348_vm0, %v5328_v47, 0.0 }
0x1de2   :  { %5331 = vadd.xlane.f32.xlu0 %v5330_v22 }
0x1de3   :  { %v5329_v51 = vmul.f32 %v5327_v49, %v5327_v49 }
0x1de5   :  { %v5333_v52 = vsel %vm348_vm0, %v5329_v51, 0.0 }
0x1de6   :  { %5334 = vadd.xlane.f32.xlu0 %v5333_v52 }
0x1e6b   :  { %v5332_v53 = vpop.xlane.xlu0 %5331 }
0x1e6c   :  { %v5336_v54 = vmul.f32 0.03125, %v5332_v53 }
0x1e6e   :  { %v5338_v55 = vadd.f32 1e-05, %v5336_v54 }
0x1e6f   :  { %v5335_v23 = vpop.xlane.xlu0 %5334 }
0x1e70   :  { %6289 = vrsqrt.f32 %v5338_v55  ;;  %v5337_v28 = vmul.f32 0.03125, %v5335_v23 }
0x1e72   :  { %v5339_v30 = vadd.f32 1e-05, %v5337_v28 }
0x1e74   :  { %6291 = vrsqrt.f32 %v5339_v30 }
0x1e7d   :  { %v6290_v59 = vpop.eup %6289 }
0x1e7e   :  { %v5342_v60 = vmul.f32 %v6290_v59, %v5326_v44 }
0x1e80   :  { %v5348_v61 = vmul.f32 %v5347_v34, %v5342_v60 }
0x1e81   :  { %v6292_v62 = vpop.eup %6291 }
0x1e82   :  { %v5343_v63 = vmul.f32 %v6292_v62, %v5327_v49  ;;  %v5354_v0 = vadd.f32 %v5353_v35, %v5348_v61 }
0x1e84   :  { %v5349_v42 = vmul.f32 %v5347_v34, %v5343_v63  ;;  %5356 = vst.msk [vmem:[#allocation27] sm:$0xff] %vm348_vm0, %v5354_v0 }
0x1e86   :  { %v5355_v21 = vadd.f32 %v5353_v35, %v5349_v42 }
0x1e88   :  { %5357 = vst.msk [vmem:[#allocation27 + $0x8] sm:$0xff] %vm348_vm0, %v5355_v21 }
0x1e89   :  { %6606 = shalt.err (!%p6603_p9)
}
0x1e8a   :  { %5369 = dma.vmem_to_hbm [thread:$0]  %s5364_s24, 256, %s6851_s25, [#allocation5], %s6665_s0, %s6665_s0, %s6666_s8  }
0x1e8b   :  { %6631 = dma.done.wait [#allocation5], 256  }
0x1e8c   :  { %6632 = vsyncadd [#allocation5], 4294967040 }
0x1e8d   :  { %5373 = vsyncpa [#allocation4], 1 }
0x1e8e   :  { %5374 = vsyncpa [#allocation7], 1 }
0x1e8f   :  { %5375 = vsyncpa [#allocation10], 1 }
0x1e90   :  { %5376 = vsyncpa [#allocation13], 1 }
0x1e91   :  { %5377 = vsyncpa [#allocation16], 1 }
0x1e92   :  { %5378 = vsyncpa [#allocation19], 1 }
0x1e93   :  { %5379 = vsyncpa [#allocation22], 1 }
0x1e94   :  { %5380 = vsyncpa [#allocation25], 1 }
0x1e95   :  { %5381 = vsyncpa [#allocation5], 1 }

</bundles_post_ra>
